<compile_context>
chip_gen: v6e
topology: v6e:2x2x1
jax: 0.10.0
libtpu: 0.0.40
codegen_flags: <defaults>
</compile_context>

<pallas_src>
import math
from functools import partial

import jax
import jax.numpy as jnp
from jax.experimental import pallas as pl
from jax.experimental.pallas import tpu as pltpu

COMPUTE_DTYPE = jnp.bfloat16          # matmul input dtype (fp32 accumulation)
VMEM_LIMIT = 32 * 1024 * 1024         # safe on v5e/v6e (128 MiB) and v7x (64 MiB)
LN_EPS = 1e-5


def _recip(x):
    # EUP approx reciprocal when available (free slot); exact divide otherwise.
    if hasattr(pl, "reciprocal"):
        return pl.reciprocal(x, approx=True)
    return 1.0 / x


def _pick_tile(dim, cap, align):
    """Largest tile <= cap that divides dim and is a multiple of `align`;
    falls back to the full dim (allowed by the (8,128) rule) for small/odd dims."""
    if dim <= cap:
        return dim
    if dim % align != 0:
        return dim
    t = (cap // align) * align
    while t >= align:
        if dim % t == 0:
            return t
        t -= align
    return dim


# ----------------------------- linear kernels ------------------------------ #

def _linear_kernel(x_ref, w_ref, b_ref, o_ref, acc_ref, *, activation):
    @pl.when(pl.program_id(2) == 0)
    def _():
        acc_ref[...] = jnp.zeros_like(acc_ref)

    acc_ref[...] += jnp.dot(x_ref[...], w_ref[...],
                            preferred_element_type=jnp.float32)

    @pl.when(pl.program_id(2) == pl.num_programs(2) - 1)
    def _():
        y = acc_ref[...] + b_ref[...].astype(jnp.float32)
        if activation == "relu":
            y = jnp.maximum(y, 0.0)
        o_ref[...] = y.astype(o_ref.dtype)


def _linear_res_ln_kernel(x_ref, w_ref, b_ref, r_ref, g_ref, bb_ref, o_ref, acc_ref,
                          *, eps):
    """Tiled matmul with fused (bias + residual-add + LayerNorm) epilogue.
    Requires the full feature dim in one N tile (tn == N)."""
    @pl.when(pl.program_id(2) == 0)
    def _():
        acc_ref[...] = jnp.zeros_like(acc_ref)

    acc_ref[...] += jnp.dot(x_ref[...], w_ref[...],
                            preferred_element_type=jnp.float32)

    @pl.when(pl.program_id(2) == pl.num_programs(2) - 1)
    def _():
        y = acc_ref[...] + b_ref[...].astype(jnp.float32) \
            + r_ref[...].astype(jnp.float32)
        mean = jnp.mean(y, axis=-1, keepdims=True)
        var = jnp.mean((y - mean) ** 2, axis=-1, keepdims=True)
        y = (y - mean) * jax.lax.rsqrt(var + eps)
        y = y * g_ref[...].astype(jnp.float32) + bb_ref[...].astype(jnp.float32)
        o_ref[...] = y.astype(o_ref.dtype)


def linear(x, w, b, activation=None, residual=None, ln_params=None, out_dtype=None):
    """x: (M, K), w: (K, N), b: (N,) -> (M, N).
    Optional fused residual-add + LayerNorm epilogue (residual: (M, N))."""
    M, K = x.shape
    _, N = w.shape
    out_dtype = out_dtype if out_dtype is not None else COMPUTE_DTYPE

    tm = _pick_tile(M, 256, 8)
    tk = _pick_tile(K, 512, 128)
    tn = N if residual is not None else _pick_tile(N, 256, 128)
    grid = (M // tm, N // tn, K // tk)

    cp = pltpu.CompilerParams(
        dimension_semantics=("parallel", "parallel", "arbitrary"),
        vmem_limit_bytes=VMEM_LIMIT)
    b2 = b.reshape(1, N).astype(jnp.float32)

    if residual is None:
        return pl.pallas_call(
            partial(_linear_kernel, activation=activation),
            out_shape=jax.ShapeDtypeStruct((M, N), out_dtype),
            grid=grid,
            in_specs=[
                pl.BlockSpec((tm, tk), lambda i, j, k: (i, k)),
                pl.BlockSpec((tk, tn), lambda i, j, k: (k, j)),
                pl.BlockSpec((1, tn), lambda i, j, k: (0, j)),
            ],
            out_specs=pl.BlockSpec((tm, tn), lambda i, j, k: (i, j)),
            scratch_shapes=[pltpu.VMEM((tm, tn), jnp.float32)],
            compiler_params=cp,
        )(x, w, b2)

    g, bb = ln_params
    return pl.pallas_call(
        partial(_linear_res_ln_kernel, eps=LN_EPS),
        out_shape=jax.ShapeDtypeStruct((M, N), out_dtype),
        grid=grid,
        in_specs=[
            pl.BlockSpec((tm, tk), lambda i, j, k: (i, k)),
            pl.BlockSpec((tk, tn), lambda i, j, k: (k, j)),
            pl.BlockSpec((1, tn), lambda i, j, k: (0, j)),
            pl.BlockSpec((tm, tn), lambda i, j, k: (i, j)),
            pl.BlockSpec((1, tn), lambda i, j, k: (0, j)),
            pl.BlockSpec((1, tn), lambda i, j, k: (0, j)),
        ],
        out_specs=pl.BlockSpec((tm, tn), lambda i, j, k: (i, j)),
        scratch_shapes=[pltpu.VMEM((tm, tn), jnp.float32)],
        compiler_params=cp,
    )(x, w, b2, residual,
      g.reshape(1, N).astype(jnp.float32), bb.reshape(1, N).astype(jnp.float32))


# --------------------------- attention kernels ------------------------------ #

def _mha_body(q, kv, m, wo_ref, bo_ref, res_ref, g_ref, b_ref, o_ref,
              num_heads, scale, eps):
    """q: (Sq, D) bf16, kv: (Sk, 2*D) bf16 (fused K|V),
    m: (1|Sq, Sk) f32 additive mask (broadcast over queries if needed)."""
    D = q.shape[-1]
    Dh = D // num_heads
    Sq = q.shape[0]

    out = jnp.zeros((Sq, D), jnp.float32)
    # TODO(synk): for non-toy seq_len, tile Sq/Sk (flash-style online softmax).
    for h in range(num_heads):
        qh = q[:, h * Dh:(h + 1) * Dh]                    # (Sq, Dh) bf16
        kh = kv[:, h * Dh:(h + 1) * Dh]                   # (Sk, Dh) bf16
        vh = kv[:, D + h * Dh:D + (h + 1) * Dh]           # (Sk, Dh) bf16
        # Contract last dims directly (no explicit k.T / relayout).
        s = jax.lax.dot_general(qh, kh, (((1,), (1,)), ((), ())),
                                preferred_element_type=jnp.float32)
        s = s * scale + m                                  # mask broadcasts over Sq
        s = s - jnp.max(s, axis=-1, keepdims=True)
        p = jnp.exp(s)
        p = p * _recip(jnp.sum(p, axis=-1, keepdims=True))
        ctx = jnp.dot(p.astype(vh.dtype), vh,
                      preferred_element_type=jnp.float32)  # (Sq, Dh) f32
        w_h = wo_ref[h * Dh:(h + 1) * Dh, :]               # (Dh, D) bf16
        out = out + jnp.dot(ctx.astype(w_h.dtype), w_h,
                            preferred_element_type=jnp.float32)

    y = out + bo_ref[...].astype(jnp.float32) + res_ref[0].astype(jnp.float32)
    mean = jnp.mean(y, axis=-1, keepdims=True)
    var = jnp.mean((y - mean) ** 2, axis=-1, keepdims=True)
    y = (y - mean) * jax.lax.rsqrt(var + eps)
    y = y * g_ref[...].astype(jnp.float32) + b_ref[...].astype(jnp.float32)
    o_ref[0] = y.astype(o_ref.dtype)


def _mha_split_kernel(q_ref, kv_ref, mask_ref, wo_ref, bo_ref, res_ref, g_ref,
                      b_ref, o_ref, *, num_heads, scale, eps):
    _mha_body(q_ref[0], kv_ref[0], mask_ref[0], wo_ref, bo_ref, res_ref,
              g_ref, b_ref, o_ref, num_heads, scale, eps)


def _mha_fused_kernel(qkv_ref, mask_ref, wo_ref, bo_ref, res_ref, g_ref,
                      b_ref, o_ref, *, num_heads, scale, eps):
    D = qkv_ref.shape[-1] // 3
    slab = qkv_ref[0]                                      # (Sq, 3*D)
    _mha_body(slab[:, :D], slab[:, D:], mask_ref[0], wo_ref, bo_ref, res_ref,
              g_ref, b_ref, o_ref, num_heads, scale, eps)


def mha_block(x_q, x_kv, mask, residual, p, ln_g, ln_b, num_heads, fused_qkv=False):
    """Returns LayerNorm(residual + Wo @ MHA(x_q, x_kv) + bo).
    x_q: (B, Sq, D), x_kv: (B, Sk, D),
    mask: (B, 1, Sk) padding mask OR (B, Sq, Sk) full additive mask."""
    B, Sq, D = x_q.shape
    Sk = x_kv.shape[1]
    Mq = mask.shape[1]                                      # 1 or Sq

    scale = 1.0 / math.sqrt(D // num_heads)

    if fused_qkv:
        # Single lane-dense QKV projection: one kernel instead of two.
        qkv = linear(x_q.reshape(B * Sq, D), p["wqkv"], p["bqkv"]).reshape(B, Sq, 3 * D)
        proj_inputs = (qkv,)
        proj_specs = [pl.BlockSpec((1, Sq, 3 * D), lambda b: (b, 0, 0))]
        kernel = partial(_mha_fused_kernel, num_heads=num_heads, scale=scale, eps=LN_EPS)
    else:
        q = linear(x_q.reshape(B * Sq, D), p["wq"], p["bq"]).reshape(B, Sq, D)
        kv = linear(x_kv.reshape(B * Sk, D), p["wkv"], p["bkv"]).reshape(B, Sk, 2 * D)
        proj_inputs = (q, kv)
        proj_specs = [pl.BlockSpec((1, Sq, D), lambda b: (b, 0, 0)),
                      pl.BlockSpec((1, Sk, 2 * D), lambda b: (b, 0, 0))]
        kernel = partial(_mha_split_kernel, num_heads=num_heads, scale=scale, eps=LN_EPS)

    common_specs = [
        pl.BlockSpec((1, Mq, Sk), lambda b: (b, 0, 0)),     # compact additive mask
        pl.BlockSpec((D, D), lambda b: (0, 0)),             # wo
        pl.BlockSpec((1, D), lambda b: (0, 0)),              # bo
        pl.BlockSpec((1, Sq, D), lambda b: (b, 0, 0)),       # residual
        pl.BlockSpec((1, D), lambda b: (0, 0)),              # ln gamma
        pl.BlockSpec((1, D), lambda b: (0, 0)),              # ln beta
    ]

    return pl.pallas_call(
        kernel,
        out_shape=jax.ShapeDtypeStruct((B, Sq, D), COMPUTE_DTYPE),
        grid=(B,),
        in_specs=proj_specs + common_specs,
        out_specs=pl.BlockSpec((1, Sq, D), lambda b: (b, 0, 0)),
        compiler_params=pltpu.CompilerParams(
            dimension_semantics=("parallel",),
            vmem_limit_bytes=VMEM_LIMIT),
    )(*proj_inputs, mask, p["wo"], p["bo"].reshape(1, D).astype(jnp.float32),
      residual, ln_g.reshape(1, D).astype(jnp.float32),
      ln_b.reshape(1, D).astype(jnp.float32))


# ----------------------------- model pieces -------------------------------- #

def encoder_layer(x, mask, p, num_heads):
    B, S, D = x.shape
    x = mha_block(x, x, mask, x, p["attn"], p["ln1_g"], p["ln1_b"], num_heads,
                  fused_qkv=True)
    x_flat = x.reshape(B * S, D)
    h = linear(x_flat, p["ff_w1"], p["ff_b1"], activation="relu")
    x_flat = linear(h, p["ff_w2"], p["ff_b2"], residual=x_flat,
                    ln_params=(p["ln2_g"], p["ln2_b"]))
    return x_flat.reshape(B, S, D)


def decoder_layer(x, enc_out, src_mask, tgt_mask, p, num_heads):
    B, S, D = x.shape
    x = mha_block(x, x, tgt_mask, x, p["self_attn"], p["ln1_g"], p["ln1_b"],
                  num_heads, fused_qkv=True)
    x = mha_block(x, enc_out, src_mask, x, p["cross_attn"], p["ln2_g"], p["ln2_b"],
                  num_heads, fused_qkv=False)
    x_flat = x.reshape(B * S, D)
    h = linear(x_flat, p["ff_w1"], p["ff_b1"], activation="relu")
    x_flat = linear(h, p["ff_w2"], p["ff_b2"], residual=x_flat,
                    ln_params=(p["ln3_g"], p["ln3_b"]))
    return x_flat.reshape(B, S, D)


def positional_encoding(seq_len, d_model):
    pos = jnp.arange(seq_len, dtype=jnp.float32)[:, None]
    i = jnp.arange(0, d_model, 2, dtype=jnp.float32)
    div = jnp.exp(-jnp.log(10000.0) * i / d_model)
    pe = jnp.zeros((seq_len, d_model), jnp.float32)
    pe = pe.at[:, 0::2].set(jnp.sin(pos * div))
    pe = pe.at[:, 1::2].set(jnp.cos(pos * div))
    return pe


def make_masks(src, tgt, pad_id=0):
    """Additive float masks (0 where allowed, -1e9 where masked), shared by all heads.
    Padding masks stay compact (B, 1, Sk); only the causal target mask is full."""
    B, Ss = src.shape
    _, St = tgt.shape
    neg = jnp.float32(-1e9)

    src_key = (src != pad_id).astype(jnp.float32)              # (B, Ss)
    src_mask = (1.0 - src_key)[:, None, :] * neg               # (B, 1, Ss)

    tgt_key = (tgt != pad_id).astype(jnp.float32)               # (B, St)
    causal = jnp.tril(jnp.ones((St, St), jnp.float32))
    allowed = tgt_key[:, None, :] * causal[None, :, :]          # (B, St, St)
    tgt_mask = (1.0 - allowed) * neg
    return src_mask, tgt_mask


@partial(jax.jit, static_argnames=("num_heads", "vocab_out"))
def transformer_forward(params, src, tgt, num_heads, vocab_out):
    B, Ss = src.shape
    _, St = tgt.shape
    D = params["enc_embed"].shape[1]
    src_mask, tgt_mask = make_masks(src, tgt)

    pe = params["pos"]
    # TODO(synk): dropout layers are identity here (eval-mode forward);
    # embedding gather / positional add stay in XLA (no clean single-kernel gather).
    enc_x = (params["enc_embed"][src].astype(jnp.float32)
             + pe[None, :Ss, :]).astype(COMPUTE_DTYPE)
    dec_x = (params["dec_embed"][tgt].astype(jnp.float32)
             + pe[None, :St, :]).astype(COMPUTE_DTYPE)

    for lp in params["encoder"]:
        enc_x = encoder_layer(enc_x, src_mask, lp, num_heads)
    for lp in params["decoder"]:
        dec_x = decoder_layer(dec_x, enc_x, src_mask, tgt_mask, lp, num_heads)

    # Final projection with lane-dense (padded-to-128) vocab dim; slice back.
    out = linear(dec_x.reshape(B * St, D), params["fc_w"], params["fc_b"],
                 out_dtype=jnp.float32)
    return out.reshape(B, St, -1)[:, :, :vocab_out]


# ----------------------------- parameter init ------------------------------ #

def _dense_init(key, fan_in, fan_out):
    w = (jax.random.normal(key, (fan_in, fan_out), jnp.float32) * 0.02).astype(COMPUTE_DTYPE)
    b = jnp.zeros((fan_out,), jnp.float32)
    return w, b


def _attn_params(key, d_model, fused_qkv):
    if fused_qkv:
        kqkv, ko = jax.random.split(key, 2)
        wqkv, bqkv = _dense_init(kqkv, d_model, 3 * d_model)  # fused Q|K|V projection
        wo, bo = _dense_init(ko, d_model, d_model)
        return {"wqkv": wqkv, "bqkv": bqkv, "wo": wo, "bo": bo}
    kq, kkv, ko = jax.random.split(key, 3)
    wq, bq = _dense_init(kq, d_model, d_model)
    wkv, bkv = _dense_init(kkv, d_model, 2 * d_model)          # fused K|V projection
    wo, bo = _dense_init(ko, d_model, d_model)
    return {"wq": wq, "bq": bq, "wkv": wkv, "bkv": bkv, "wo": wo, "bo": bo}


def _encoder_layer_params(key, d_model, d_ff):
    ks = jax.random.split(key, 3)
    w1, b1 = _dense_init(ks[1], d_model, d_ff)
    w2, b2 = _dense_init(ks[2], d_ff, d_model)
    return {
        "attn": _attn_params(ks[0], d_model, fused_qkv=True),
        "ff_w1": w1, "ff_b1": b1, "ff_w2": w2, "ff_b2": b2,
        "ln1_g": jnp.ones((d_model,), jnp.float32), "ln1_b": jnp.zeros((d_model,), jnp.float32),
        "ln2_g": jnp.ones((d_model,), jnp.float32), "ln2_b": jnp.zeros((d_model,), jnp.float32),
    }


def _decoder_layer_params(key, d_model, d_ff):
    ks = jax.random.split(key, 4)
    w1, b1 = _dense_init(ks[2], d_model, d_ff)
    w2, b2 = _dense_init(ks[3], d_ff, d_model)
    return {
        "self_attn": _attn_params(ks[0], d_model, fused_qkv=True),
        "cross_attn": _attn_params(ks[1], d_model, fused_qkv=False),
        "ff_w1": w1, "ff_b1": b1, "ff_w2": w2, "ff_b2": b2,
        "ln1_g": jnp.ones((d_model,), jnp.float32), "ln1_b": jnp.zeros((d_model,), jnp.float32),
        "ln2_g": jnp.ones((d_model,), jnp.float32), "ln2_b": jnp.zeros((d_model,), jnp.float32),
        "ln3_g": jnp.ones((d_model,), jnp.float32), "ln3_b": jnp.zeros((d_model,), jnp.float32),
    }


def init_transformer_params(key, src_vocab, tgt_vocab, d_model, num_layers,
                            expansion_factor, seq_len):
    d_ff = expansion_factor * d_model
    keys = jax.random.split(key, 3 + 2 * num_layers)
    params = {
        "enc_embed": (jax.random.normal(keys[0], (src_vocab, d_model), jnp.float32)
                      * 0.02).astype(COMPUTE_DTYPE),
        "dec_embed": (jax.random.normal(keys[1], (tgt_vocab, d_model), jnp.float32)
                      * 0.02).astype(COMPUTE_DTYPE),
        "pos": positional_encoding(seq_len, d_model),
        "encoder": [_encoder_layer_params(keys[3 + i], d_model, d_ff)
                    for i in range(num_layers)],
        "decoder": [_decoder_layer_params(keys[3 + num_layers + i], d_model, d_ff)
                    for i in range(num_layers)],
    }
    # Pad the classifier to a lane-dense multiple of 128 (unmasked stores).
    v_pad = ((tgt_vocab + 127) // 128) * 128
    fc_w = jax.random.normal(keys[2], (d_model, tgt_vocab), jnp.float32) * 0.02
    fc_w = jnp.pad(fc_w, ((0, 0), (0, v_pad - tgt_vocab))).astype(COMPUTE_DTYPE)
    params["fc_w"] = fc_w
    params["fc_b"] = jnp.zeros((v_pad,), jnp.float32)
    return params


# ----------------------------------- main ----------------------------------- #

if __name__ == "__main__":
    src_vocab_size = 16
    tgt_vocab_size = 16
    d_model = 32
    num_heads = 4
    num_layers = 2
    expansion_factor = 4
    seq_len = 8
    batch = 2

    key = jax.random.PRNGKey(0)
    pkey, skey, tkey = jax.random.split(key, 3)

    params = init_transformer_params(pkey, src_vocab_size, tgt_vocab_size,
                                     d_model, num_layers, expansion_factor, seq_len)

    # Tokens in [1, vocab); last src token set to 0 (pad) to exercise padding mask.
    src = jax.random.randint(skey, (batch, seq_len), 1, src_vocab_size, dtype=jnp.int32)
    tgt = jax.random.randint(tkey, (batch, seq_len), 1, tgt_vocab_size, dtype=jnp.int32)
    src = src.at[:, -1].set(0)

    out = transformer_forward(params, src, tgt, num_heads=num_heads,
                              vocab_out=tgt_vocab_size)
    out = jax.block_until_ready(out)

    assert out.shape == (batch, seq_len, tgt_vocab_size)
    assert bool(jnp.all(jnp.isfinite(out)))
    print("KERNEL_OK")
</pallas_src>

<mosaic_0001>
module attributes {stable_mosaic.version = 11 : i64} {
  func.func @_linear_kernel(%arg0: i32, %arg1: i32, %arg2: i32, %arg3: memref<16x32xbf16, #tpu.memory_space<vmem>>, %arg4: memref<32x96xbf16, #tpu.memory_space<vmem>>, %arg5: memref<1x96xf32, #tpu.memory_space<vmem>>, %arg6: memref<16x96xbf16, #tpu.memory_space<vmem>>, %arg7: memref<16x96xf32, #tpu.memory_space<vmem>>) attributes {dimension_semantics = [#tpu.dimension_semantics<parallel>, #tpu.dimension_semantics<parallel>, #tpu.dimension_semantics<arbitrary>], iteration_bounds = array<i64: 1, 1, 1>, scalar_prefetch = 0 : i64, scratch_operands = 1 : i64, tpu.core_type = #tpu.core_type<tc>, window_params = [{transform_indices = @transform_0, window_bounds = array<i64: 16, 32>}, {transform_indices = @transform_1, window_bounds = array<i64: 32, 96>}, {transform_indices = @transform_2, window_bounds = array<i64: 1, 96>}, {transform_indices = @transform_3, window_bounds = array<i64: 16, 96>}]} {
    %c0_i32 = arith.constant 0 : i32
    %0 = arith.cmpi eq, %arg2, %c0_i32 : i32
    %1 = arith.extui %0 : i1 to i32
    %c0_i32_0 = arith.constant 0 : i32
    %2 = arith.cmpi ne, %1, %c0_i32_0 : i32
    scf.if %2 {
      %cst_10 = arith.constant 0.000000e+00 : f32
      %12 = vector.broadcast %cst_10 : f32 to vector<16x96xf32>
      %c0_11 = arith.constant 0 : index
      %c0_12 = arith.constant 0 : index
      %13 = vector.load %arg7[%c0_11, %c0_12] : memref<16x96xf32, #tpu.memory_space<vmem>>, vector<16x96xf32>
      tpu.vector_store %arg7[%c0_11, %c0_12], %12 {strides = array<i32>} : memref<16x96xf32, #tpu.memory_space<vmem>>, vector<16x96xf32>,
    } else {
    }
    %c0 = arith.constant 0 : index
    %c0_1 = arith.constant 0 : index
    %3 = vector.load %arg7[%c0, %c0_1] : memref<16x96xf32, #tpu.memory_space<vmem>>, vector<16x96xf32>
    %c0_2 = arith.constant 0 : index
    %c0_3 = arith.constant 0 : index
    %4 = vector.load %arg3[%c0_2, %c0_3] : memref<16x32xbf16, #tpu.memory_space<vmem>>, vector<16x32xbf16>
    %c0_4 = arith.constant 0 : index
    %c0_5 = arith.constant 0 : index
    %5 = vector.load %arg4[%c0_4, %c0_5] : memref<32x96xbf16, #tpu.memory_space<vmem>>, vector<32x96xbf16>
    %cst = arith.constant dense<0.000000e+00> : vector<16x96xf32>
    %6 = tpu.matmul %4, %5, %cst {dimension_numbers = #tpu.dot_dimension_numbers<[1], [0], [0], [1], [0, 0, 1, 1], [], []>} : vector<16x32xbf16>, vector<32x96xbf16>, vector<16x96xf32> -> vector<16x96xf32>
    %7 = arith.addf %3, %6 : vector<16x96xf32>
    %c0_6 = arith.constant 0 : index
    %c0_7 = arith.constant 0 : index
    %8 = vector.load %arg7[%c0_6, %c0_7] : memref<16x96xf32, #tpu.memory_space<vmem>>, vector<16x96xf32>
    tpu.vector_store %arg7[%c0_6, %c0_7], %7 {strides = array<i32>} : memref<16x96xf32, #tpu.memory_space<vmem>>, vector<16x96xf32>,
    %c0_i32_8 = arith.constant 0 : i32
    %9 = arith.cmpi eq, %arg2, %c0_i32_8 : i32
    %10 = arith.extui %9 : i1 to i32
    %c0_i32_9 = arith.constant 0 : i32
    %11 = arith.cmpi ne, %10, %c0_i32_9 : i32
    scf.if %11 {
      %c0_10 = arith.constant 0 : index
      %c0_11 = arith.constant 0 : index
      %12 = vector.load %arg7[%c0_10, %c0_11] : memref<16x96xf32, #tpu.memory_space<vmem>>, vector<16x96xf32>
      %c0_12 = arith.constant 0 : index
      %c0_13 = arith.constant 0 : index
      %13 = vector.load %arg5[%c0_12, %c0_13] : memref<1x96xf32, #tpu.memory_space<vmem>>, vector<1x96xf32>
      %14 = vector.broadcast %13 : vector<1x96xf32> to vector<16x96xf32>
      %15 = arith.addf %12, %14 : vector<16x96xf32>
      %16 = arith.truncf %15 : vector<16x96xf32> to vector<16x96xbf16>
      %c0_14 = arith.constant 0 : index
      %c0_15 = arith.constant 0 : index
      %17 = vector.load %arg6[%c0_14, %c0_15] : memref<16x96xbf16, #tpu.memory_space<vmem>>, vector<16x96xbf16>
      tpu.vector_store %arg6[%c0_14, %c0_15], %16 {strides = array<i32>} : memref<16x96xbf16, #tpu.memory_space<vmem>>, vector<16x96xbf16>,
    } else {
    }
    return
  }
  func.func @transform_0(%arg0: i32, %arg1: i32, %arg2: i32) -> (i32, i32) {
    %c0_i32 = arith.constant 0 : i32
    return %arg0, %arg2 : i32, i32
  }
  func.func @transform_1(%arg0: i32, %arg1: i32, %arg2: i32) -> (i32, i32) {
    %c0_i32 = arith.constant 0 : i32
    return %arg2, %arg1 : i32, i32
  }
  func.func @transform_2(%arg0: i32, %arg1: i32, %arg2: i32) -> (i32, i32) {
    %c0_i32 = arith.constant 0 : i32
    %c0_i32_0 = arith.constant 0 : i32
    return %c0_i32, %arg1 : i32, i32
  }
  func.func @transform_3(%arg0: i32, %arg1: i32, %arg2: i32) -> (i32, i32) {
    %c0_i32 = arith.constant 0 : i32
    return %arg0, %arg1 : i32, i32
  }
}

module attributes {stable_mosaic.version = 11 : i64} {
  func.func @_linear_kernel(%arg0: i32, %arg1: i32, %arg2: i32, %arg3: memref<16x32xbf16, #tpu.memory_space<vmem>>, %arg4: memref<32x128xbf16, #tpu.memory_space<vmem>>, %arg5: memref<1x128xf32, #tpu.memory_space<vmem>>, %arg6: memref<16x128xbf16, #tpu.memory_space<vmem>>, %arg7: memref<16x128xf32, #tpu.memory_space<vmem>>) attributes {dimension_semantics = [#tpu.dimension_semantics<parallel>, #tpu.dimension_semantics<parallel>, #tpu.dimension_semantics<arbitrary>], iteration_bounds = array<i64: 1, 1, 1>, scalar_prefetch = 0 : i64, scratch_operands = 1 : i64, tpu.core_type = #tpu.core_type<tc>, window_params = [{transform_indices = @transform_0, window_bounds = array<i64: 16, 32>}, {transform_indices = @transform_1, window_bounds = array<i64: 32, 128>}, {transform_indices = @transform_2, window_bounds = array<i64: 1, 128>}, {transform_indices = @transform_3, window_bounds = array<i64: 16, 128>}]} {
    %c0_i32 = arith.constant 0 : i32
    %0 = arith.cmpi eq, %arg2, %c0_i32 : i32
    %1 = arith.extui %0 : i1 to i32
    %c0_i32_0 = arith.constant 0 : i32
    %2 = arith.cmpi ne, %1, %c0_i32_0 : i32
    scf.if %2 {
      %cst_10 = arith.constant 0.000000e+00 : f32
      %12 = vector.broadcast %cst_10 : f32 to vector<16x128xf32>
      %c0_11 = arith.constant 0 : index
      %c0_12 = arith.constant 0 : index
      %13 = vector.load %arg7[%c0_11, %c0_12] : memref<16x128xf32, #tpu.memory_space<vmem>>, vector<16x128xf32>
      tpu.vector_store %arg7[%c0_11, %c0_12], %12 {strides = array<i32>} : memref<16x128xf32, #tpu.memory_space<vmem>>, vector<16x128xf32>,
    } else {
    }
    %c0 = arith.constant 0 : index
    %c0_1 = arith.constant 0 : index
    %3 = vector.load %arg7[%c0, %c0_1] : memref<16x128xf32, #tpu.memory_space<vmem>>, vector<16x128xf32>
    %c0_2 = arith.constant 0 : index
    %c0_3 = arith.constant 0 : index
    %4 = vector.load %arg3[%c0_2, %c0_3] : memref<16x32xbf16, #tpu.memory_space<vmem>>, vector<16x32xbf16>
    %c0_4 = arith.constant 0 : index
    %c0_5 = arith.constant 0 : index
    %5 = vector.load %arg4[%c0_4, %c0_5] : memref<32x128xbf16, #tpu.memory_space<vmem>>, vector<32x128xbf16>
    %cst = arith.constant dense<0.000000e+00> : vector<16x128xf32>
    %6 = tpu.matmul %4, %5, %cst {dimension_numbers = #tpu.dot_dimension_numbers<[1], [0], [0], [1], [0, 0, 1, 1], [], []>} : vector<16x32xbf16>, vector<32x128xbf16>, vector<16x128xf32> -> vector<16x128xf32>
    %7 = arith.addf %3, %6 : vector<16x128xf32>
    %c0_6 = arith.constant 0 : index
    %c0_7 = arith.constant 0 : index
    %8 = vector.load %arg7[%c0_6, %c0_7] : memref<16x128xf32, #tpu.memory_space<vmem>>, vector<16x128xf32>
    tpu.vector_store %arg7[%c0_6, %c0_7], %7 {strides = array<i32>} : memref<16x128xf32, #tpu.memory_space<vmem>>, vector<16x128xf32>,
    %c0_i32_8 = arith.constant 0 : i32
    %9 = arith.cmpi eq, %arg2, %c0_i32_8 : i32
    %10 = arith.extui %9 : i1 to i32
    %c0_i32_9 = arith.constant 0 : i32
    %11 = arith.cmpi ne, %10, %c0_i32_9 : i32
    scf.if %11 {
      %c0_10 = arith.constant 0 : index
      %c0_11 = arith.constant 0 : index
      %12 = vector.load %arg7[%c0_10, %c0_11] : memref<16x128xf32, #tpu.memory_space<vmem>>, vector<16x128xf32>
      %c0_12 = arith.constant 0 : index
      %c0_13 = arith.constant 0 : index
      %13 = vector.load %arg5[%c0_12, %c0_13] : memref<1x128xf32, #tpu.memory_space<vmem>>, vector<1x128xf32>
      %14 = vector.broadcast %13 : vector<1x128xf32> to vector<16x128xf32>
      %15 = arith.addf %12, %14 : vector<16x128xf32>
      %cst_14 = arith.constant 0.000000e+00 : f32
      %16 = vector.broadcast %cst_14 : f32 to vector<16x128xf32>
      %17 = arith.maximumf %15, %16 : vector<16x128xf32>
      %18 = arith.truncf %17 : vector<16x128xf32> to vector<16x128xbf16>
      %c0_15 = arith.constant 0 : index
      %c0_16 = arith.constant 0 : index
      %19 = vector.load %arg6[%c0_15, %c0_16] : memref<16x128xbf16, #tpu.memory_space<vmem>>, vector<16x128xbf16>
      tpu.vector_store %arg6[%c0_15, %c0_16], %18 {strides = array<i32>} : memref<16x128xbf16, #tpu.memory_space<vmem>>, vector<16x128xbf16>,
    } else {
    }
    return
  }
  func.func @transform_0(%arg0: i32, %arg1: i32, %arg2: i32) -> (i32, i32) {
    %c0_i32 = arith.constant 0 : i32
    return %arg0, %arg2 : i32, i32
  }
  func.func @transform_1(%arg0: i32, %arg1: i32, %arg2: i32) -> (i32, i32) {
    %c0_i32 = arith.constant 0 : i32
    return %arg2, %arg1 : i32, i32
  }
  func.func @transform_2(%arg0: i32, %arg1: i32, %arg2: i32) -> (i32, i32) {
    %c0_i32 = arith.constant 0 : i32
    %c0_i32_0 = arith.constant 0 : i32
    return %c0_i32, %arg1 : i32, i32
  }
  func.func @transform_3(%arg0: i32, %arg1: i32, %arg2: i32) -> (i32, i32) {
    %c0_i32 = arith.constant 0 : i32
    return %arg0, %arg1 : i32, i32
  }
}

module attributes {stable_mosaic.version = 11 : i64} {
  func.func @_mha_fused_kernel(%arg0: i32, %arg1: memref<1x8x96xbf16, #tpu.memory_space<vmem>>, %arg2: memref<1x1x8xf32, #tpu.memory_space<vmem>>, %arg3: memref<32x32xbf16, #tpu.memory_space<vmem>>, %arg4: memref<1x32xf32, #tpu.memory_space<vmem>>, %arg5: memref<1x8x32xbf16, #tpu.memory_space<vmem>>, %arg6: memref<1x32xf32, #tpu.memory_space<vmem>>, %arg7: memref<1x32xf32, #tpu.memory_space<vmem>>, %arg8: memref<1x8x32xbf16, #tpu.memory_space<vmem>>) attributes {dimension_semantics = [#tpu.dimension_semantics<parallel>], iteration_bounds = array<i64: 2>, scalar_prefetch = 0 : i64, scratch_operands = 0 : i64, tpu.core_type = #tpu.core_type<tc>, window_params = [{transform_indices = @transform_0, window_bounds = array<i64: 1, 8, 96>}, {transform_indices = @transform_1, window_bounds = array<i64: 1, 1, 8>}, {pipeline_mode = #tpu.pipeline_mode<synchronous>, transform_indices = @transform_2, window_bounds = array<i64: 32, 32>}, {pipeline_mode = #tpu.pipeline_mode<synchronous>, transform_indices = @transform_3, window_bounds = array<i64: 1, 32>}, {transform_indices = @transform_4, window_bounds = array<i64: 1, 8, 32>}, {pipeline_mode = #tpu.pipeline_mode<synchronous>, transform_indices = @transform_5, window_bounds = array<i64: 1, 32>}, {pipeline_mode = #tpu.pipeline_mode<synchronous>, transform_indices = @transform_6, window_bounds = array<i64: 1, 32>}, {transform_indices = @transform_7, window_bounds = array<i64: 1, 8, 32>}]} {
    %c0 = arith.constant 0 : index
    %c0_0 = arith.constant 0 : index
    %c0_1 = arith.constant 0 : index
    %0 = vector.load %arg1[%c0, %c0_0, %c0_1] : memref<1x8x96xbf16, #tpu.memory_space<vmem>>, vector<1x8x96xbf16>
    %1 = vector.shape_cast %0 : vector<1x8x96xbf16> to vector<8x96xbf16>
    %2 = vector.extract_strided_slice %1 {offsets = [0, 0], sizes = [8, 32], strides = [1, 1]} : vector<8x96xbf16> to vector<8x32xbf16>
    %3 = vector.extract_strided_slice %1 {offsets = [0, 32], sizes = [8, 64], strides = [1, 1]} : vector<8x96xbf16> to vector<8x64xbf16>
    %c0_2 = arith.constant 0 : index
    %c0_3 = arith.constant 0 : index
    %c0_4 = arith.constant 0 : index
    %4 = vector.load %arg2[%c0_2, %c0_3, %c0_4] : memref<1x1x8xf32, #tpu.memory_space<vmem>>, vector<1x1x8xf32>
    %5 = vector.shape_cast %4 : vector<1x1x8xf32> to vector<1x8xf32>
    %cst = arith.constant 0.000000e+00 : f32
    %6 = vector.broadcast %cst : f32 to vector<8x32xf32>
    %7 = vector.extract_strided_slice %2 {offsets = [0, 0], sizes = [8, 8], strides = [1, 1]} : vector<8x32xbf16> to vector<8x8xbf16>
    %8 = vector.extract_strided_slice %3 {offsets = [0, 0], sizes = [8, 8], strides = [1, 1]} : vector<8x64xbf16> to vector<8x8xbf16>
    %9 = vector.extract_strided_slice %3 {offsets = [0, 32], sizes = [8, 8], strides = [1, 1]} : vector<8x64xbf16> to vector<8x8xbf16>
    %cst_5 = arith.constant dense<0.000000e+00> : vector<8x8xf32>
    %10 = tpu.matmul %7, %8, %cst_5 {dimension_numbers = #tpu.dot_dimension_numbers<[1], [1], [0], [0], [0, 0, 1, 0], [], []>} : vector<8x8xbf16>, vector<8x8xbf16>, vector<8x8xf32> -> vector<8x8xf32>
    %cst_6 = arith.constant 0.353553385 : f32
    %11 = vector.broadcast %cst_6 : f32 to vector<8x8xf32>
    %12 = arith.mulf %10, %11 : vector<8x8xf32>
    %13 = vector.broadcast %5 : vector<1x8xf32> to vector<8x8xf32>
    %14 = arith.addf %12, %13 : vector<8x8xf32>
    %cst_7 = arith.constant dense<0xFF800000> : vector<8xf32>
    %15 = vector.multi_reduction <maximumf>, %14, %cst_7 [1] : vector<8x8xf32> to vector<8xf32>
    %16 = vector.shape_cast %15 : vector<8xf32> to vector<8x1xf32>
    %17 = vector.broadcast %16 : vector<8x1xf32> to vector<8x8xf32>
    %18 = arith.subf %14, %17 : vector<8x8xf32>
    %19 = math.exp %18 : vector<8x8xf32>
    %cst_8 = arith.constant dense<0.000000e+00> : vector<8xf32>
    %20 = vector.multi_reduction <add>, %19, %cst_8 [1] : vector<8x8xf32> to vector<8xf32>
    %21 = vector.shape_cast %20 : vector<8xf32> to vector<8x1xf32>
    %22 = tpu.reciprocal %21 {approx = true} : vector<8x1xf32> -> vector<8x1xf32>
    %23 = vector.broadcast %22 : vector<8x1xf32> to vector<8x8xf32>
    %24 = arith.mulf %19, %23 : vector<8x8xf32>
    %25 = arith.truncf %24 : vector<8x8xf32> to vector<8x8xbf16>
    %cst_9 = arith.constant dense<0.000000e+00> : vector<8x8xf32>
    %26 = tpu.matmul %25, %9, %cst_9 {dimension_numbers = #tpu.dot_dimension_numbers<[1], [0], [0], [1], [0, 0, 1, 1], [], []>} : vector<8x8xbf16>, vector<8x8xbf16>, vector<8x8xf32> -> vector<8x8xf32>
    %c0_10 = arith.constant 0 : index
    %c0_11 = arith.constant 0 : index
    %27 = vector.load %arg3[%c0_10, %c0_11] : memref<32x32xbf16, #tpu.memory_space<vmem>>, vector<8x32xbf16>
    %28 = arith.truncf %26 : vector<8x8xf32> to vector<8x8xbf16>
    %cst_12 = arith.constant dense<0.000000e+00> : vector<8x32xf32>
    %29 = tpu.matmul %28, %27, %cst_12 {dimension_numbers = #tpu.dot_dimension_numbers<[1], [0], [0], [1], [0, 0, 1, 1], [], []>} : vector<8x8xbf16>, vector<8x32xbf16>, vector<8x32xf32> -> vector<8x32xf32>
    %30 = arith.addf %6, %29 : vector<8x32xf32>
    %31 = vector.extract_strided_slice %2 {offsets = [0, 8], sizes = [8, 8], strides = [1, 1]} : vector<8x32xbf16> to vector<8x8xbf16>
    %32 = vector.extract_strided_slice %3 {offsets = [0, 8], sizes = [8, 8], strides = [1, 1]} : vector<8x64xbf16> to vector<8x8xbf16>
    %33 = vector.extract_strided_slice %3 {offsets = [0, 40], sizes = [8, 8], strides = [1, 1]} : vector<8x64xbf16> to vector<8x8xbf16>
    %cst_13 = arith.constant dense<0.000000e+00> : vector<8x8xf32>
    %34 = tpu.matmul %31, %32, %cst_13 {dimension_numbers = #tpu.dot_dimension_numbers<[1], [1], [0], [0], [0, 0, 1, 0], [], []>} : vector<8x8xbf16>, vector<8x8xbf16>, vector<8x8xf32> -> vector<8x8xf32>
    %cst_14 = arith.constant 0.353553385 : f32
    %35 = vector.broadcast %cst_14 : f32 to vector<8x8xf32>
    %36 = arith.mulf %34, %35 : vector<8x8xf32>
    %37 = vector.broadcast %5 : vector<1x8xf32> to vector<8x8xf32>
    %38 = arith.addf %36, %37 : vector<8x8xf32>
    %cst_15 = arith.constant dense<0xFF800000> : vector<8xf32>
    %39 = vector.multi_reduction <maximumf>, %38, %cst_15 [1] : vector<8x8xf32> to vector<8xf32>
    %40 = vector.shape_cast %39 : vector<8xf32> to vector<8x1xf32>
    %41 = vector.broadcast %40 : vector<8x1xf32> to vector<8x8xf32>
    %42 = arith.subf %38, %41 : vector<8x8xf32>
    %43 = math.exp %42 : vector<8x8xf32>
    %cst_16 = arith.constant dense<0.000000e+00> : vector<8xf32>
    %44 = vector.multi_reduction <add>, %43, %cst_16 [1] : vector<8x8xf32> to vector<8xf32>
    %45 = vector.shape_cast %44 : vector<8xf32> to vector<8x1xf32>
    %46 = tpu.reciprocal %45 {approx = true} : vector<8x1xf32> -> vector<8x1xf32>
    %47 = vector.broadcast %46 : vector<8x1xf32> to vector<8x8xf32>
    %48 = arith.mulf %43, %47 : vector<8x8xf32>
    %49 = arith.truncf %48 : vector<8x8xf32> to vector<8x8xbf16>
    %cst_17 = arith.constant dense<0.000000e+00> : vector<8x8xf32>
    %50 = tpu.matmul %49, %33, %cst_17 {dimension_numbers = #tpu.dot_dimension_numbers<[1], [0], [0], [1], [0, 0, 1, 1], [], []>} : vector<8x8xbf16>, vector<8x8xbf16>, vector<8x8xf32> -> vector<8x8xf32>
    %c8 = arith.constant 8 : index
    %c0_18 = arith.constant 0 : index
    %51 = vector.load %arg3[%c8, %c0_18] : memref<32x32xbf16, #tpu.memory_space<vmem>>, vector<8x32xbf16>
    %52 = arith.truncf %50 : vector<8x8xf32> to vector<8x8xbf16>
    %cst_19 = arith.constant dense<0.000000e+00> : vector<8x32xf32>
    %53 = tpu.matmul %52, %51, %cst_19 {dimension_numbers = #tpu.dot_dimension_numbers<[1], [0], [0], [1], [0, 0, 1, 1], [], []>} : vector<8x8xbf16>, vector<8x32xbf16>, vector<8x32xf32> -> vector<8x32xf32>
    %54 = arith.addf %30, %53 : vector<8x32xf32>
    %55 = vector.extract_strided_slice %2 {offsets = [0, 16], sizes = [8, 8], strides = [1, 1]} : vector<8x32xbf16> to vector<8x8xbf16>
    %56 = vector.extract_strided_slice %3 {offsets = [0, 16], sizes = [8, 8], strides = [1, 1]} : vector<8x64xbf16> to vector<8x8xbf16>
    %57 = vector.extract_strided_slice %3 {offsets = [0, 48], sizes = [8, 8], strides = [1, 1]} : vector<8x64xbf16> to vector<8x8xbf16>
    %cst_20 = arith.constant dense<0.000000e+00> : vector<8x8xf32>
    %58 = tpu.matmul %55, %56, %cst_20 {dimension_numbers = #tpu.dot_dimension_numbers<[1], [1], [0], [0], [0, 0, 1, 0], [], []>} : vector<8x8xbf16>, vector<8x8xbf16>, vector<8x8xf32> -> vector<8x8xf32>
    %cst_21 = arith.constant 0.353553385 : f32
    %59 = vector.broadcast %cst_21 : f32 to vector<8x8xf32>
    %60 = arith.mulf %58, %59 : vector<8x8xf32>
    %61 = vector.broadcast %5 : vector<1x8xf32> to vector<8x8xf32>
    %62 = arith.addf %60, %61 : vector<8x8xf32>
    %cst_22 = arith.constant dense<0xFF800000> : vector<8xf32>
    %63 = vector.multi_reduction <maximumf>, %62, %cst_22 [1] : vector<8x8xf32> to vector<8xf32>
    %64 = vector.shape_cast %63 : vector<8xf32> to vector<8x1xf32>
    %65 = vector.broadcast %64 : vector<8x1xf32> to vector<8x8xf32>
    %66 = arith.subf %62, %65 : vector<8x8xf32>
    %67 = math.exp %66 : vector<8x8xf32>
    %cst_23 = arith.constant dense<0.000000e+00> : vector<8xf32>
    %68 = vector.multi_reduction <add>, %67, %cst_23 [1] : vector<8x8xf32> to vector<8xf32>
    %69 = vector.shape_cast %68 : vector<8xf32> to vector<8x1xf32>
    %70 = tpu.reciprocal %69 {approx = true} : vector<8x1xf32> -> vector<8x1xf32>
    %71 = vector.broadcast %70 : vector<8x1xf32> to vector<8x8xf32>
    %72 = arith.mulf %67, %71 : vector<8x8xf32>
    %73 = arith.truncf %72 : vector<8x8xf32> to vector<8x8xbf16>
    %cst_24 = arith.constant dense<0.000000e+00> : vector<8x8xf32>
    %74 = tpu.matmul %73, %57, %cst_24 {dimension_numbers = #tpu.dot_dimension_numbers<[1], [0], [0], [1], [0, 0, 1, 1], [], []>} : vector<8x8xbf16>, vector<8x8xbf16>, vector<8x8xf32> -> vector<8x8xf32>
    %c16 = arith.constant 16 : index
    %c0_25 = arith.constant 0 : index
    %75 = vector.load %arg3[%c16, %c0_25] : memref<32x32xbf16, #tpu.memory_space<vmem>>, vector<8x32xbf16>
    %76 = arith.truncf %74 : vector<8x8xf32> to vector<8x8xbf16>
    %cst_26 = arith.constant dense<0.000000e+00> : vector<8x32xf32>
    %77 = tpu.matmul %76, %75, %cst_26 {dimension_numbers = #tpu.dot_dimension_numbers<[1], [0], [0], [1], [0, 0, 1, 1], [], []>} : vector<8x8xbf16>, vector<8x32xbf16>, vector<8x32xf32> -> vector<8x32xf32>
    %78 = arith.addf %54, %77 : vector<8x32xf32>
    %79 = vector.extract_strided_slice %2 {offsets = [0, 24], sizes = [8, 8], strides = [1, 1]} : vector<8x32xbf16> to vector<8x8xbf16>
    %80 = vector.extract_strided_slice %3 {offsets = [0, 24], sizes = [8, 8], strides = [1, 1]} : vector<8x64xbf16> to vector<8x8xbf16>
    %81 = vector.extract_strided_slice %3 {offsets = [0, 56], sizes = [8, 8], strides = [1, 1]} : vector<8x64xbf16> to vector<8x8xbf16>
    %cst_27 = arith.constant dense<0.000000e+00> : vector<8x8xf32>
    %82 = tpu.matmul %79, %80, %cst_27 {dimension_numbers = #tpu.dot_dimension_numbers<[1], [1], [0], [0], [0, 0, 1, 0], [], []>} : vector<8x8xbf16>, vector<8x8xbf16>, vector<8x8xf32> -> vector<8x8xf32>
    %cst_28 = arith.constant 0.353553385 : f32
    %83 = vector.broadcast %cst_28 : f32 to vector<8x8xf32>
    %84 = arith.mulf %82, %83 : vector<8x8xf32>
    %85 = vector.broadcast %5 : vector<1x8xf32> to vector<8x8xf32>
    %86 = arith.addf %84, %85 : vector<8x8xf32>
    %cst_29 = arith.constant dense<0xFF800000> : vector<8xf32>
    %87 = vector.multi_reduction <maximumf>, %86, %cst_29 [1] : vector<8x8xf32> to vector<8xf32>
    %88 = vector.shape_cast %87 : vector<8xf32> to vector<8x1xf32>
    %89 = vector.broadcast %88 : vector<8x1xf32> to vector<8x8xf32>
    %90 = arith.subf %86, %89 : vector<8x8xf32>
    %91 = math.exp %90 : vector<8x8xf32>
    %cst_30 = arith.constant dense<0.000000e+00> : vector<8xf32>
    %92 = vector.multi_reduction <add>, %91, %cst_30 [1] : vector<8x8xf32> to vector<8xf32>
    %93 = vector.shape_cast %92 : vector<8xf32> to vector<8x1xf32>
    %94 = tpu.reciprocal %93 {approx = true} : vector<8x1xf32> -> vector<8x1xf32>
    %95 = vector.broadcast %94 : vector<8x1xf32> to vector<8x8xf32>
    %96 = arith.mulf %91, %95 : vector<8x8xf32>
    %97 = arith.truncf %96 : vector<8x8xf32> to vector<8x8xbf16>
    %cst_31 = arith.constant dense<0.000000e+00> : vector<8x8xf32>
    %98 = tpu.matmul %97, %81, %cst_31 {dimension_numbers = #tpu.dot_dimension_numbers<[1], [0], [0], [1], [0, 0, 1, 1], [], []>} : vector<8x8xbf16>, vector<8x8xbf16>, vector<8x8xf32> -> vector<8x8xf32>
    %c24 = arith.constant 24 : index
    %c0_32 = arith.constant 0 : index
    %99 = vector.load %arg3[%c24, %c0_32] : memref<32x32xbf16, #tpu.memory_space<vmem>>, vector<8x32xbf16>
    %100 = arith.truncf %98 : vector<8x8xf32> to vector<8x8xbf16>
    %cst_33 = arith.constant dense<0.000000e+00> : vector<8x32xf32>
    %101 = tpu.matmul %100, %99, %cst_33 {dimension_numbers = #tpu.dot_dimension_numbers<[1], [0], [0], [1], [0, 0, 1, 1], [], []>} : vector<8x8xbf16>, vector<8x32xbf16>, vector<8x32xf32> -> vector<8x32xf32>
    %102 = arith.addf %78, %101 : vector<8x32xf32>
    %c0_34 = arith.constant 0 : index
    %c0_35 = arith.constant 0 : index
    %103 = vector.load %arg4[%c0_34, %c0_35] : memref<1x32xf32, #tpu.memory_space<vmem>>, vector<1x32xf32>
    %104 = vector.broadcast %103 : vector<1x32xf32> to vector<8x32xf32>
    %105 = arith.addf %102, %104 : vector<8x32xf32>
    %c0_36 = arith.constant 0 : index
    %c0_37 = arith.constant 0 : index
    %c0_38 = arith.constant 0 : index
    %106 = vector.load %arg5[%c0_36, %c0_37, %c0_38] : memref<1x8x32xbf16, #tpu.memory_space<vmem>>, vector<1x8x32xbf16>
    %107 = vector.shape_cast %106 : vector<1x8x32xbf16> to vector<8x32xbf16>
    %108 = arith.extf %107 : vector<8x32xbf16> to vector<8x32xf32>
    %109 = arith.addf %105, %108 : vector<8x32xf32>
    %cst_39 = arith.constant dense<0.000000e+00> : vector<8xf32>
    %110 = vector.multi_reduction <add>, %109, %cst_39 [1] : vector<8x32xf32> to vector<8xf32>
    %111 = vector.shape_cast %110 : vector<8xf32> to vector<8x1xf32>
    %cst_40 = arith.constant 3.200000e+01 : f32
    %112 = vector.broadcast %cst_40 : f32 to vector<8x1xf32>
    %113 = arith.divf %111, %112 : vector<8x1xf32>
    %114 = vector.broadcast %113 : vector<8x1xf32> to vector<8x32xf32>
    %115 = arith.subf %109, %114 : vector<8x32xf32>
    %116 = arith.mulf %115, %115 : vector<8x32xf32>
    %cst_41 = arith.constant dense<0.000000e+00> : vector<8xf32>
    %117 = vector.multi_reduction <add>, %116, %cst_41 [1] : vector<8x32xf32> to vector<8xf32>
    %118 = vector.shape_cast %117 : vector<8xf32> to vector<8x1xf32>
    %cst_42 = arith.constant 3.200000e+01 : f32
    %119 = vector.broadcast %cst_42 : f32 to vector<8x1xf32>
    %120 = arith.divf %118, %119 : vector<8x1xf32>
    %121 = vector.broadcast %113 : vector<8x1xf32> to vector<8x32xf32>
    %122 = arith.subf %109, %121 : vector<8x32xf32>
    %cst_43 = arith.constant 9.99999974E-6 : f32
    %123 = vector.broadcast %cst_43 : f32 to vector<8x1xf32>
    %124 = arith.addf %120, %123 : vector<8x1xf32>
    %125 = math.rsqrt %124 : vector<8x1xf32>
    %126 = vector.broadcast %125 : vector<8x1xf32> to vector<8x32xf32>
    %127 = arith.mulf %122, %126 : vector<8x32xf32>
    %c0_44 = arith.constant 0 : index
    %c0_45 = arith.constant 0 : index
    %128 = vector.load %arg6[%c0_44, %c0_45] : memref<1x32xf32, #tpu.memory_space<vmem>>, vector<1x32xf32>
    %129 = vector.broadcast %128 : vector<1x32xf32> to vector<8x32xf32>
    %130 = arith.mulf %127, %129 : vector<8x32xf32>
    %c0_46 = arith.constant 0 : index
    %c0_47 = arith.constant 0 : index
    %131 = vector.load %arg7[%c0_46, %c0_47] : memref<1x32xf32, #tpu.memory_space<vmem>>, vector<1x32xf32>
    %132 = vector.broadcast %131 : vector<1x32xf32> to vector<8x32xf32>
    %133 = arith.addf %130, %132 : vector<8x32xf32>
    %134 = arith.truncf %133 : vector<8x32xf32> to vector<8x32xbf16>
    %c0_48 = arith.constant 0 : index
    %c0_49 = arith.constant 0 : index
    %c0_50 = arith.constant 0 : index
    %135 = vector.load %arg8[%c0_48, %c0_49, %c0_50] : memref<1x8x32xbf16, #tpu.memory_space<vmem>>, vector<1x8x32xbf16>
    %136 = vector.shape_cast %135 : vector<1x8x32xbf16> to vector<8x32xbf16>
    %137 = vector.shape_cast %134 : vector<8x32xbf16> to vector<1x8x32xbf16>
    tpu.vector_store %arg8[%c0_48, %c0_49, %c0_50], %137 {strides = array<i32>} : memref<1x8x32xbf16, #tpu.memory_space<vmem>>, vector<1x8x32xbf16>,
    return
  }
  func.func @transform_0(%arg0: i32) -> (i32, i32, i32) {
    %c0_i32 = arith.constant 0 : i32
    %c0_i32_0 = arith.constant 0 : i32
    %c0_i32_1 = arith.constant 0 : i32
    return %arg0, %c0_i32, %c0_i32_0 : i32, i32, i32
  }
  func.func @transform_1(%arg0: i32) -> (i32, i32, i32) {
    %c0_i32 = arith.constant 0 : i32
    %c0_i32_0 = arith.constant 0 : i32
    %c0_i32_1 = arith.constant 0 : i32
    return %arg0, %c0_i32, %c0_i32_0 : i32, i32, i32
  }
  func.func @transform_2(%arg0: i32) -> (i32, i32) {
    %c0_i32 = arith.constant 0 : i32
    %c0_i32_0 = arith.constant 0 : i32
    %c0_i32_1 = arith.constant 0 : i32
    return %c0_i32, %c0_i32_0 : i32, i32
  }
  func.func @transform_3(%arg0: i32) -> (i32, i32) {
    %c0_i32 = arith.constant 0 : i32
    %c0_i32_0 = arith.constant 0 : i32
    %c0_i32_1 = arith.constant 0 : i32
    return %c0_i32, %c0_i32_0 : i32, i32
  }
  func.func @transform_4(%arg0: i32) -> (i32, i32, i32) {
    %c0_i32 = arith.constant 0 : i32
    %c0_i32_0 = arith.constant 0 : i32
    %c0_i32_1 = arith.constant 0 : i32
    return %arg0, %c0_i32, %c0_i32_0 : i32, i32, i32
  }
  func.func @transform_5(%arg0: i32) -> (i32, i32) {
    %c0_i32 = arith.constant 0 : i32
    %c0_i32_0 = arith.constant 0 : i32
    %c0_i32_1 = arith.constant 0 : i32
    return %c0_i32, %c0_i32_0 : i32, i32
  }
  func.func @transform_6(%arg0: i32) -> (i32, i32) {
    %c0_i32 = arith.constant 0 : i32
    %c0_i32_0 = arith.constant 0 : i32
    %c0_i32_1 = arith.constant 0 : i32
    return %c0_i32, %c0_i32_0 : i32, i32
  }
  func.func @transform_7(%arg0: i32) -> (i32, i32, i32) {
    %c0_i32 = arith.constant 0 : i32
    %c0_i32_0 = arith.constant 0 : i32
    %c0_i32_1 = arith.constant 0 : i32
    return %arg0, %c0_i32, %c0_i32_0 : i32, i32, i32
  }
}

module attributes {stable_mosaic.version = 11 : i64} {
  func.func @_linear_res_ln_kernel(%arg0: i32, %arg1: i32, %arg2: i32, %arg3: memref<16x128xbf16, #tpu.memory_space<vmem>>, %arg4: memref<128x32xbf16, #tpu.memory_space<vmem>>, %arg5: memref<1x32xf32, #tpu.memory_space<vmem>>, %arg6: memref<16x32xbf16, #tpu.memory_space<vmem>>, %arg7: memref<1x32xf32, #tpu.memory_space<vmem>>, %arg8: memref<1x32xf32, #tpu.memory_space<vmem>>, %arg9: memref<16x32xbf16, #tpu.memory_space<vmem>>, %arg10: memref<16x32xf32, #tpu.memory_space<vmem>>) attributes {dimension_semantics = [#tpu.dimension_semantics<parallel>, #tpu.dimension_semantics<parallel>, #tpu.dimension_semantics<arbitrary>], iteration_bounds = array<i64: 1, 1, 1>, scalar_prefetch = 0 : i64, scratch_operands = 1 : i64, tpu.core_type = #tpu.core_type<tc>, window_params = [{transform_indices = @transform_0, window_bounds = array<i64: 16, 128>}, {transform_indices = @transform_1, window_bounds = array<i64: 128, 32>}, {transform_indices = @transform_2, window_bounds = array<i64: 1, 32>}, {transform_indices = @transform_3, window_bounds = array<i64: 16, 32>}, {transform_indices = @transform_4, window_bounds = array<i64: 1, 32>}, {transform_indices = @transform_5, window_bounds = array<i64: 1, 32>}, {transform_indices = @transform_6, window_bounds = array<i64: 16, 32>}]} {
    %c0_i32 = arith.constant 0 : i32
    %0 = arith.cmpi eq, %arg2, %c0_i32 : i32
    %1 = arith.extui %0 : i1 to i32
    %c0_i32_0 = arith.constant 0 : i32
    %2 = arith.cmpi ne, %1, %c0_i32_0 : i32
    scf.if %2 {
      %cst_10 = arith.constant 0.000000e+00 : f32
      %12 = vector.broadcast %cst_10 : f32 to vector<16x32xf32>
      %c0_11 = arith.constant 0 : index
      %c0_12 = arith.constant 0 : index
      %13 = vector.load %arg10[%c0_11, %c0_12] : memref<16x32xf32, #tpu.memory_space<vmem>>, vector<16x32xf32>
      tpu.vector_store %arg10[%c0_11, %c0_12], %12 {strides = array<i32>} : memref<16x32xf32, #tpu.memory_space<vmem>>, vector<16x32xf32>,
    } else {
    }
    %c0 = arith.constant 0 : index
    %c0_1 = arith.constant 0 : index
    %3 = vector.load %arg10[%c0, %c0_1] : memref<16x32xf32, #tpu.memory_space<vmem>>, vector<16x32xf32>
    %c0_2 = arith.constant 0 : index
    %c0_3 = arith.constant 0 : index
    %4 = vector.load %arg3[%c0_2, %c0_3] : memref<16x128xbf16, #tpu.memory_space<vmem>>, vector<16x128xbf16>
    %c0_4 = arith.constant 0 : index
    %c0_5 = arith.constant 0 : index
    %5 = vector.load %arg4[%c0_4, %c0_5] : memref<128x32xbf16, #tpu.memory_space<vmem>>, vector<128x32xbf16>
    %cst = arith.constant dense<0.000000e+00> : vector<16x32xf32>
    %6 = tpu.matmul %4, %5, %cst {dimension_numbers = #tpu.dot_dimension_numbers<[1], [0], [0], [1], [0, 0, 1, 1], [], []>} : vector<16x128xbf16>, vector<128x32xbf16>, vector<16x32xf32> -> vector<16x32xf32>
    %7 = arith.addf %3, %6 : vector<16x32xf32>
    %c0_6 = arith.constant 0 : index
    %c0_7 = arith.constant 0 : index
    %8 = vector.load %arg10[%c0_6, %c0_7] : memref<16x32xf32, #tpu.memory_space<vmem>>, vector<16x32xf32>
    tpu.vector_store %arg10[%c0_6, %c0_7], %7 {strides = array<i32>} : memref<16x32xf32, #tpu.memory_space<vmem>>, vector<16x32xf32>,
    %c0_i32_8 = arith.constant 0 : i32
    %9 = arith.cmpi eq, %arg2, %c0_i32_8 : i32
    %10 = arith.extui %9 : i1 to i32
    %c0_i32_9 = arith.constant 0 : i32
    %11 = arith.cmpi ne, %10, %c0_i32_9 : i32
    scf.if %11 {
      %c0_10 = arith.constant 0 : index
      %c0_11 = arith.constant 0 : index
      %12 = vector.load %arg10[%c0_10, %c0_11] : memref<16x32xf32, #tpu.memory_space<vmem>>, vector<16x32xf32>
      %c0_12 = arith.constant 0 : index
      %c0_13 = arith.constant 0 : index
      %13 = vector.load %arg5[%c0_12, %c0_13] : memref<1x32xf32, #tpu.memory_space<vmem>>, vector<1x32xf32>
      %14 = vector.broadcast %13 : vector<1x32xf32> to vector<16x32xf32>
      %15 = arith.addf %12, %14 : vector<16x32xf32>
      %c0_14 = arith.constant 0 : index
      %c0_15 = arith.constant 0 : index
      %16 = vector.load %arg6[%c0_14, %c0_15] : memref<16x32xbf16, #tpu.memory_space<vmem>>, vector<16x32xbf16>
      %17 = arith.extf %16 : vector<16x32xbf16> to vector<16x32xf32>
      %18 = arith.addf %15, %17 : vector<16x32xf32>
      %cst_16 = arith.constant dense<0.000000e+00> : vector<16xf32>
      %19 = vector.multi_reduction <add>, %18, %cst_16 [1] : vector<16x32xf32> to vector<16xf32>
      %20 = vector.shape_cast %19 : vector<16xf32> to vector<16x1xf32>
      %cst_17 = arith.constant 3.200000e+01 : f32
      %21 = vector.broadcast %cst_17 : f32 to vector<16x1xf32>
      %22 = arith.divf %20, %21 : vector<16x1xf32>
      %23 = vector.broadcast %22 : vector<16x1xf32> to vector<16x32xf32>
      %24 = arith.subf %18, %23 : vector<16x32xf32>
      %25 = arith.mulf %24, %24 : vector<16x32xf32>
      %cst_18 = arith.constant dense<0.000000e+00> : vector<16xf32>
      %26 = vector.multi_reduction <add>, %25, %cst_18 [1] : vector<16x32xf32> to vector<16xf32>
      %27 = vector.shape_cast %26 : vector<16xf32> to vector<16x1xf32>
      %cst_19 = arith.constant 3.200000e+01 : f32
      %28 = vector.broadcast %cst_19 : f32 to vector<16x1xf32>
      %29 = arith.divf %27, %28 : vector<16x1xf32>
      %30 = vector.broadcast %22 : vector<16x1xf32> to vector<16x32xf32>
      %31 = arith.subf %18, %30 : vector<16x32xf32>
      %cst_20 = arith.constant 9.99999974E-6 : f32
      %32 = vector.broadcast %cst_20 : f32 to vector<16x1xf32>
      %33 = arith.addf %29, %32 : vector<16x1xf32>
      %34 = math.rsqrt %33 : vector<16x1xf32>
      %35 = vector.broadcast %34 : vector<16x1xf32> to vector<16x32xf32>
      %36 = arith.mulf %31, %35 : vector<16x32xf32>
      %c0_21 = arith.constant 0 : index
      %c0_22 = arith.constant 0 : index
      %37 = vector.load %arg7[%c0_21, %c0_22] : memref<1x32xf32, #tpu.memory_space<vmem>>, vector<1x32xf32>
      %38 = vector.broadcast %37 : vector<1x32xf32> to vector<16x32xf32>
      %39 = arith.mulf %36, %38 : vector<16x32xf32>
      %c0_23 = arith.constant 0 : index
      %c0_24 = arith.constant 0 : index
      %40 = vector.load %arg8[%c0_23, %c0_24] : memref<1x32xf32, #tpu.memory_space<vmem>>, vector<1x32xf32>
      %41 = vector.broadcast %40 : vector<1x32xf32> to vector<16x32xf32>
      %42 = arith.addf %39, %41 : vector<16x32xf32>
      %43 = arith.truncf %42 : vector<16x32xf32> to vector<16x32xbf16>
      %c0_25 = arith.constant 0 : index
      %c0_26 = arith.constant 0 : index
      %44 = vector.load %arg9[%c0_25, %c0_26] : memref<16x32xbf16, #tpu.memory_space<vmem>>, vector<16x32xbf16>
      tpu.vector_store %arg9[%c0_25, %c0_26], %43 {strides = array<i32>} : memref<16x32xbf16, #tpu.memory_space<vmem>>, vector<16x32xbf16>,
    } else {
    }
    return
  }
  func.func @transform_0(%arg0: i32, %arg1: i32, %arg2: i32) -> (i32, i32) {
    %c0_i32 = arith.constant 0 : i32
    return %arg0, %arg2 : i32, i32
  }
  func.func @transform_1(%arg0: i32, %arg1: i32, %arg2: i32) -> (i32, i32) {
    %c0_i32 = arith.constant 0 : i32
    return %arg2, %arg1 : i32, i32
  }
  func.func @transform_2(%arg0: i32, %arg1: i32, %arg2: i32) -> (i32, i32) {
    %c0_i32 = arith.constant 0 : i32
    %c0_i32_0 = arith.constant 0 : i32
    return %c0_i32, %arg1 : i32, i32
  }
  func.func @transform_3(%arg0: i32, %arg1: i32, %arg2: i32) -> (i32, i32) {
    %c0_i32 = arith.constant 0 : i32
    return %arg0, %arg1 : i32, i32
  }
  func.func @transform_4(%arg0: i32, %arg1: i32, %arg2: i32) -> (i32, i32) {
    %c0_i32 = arith.constant 0 : i32
    %c0_i32_0 = arith.constant 0 : i32
    return %c0_i32, %arg1 : i32, i32
  }
  func.func @transform_5(%arg0: i32, %arg1: i32, %arg2: i32) -> (i32, i32) {
    %c0_i32 = arith.constant 0 : i32
    %c0_i32_0 = arith.constant 0 : i32
    return %c0_i32, %arg1 : i32, i32
  }
  func.func @transform_6(%arg0: i32, %arg1: i32, %arg2: i32) -> (i32, i32) {
    %c0_i32 = arith.constant 0 : i32
    return %arg0, %arg1 : i32, i32
  }
}

module attributes {stable_mosaic.version = 11 : i64} {
  func.func @_linear_kernel(%arg0: i32, %arg1: i32, %arg2: i32, %arg3: memref<16x32xbf16, #tpu.memory_space<vmem>>, %arg4: memref<32x64xbf16, #tpu.memory_space<vmem>>, %arg5: memref<1x64xf32, #tpu.memory_space<vmem>>, %arg6: memref<16x64xbf16, #tpu.memory_space<vmem>>, %arg7: memref<16x64xf32, #tpu.memory_space<vmem>>) attributes {dimension_semantics = [#tpu.dimension_semantics<parallel>, #tpu.dimension_semantics<parallel>, #tpu.dimension_semantics<arbitrary>], iteration_bounds = array<i64: 1, 1, 1>, scalar_prefetch = 0 : i64, scratch_operands = 1 : i64, tpu.core_type = #tpu.core_type<tc>, window_params = [{transform_indices = @transform_0, window_bounds = array<i64: 16, 32>}, {transform_indices = @transform_1, window_bounds = array<i64: 32, 64>}, {transform_indices = @transform_2, window_bounds = array<i64: 1, 64>}, {transform_indices = @transform_3, window_bounds = array<i64: 16, 64>}]} {
    %c0_i32 = arith.constant 0 : i32
    %0 = arith.cmpi eq, %arg2, %c0_i32 : i32
    %1 = arith.extui %0 : i1 to i32
    %c0_i32_0 = arith.constant 0 : i32
    %2 = arith.cmpi ne, %1, %c0_i32_0 : i32
    scf.if %2 {
      %cst_10 = arith.constant 0.000000e+00 : f32
      %12 = vector.broadcast %cst_10 : f32 to vector<16x64xf32>
      %c0_11 = arith.constant 0 : index
      %c0_12 = arith.constant 0 : index
      %13 = vector.load %arg7[%c0_11, %c0_12] : memref<16x64xf32, #tpu.memory_space<vmem>>, vector<16x64xf32>
      tpu.vector_store %arg7[%c0_11, %c0_12], %12 {strides = array<i32>} : memref<16x64xf32, #tpu.memory_space<vmem>>, vector<16x64xf32>,
    } else {
    }
    %c0 = arith.constant 0 : index
    %c0_1 = arith.constant 0 : index
    %3 = vector.load %arg7[%c0, %c0_1] : memref<16x64xf32, #tpu.memory_space<vmem>>, vector<16x64xf32>
    %c0_2 = arith.constant 0 : index
    %c0_3 = arith.constant 0 : index
    %4 = vector.load %arg3[%c0_2, %c0_3] : memref<16x32xbf16, #tpu.memory_space<vmem>>, vector<16x32xbf16>
    %c0_4 = arith.constant 0 : index
    %c0_5 = arith.constant 0 : index
    %5 = vector.load %arg4[%c0_4, %c0_5] : memref<32x64xbf16, #tpu.memory_space<vmem>>, vector<32x64xbf16>
    %cst = arith.constant dense<0.000000e+00> : vector<16x64xf32>
    %6 = tpu.matmul %4, %5, %cst {dimension_numbers = #tpu.dot_dimension_numbers<[1], [0], [0], [1], [0, 0, 1, 1], [], []>} : vector<16x32xbf16>, vector<32x64xbf16>, vector<16x64xf32> -> vector<16x64xf32>
    %7 = arith.addf %3, %6 : vector<16x64xf32>
    %c0_6 = arith.constant 0 : index
    %c0_7 = arith.constant 0 : index
    %8 = vector.load %arg7[%c0_6, %c0_7] : memref<16x64xf32, #tpu.memory_space<vmem>>, vector<16x64xf32>
    tpu.vector_store %arg7[%c0_6, %c0_7], %7 {strides = array<i32>} : memref<16x64xf32, #tpu.memory_space<vmem>>, vector<16x64xf32>,
    %c0_i32_8 = arith.constant 0 : i32
    %9 = arith.cmpi eq, %arg2, %c0_i32_8 : i32
    %10 = arith.extui %9 : i1 to i32
    %c0_i32_9 = arith.constant 0 : i32
    %11 = arith.cmpi ne, %10, %c0_i32_9 : i32
    scf.if %11 {
      %c0_10 = arith.constant 0 : index
      %c0_11 = arith.constant 0 : index
      %12 = vector.load %arg7[%c0_10, %c0_11] : memref<16x64xf32, #tpu.memory_space<vmem>>, vector<16x64xf32>
      %c0_12 = arith.constant 0 : index
      %c0_13 = arith.constant 0 : index
      %13 = vector.load %arg5[%c0_12, %c0_13] : memref<1x64xf32, #tpu.memory_space<vmem>>, vector<1x64xf32>
      %14 = vector.broadcast %13 : vector<1x64xf32> to vector<16x64xf32>
      %15 = arith.addf %12, %14 : vector<16x64xf32>
      %16 = arith.truncf %15 : vector<16x64xf32> to vector<16x64xbf16>
      %c0_14 = arith.constant 0 : index
      %c0_15 = arith.constant 0 : index
      %17 = vector.load %arg6[%c0_14, %c0_15] : memref<16x64xbf16, #tpu.memory_space<vmem>>, vector<16x64xbf16>
      tpu.vector_store %arg6[%c0_14, %c0_15], %16 {strides = array<i32>} : memref<16x64xbf16, #tpu.memory_space<vmem>>, vector<16x64xbf16>,
    } else {
    }
    return
  }
  func.func @transform_0(%arg0: i32, %arg1: i32, %arg2: i32) -> (i32, i32) {
    %c0_i32 = arith.constant 0 : i32
    return %arg0, %arg2 : i32, i32
  }
  func.func @transform_1(%arg0: i32, %arg1: i32, %arg2: i32) -> (i32, i32) {
    %c0_i32 = arith.constant 0 : i32
    return %arg2, %arg1 : i32, i32
  }
  func.func @transform_2(%arg0: i32, %arg1: i32, %arg2: i32) -> (i32, i32) {
    %c0_i32 = arith.constant 0 : i32
    %c0_i32_0 = arith.constant 0 : i32
    return %c0_i32, %arg1 : i32, i32
  }
  func.func @transform_3(%arg0: i32, %arg1: i32, %arg2: i32) -> (i32, i32) {
    %c0_i32 = arith.constant 0 : i32
    return %arg0, %arg1 : i32, i32
  }
}

module attributes {stable_mosaic.version = 11 : i64} {
  func.func @_mha_fused_kernel(%arg0: i32, %arg1: memref<1x8x96xbf16, #tpu.memory_space<vmem>>, %arg2: memref<1x8x8xf32, #tpu.memory_space<vmem>>, %arg3: memref<32x32xbf16, #tpu.memory_space<vmem>>, %arg4: memref<1x32xf32, #tpu.memory_space<vmem>>, %arg5: memref<1x8x32xbf16, #tpu.memory_space<vmem>>, %arg6: memref<1x32xf32, #tpu.memory_space<vmem>>, %arg7: memref<1x32xf32, #tpu.memory_space<vmem>>, %arg8: memref<1x8x32xbf16, #tpu.memory_space<vmem>>) attributes {dimension_semantics = [#tpu.dimension_semantics<parallel>], iteration_bounds = array<i64: 2>, scalar_prefetch = 0 : i64, scratch_operands = 0 : i64, tpu.core_type = #tpu.core_type<tc>, window_params = [{transform_indices = @transform_0, window_bounds = array<i64: 1, 8, 96>}, {transform_indices = @transform_1, window_bounds = array<i64: 1, 8, 8>}, {pipeline_mode = #tpu.pipeline_mode<synchronous>, transform_indices = @transform_2, window_bounds = array<i64: 32, 32>}, {pipeline_mode = #tpu.pipeline_mode<synchronous>, transform_indices = @transform_3, window_bounds = array<i64: 1, 32>}, {transform_indices = @transform_4, window_bounds = array<i64: 1, 8, 32>}, {pipeline_mode = #tpu.pipeline_mode<synchronous>, transform_indices = @transform_5, window_bounds = array<i64: 1, 32>}, {pipeline_mode = #tpu.pipeline_mode<synchronous>, transform_indices = @transform_6, window_bounds = array<i64: 1, 32>}, {transform_indices = @transform_7, window_bounds = array<i64: 1, 8, 32>}]} {
    %c0 = arith.constant 0 : index
    %c0_0 = arith.constant 0 : index
    %c0_1 = arith.constant 0 : index
    %0 = vector.load %arg1[%c0, %c0_0, %c0_1] : memref<1x8x96xbf16, #tpu.memory_space<vmem>>, vector<1x8x96xbf16>
    %1 = vector.shape_cast %0 : vector<1x8x96xbf16> to vector<8x96xbf16>
    %2 = vector.extract_strided_slice %1 {offsets = [0, 0], sizes = [8, 32], strides = [1, 1]} : vector<8x96xbf16> to vector<8x32xbf16>
    %3 = vector.extract_strided_slice %1 {offsets = [0, 32], sizes = [8, 64], strides = [1, 1]} : vector<8x96xbf16> to vector<8x64xbf16>
    %c0_2 = arith.constant 0 : index
    %c0_3 = arith.constant 0 : index
    %c0_4 = arith.constant 0 : index
    %4 = vector.load %arg2[%c0_2, %c0_3, %c0_4] : memref<1x8x8xf32, #tpu.memory_space<vmem>>, vector<1x8x8xf32>
    %5 = vector.shape_cast %4 : vector<1x8x8xf32> to vector<8x8xf32>
    %cst = arith.constant 0.000000e+00 : f32
    %6 = vector.broadcast %cst : f32 to vector<8x32xf32>
    %7 = vector.extract_strided_slice %2 {offsets = [0, 0], sizes = [8, 8], strides = [1, 1]} : vector<8x32xbf16> to vector<8x8xbf16>
    %8 = vector.extract_strided_slice %3 {offsets = [0, 0], sizes = [8, 8], strides = [1, 1]} : vector<8x64xbf16> to vector<8x8xbf16>
    %9 = vector.extract_strided_slice %3 {offsets = [0, 32], sizes = [8, 8], strides = [1, 1]} : vector<8x64xbf16> to vector<8x8xbf16>
    %cst_5 = arith.constant dense<0.000000e+00> : vector<8x8xf32>
    %10 = tpu.matmul %7, %8, %cst_5 {dimension_numbers = #tpu.dot_dimension_numbers<[1], [1], [0], [0], [0, 0, 1, 0], [], []>} : vector<8x8xbf16>, vector<8x8xbf16>, vector<8x8xf32> -> vector<8x8xf32>
    %cst_6 = arith.constant 0.353553385 : f32
    %11 = vector.broadcast %cst_6 : f32 to vector<8x8xf32>
    %12 = arith.mulf %10, %11 : vector<8x8xf32>
    %13 = arith.addf %12, %5 : vector<8x8xf32>
    %cst_7 = arith.constant dense<0xFF800000> : vector<8xf32>
    %14 = vector.multi_reduction <maximumf>, %13, %cst_7 [1] : vector<8x8xf32> to vector<8xf32>
    %15 = vector.shape_cast %14 : vector<8xf32> to vector<8x1xf32>
    %16 = vector.broadcast %15 : vector<8x1xf32> to vector<8x8xf32>
    %17 = arith.subf %13, %16 : vector<8x8xf32>
    %18 = math.exp %17 : vector<8x8xf32>
    %cst_8 = arith.constant dense<0.000000e+00> : vector<8xf32>
    %19 = vector.multi_reduction <add>, %18, %cst_8 [1] : vector<8x8xf32> to vector<8xf32>
    %20 = vector.shape_cast %19 : vector<8xf32> to vector<8x1xf32>
    %21 = tpu.reciprocal %20 {approx = true} : vector<8x1xf32> -> vector<8x1xf32>
    %22 = vector.broadcast %21 : vector<8x1xf32> to vector<8x8xf32>
    %23 = arith.mulf %18, %22 : vector<8x8xf32>
    %24 = arith.truncf %23 : vector<8x8xf32> to vector<8x8xbf16>
    %cst_9 = arith.constant dense<0.000000e+00> : vector<8x8xf32>
    %25 = tpu.matmul %24, %9, %cst_9 {dimension_numbers = #tpu.dot_dimension_numbers<[1], [0], [0], [1], [0, 0, 1, 1], [], []>} : vector<8x8xbf16>, vector<8x8xbf16>, vector<8x8xf32> -> vector<8x8xf32>
    %c0_10 = arith.constant 0 : index
    %c0_11 = arith.constant 0 : index
    %26 = vector.load %arg3[%c0_10, %c0_11] : memref<32x32xbf16, #tpu.memory_space<vmem>>, vector<8x32xbf16>
    %27 = arith.truncf %25 : vector<8x8xf32> to vector<8x8xbf16>
    %cst_12 = arith.constant dense<0.000000e+00> : vector<8x32xf32>
    %28 = tpu.matmul %27, %26, %cst_12 {dimension_numbers = #tpu.dot_dimension_numbers<[1], [0], [0], [1], [0, 0, 1, 1], [], []>} : vector<8x8xbf16>, vector<8x32xbf16>, vector<8x32xf32> -> vector<8x32xf32>
    %29 = arith.addf %6, %28 : vector<8x32xf32>
    %30 = vector.extract_strided_slice %2 {offsets = [0, 8], sizes = [8, 8], strides = [1, 1]} : vector<8x32xbf16> to vector<8x8xbf16>
    %31 = vector.extract_strided_slice %3 {offsets = [0, 8], sizes = [8, 8], strides = [1, 1]} : vector<8x64xbf16> to vector<8x8xbf16>
    %32 = vector.extract_strided_slice %3 {offsets = [0, 40], sizes = [8, 8], strides = [1, 1]} : vector<8x64xbf16> to vector<8x8xbf16>
    %cst_13 = arith.constant dense<0.000000e+00> : vector<8x8xf32>
    %33 = tpu.matmul %30, %31, %cst_13 {dimension_numbers = #tpu.dot_dimension_numbers<[1], [1], [0], [0], [0, 0, 1, 0], [], []>} : vector<8x8xbf16>, vector<8x8xbf16>, vector<8x8xf32> -> vector<8x8xf32>
    %cst_14 = arith.constant 0.353553385 : f32
    %34 = vector.broadcast %cst_14 : f32 to vector<8x8xf32>
    %35 = arith.mulf %33, %34 : vector<8x8xf32>
    %36 = arith.addf %35, %5 : vector<8x8xf32>
    %cst_15 = arith.constant dense<0xFF800000> : vector<8xf32>
    %37 = vector.multi_reduction <maximumf>, %36, %cst_15 [1] : vector<8x8xf32> to vector<8xf32>
    %38 = vector.shape_cast %37 : vector<8xf32> to vector<8x1xf32>
    %39 = vector.broadcast %38 : vector<8x1xf32> to vector<8x8xf32>
    %40 = arith.subf %36, %39 : vector<8x8xf32>
    %41 = math.exp %40 : vector<8x8xf32>
    %cst_16 = arith.constant dense<0.000000e+00> : vector<8xf32>
    %42 = vector.multi_reduction <add>, %41, %cst_16 [1] : vector<8x8xf32> to vector<8xf32>
    %43 = vector.shape_cast %42 : vector<8xf32> to vector<8x1xf32>
    %44 = tpu.reciprocal %43 {approx = true} : vector<8x1xf32> -> vector<8x1xf32>
    %45 = vector.broadcast %44 : vector<8x1xf32> to vector<8x8xf32>
    %46 = arith.mulf %41, %45 : vector<8x8xf32>
    %47 = arith.truncf %46 : vector<8x8xf32> to vector<8x8xbf16>
    %cst_17 = arith.constant dense<0.000000e+00> : vector<8x8xf32>
    %48 = tpu.matmul %47, %32, %cst_17 {dimension_numbers = #tpu.dot_dimension_numbers<[1], [0], [0], [1], [0, 0, 1, 1], [], []>} : vector<8x8xbf16>, vector<8x8xbf16>, vector<8x8xf32> -> vector<8x8xf32>
    %c8 = arith.constant 8 : index
    %c0_18 = arith.constant 0 : index
    %49 = vector.load %arg3[%c8, %c0_18] : memref<32x32xbf16, #tpu.memory_space<vmem>>, vector<8x32xbf16>
    %50 = arith.truncf %48 : vector<8x8xf32> to vector<8x8xbf16>
    %cst_19 = arith.constant dense<0.000000e+00> : vector<8x32xf32>
    %51 = tpu.matmul %50, %49, %cst_19 {dimension_numbers = #tpu.dot_dimension_numbers<[1], [0], [0], [1], [0, 0, 1, 1], [], []>} : vector<8x8xbf16>, vector<8x32xbf16>, vector<8x32xf32> -> vector<8x32xf32>
    %52 = arith.addf %29, %51 : vector<8x32xf32>
    %53 = vector.extract_strided_slice %2 {offsets = [0, 16], sizes = [8, 8], strides = [1, 1]} : vector<8x32xbf16> to vector<8x8xbf16>
    %54 = vector.extract_strided_slice %3 {offsets = [0, 16], sizes = [8, 8], strides = [1, 1]} : vector<8x64xbf16> to vector<8x8xbf16>
    %55 = vector.extract_strided_slice %3 {offsets = [0, 48], sizes = [8, 8], strides = [1, 1]} : vector<8x64xbf16> to vector<8x8xbf16>
    %cst_20 = arith.constant dense<0.000000e+00> : vector<8x8xf32>
    %56 = tpu.matmul %53, %54, %cst_20 {dimension_numbers = #tpu.dot_dimension_numbers<[1], [1], [0], [0], [0, 0, 1, 0], [], []>} : vector<8x8xbf16>, vector<8x8xbf16>, vector<8x8xf32> -> vector<8x8xf32>
    %cst_21 = arith.constant 0.353553385 : f32
    %57 = vector.broadcast %cst_21 : f32 to vector<8x8xf32>
    %58 = arith.mulf %56, %57 : vector<8x8xf32>
    %59 = arith.addf %58, %5 : vector<8x8xf32>
    %cst_22 = arith.constant dense<0xFF800000> : vector<8xf32>
    %60 = vector.multi_reduction <maximumf>, %59, %cst_22 [1] : vector<8x8xf32> to vector<8xf32>
    %61 = vector.shape_cast %60 : vector<8xf32> to vector<8x1xf32>
    %62 = vector.broadcast %61 : vector<8x1xf32> to vector<8x8xf32>
    %63 = arith.subf %59, %62 : vector<8x8xf32>
    %64 = math.exp %63 : vector<8x8xf32>
    %cst_23 = arith.constant dense<0.000000e+00> : vector<8xf32>
    %65 = vector.multi_reduction <add>, %64, %cst_23 [1] : vector<8x8xf32> to vector<8xf32>
    %66 = vector.shape_cast %65 : vector<8xf32> to vector<8x1xf32>
    %67 = tpu.reciprocal %66 {approx = true} : vector<8x1xf32> -> vector<8x1xf32>
    %68 = vector.broadcast %67 : vector<8x1xf32> to vector<8x8xf32>
    %69 = arith.mulf %64, %68 : vector<8x8xf32>
    %70 = arith.truncf %69 : vector<8x8xf32> to vector<8x8xbf16>
    %cst_24 = arith.constant dense<0.000000e+00> : vector<8x8xf32>
    %71 = tpu.matmul %70, %55, %cst_24 {dimension_numbers = #tpu.dot_dimension_numbers<[1], [0], [0], [1], [0, 0, 1, 1], [], []>} : vector<8x8xbf16>, vector<8x8xbf16>, vector<8x8xf32> -> vector<8x8xf32>
    %c16 = arith.constant 16 : index
    %c0_25 = arith.constant 0 : index
    %72 = vector.load %arg3[%c16, %c0_25] : memref<32x32xbf16, #tpu.memory_space<vmem>>, vector<8x32xbf16>
    %73 = arith.truncf %71 : vector<8x8xf32> to vector<8x8xbf16>
    %cst_26 = arith.constant dense<0.000000e+00> : vector<8x32xf32>
    %74 = tpu.matmul %73, %72, %cst_26 {dimension_numbers = #tpu.dot_dimension_numbers<[1], [0], [0], [1], [0, 0, 1, 1], [], []>} : vector<8x8xbf16>, vector<8x32xbf16>, vector<8x32xf32> -> vector<8x32xf32>
    %75 = arith.addf %52, %74 : vector<8x32xf32>
    %76 = vector.extract_strided_slice %2 {offsets = [0, 24], sizes = [8, 8], strides = [1, 1]} : vector<8x32xbf16> to vector<8x8xbf16>
    %77 = vector.extract_strided_slice %3 {offsets = [0, 24], sizes = [8, 8], strides = [1, 1]} : vector<8x64xbf16> to vector<8x8xbf16>
    %78 = vector.extract_strided_slice %3 {offsets = [0, 56], sizes = [8, 8], strides = [1, 1]} : vector<8x64xbf16> to vector<8x8xbf16>
    %cst_27 = arith.constant dense<0.000000e+00> : vector<8x8xf32>
    %79 = tpu.matmul %76, %77, %cst_27 {dimension_numbers = #tpu.dot_dimension_numbers<[1], [1], [0], [0], [0, 0, 1, 0], [], []>} : vector<8x8xbf16>, vector<8x8xbf16>, vector<8x8xf32> -> vector<8x8xf32>
    %cst_28 = arith.constant 0.353553385 : f32
    %80 = vector.broadcast %cst_28 : f32 to vector<8x8xf32>
    %81 = arith.mulf %79, %80 : vector<8x8xf32>
    %82 = arith.addf %81, %5 : vector<8x8xf32>
    %cst_29 = arith.constant dense<0xFF800000> : vector<8xf32>
    %83 = vector.multi_reduction <maximumf>, %82, %cst_29 [1] : vector<8x8xf32> to vector<8xf32>
    %84 = vector.shape_cast %83 : vector<8xf32> to vector<8x1xf32>
    %85 = vector.broadcast %84 : vector<8x1xf32> to vector<8x8xf32>
    %86 = arith.subf %82, %85 : vector<8x8xf32>
    %87 = math.exp %86 : vector<8x8xf32>
    %cst_30 = arith.constant dense<0.000000e+00> : vector<8xf32>
    %88 = vector.multi_reduction <add>, %87, %cst_30 [1] : vector<8x8xf32> to vector<8xf32>
    %89 = vector.shape_cast %88 : vector<8xf32> to vector<8x1xf32>
    %90 = tpu.reciprocal %89 {approx = true} : vector<8x1xf32> -> vector<8x1xf32>
    %91 = vector.broadcast %90 : vector<8x1xf32> to vector<8x8xf32>
    %92 = arith.mulf %87, %91 : vector<8x8xf32>
    %93 = arith.truncf %92 : vector<8x8xf32> to vector<8x8xbf16>
    %cst_31 = arith.constant dense<0.000000e+00> : vector<8x8xf32>
    %94 = tpu.matmul %93, %78, %cst_31 {dimension_numbers = #tpu.dot_dimension_numbers<[1], [0], [0], [1], [0, 0, 1, 1], [], []>} : vector<8x8xbf16>, vector<8x8xbf16>, vector<8x8xf32> -> vector<8x8xf32>
    %c24 = arith.constant 24 : index
    %c0_32 = arith.constant 0 : index
    %95 = vector.load %arg3[%c24, %c0_32] : memref<32x32xbf16, #tpu.memory_space<vmem>>, vector<8x32xbf16>
    %96 = arith.truncf %94 : vector<8x8xf32> to vector<8x8xbf16>
    %cst_33 = arith.constant dense<0.000000e+00> : vector<8x32xf32>
    %97 = tpu.matmul %96, %95, %cst_33 {dimension_numbers = #tpu.dot_dimension_numbers<[1], [0], [0], [1], [0, 0, 1, 1], [], []>} : vector<8x8xbf16>, vector<8x32xbf16>, vector<8x32xf32> -> vector<8x32xf32>
    %98 = arith.addf %75, %97 : vector<8x32xf32>
    %c0_34 = arith.constant 0 : index
    %c0_35 = arith.constant 0 : index
    %99 = vector.load %arg4[%c0_34, %c0_35] : memref<1x32xf32, #tpu.memory_space<vmem>>, vector<1x32xf32>
    %100 = vector.broadcast %99 : vector<1x32xf32> to vector<8x32xf32>
    %101 = arith.addf %98, %100 : vector<8x32xf32>
    %c0_36 = arith.constant 0 : index
    %c0_37 = arith.constant 0 : index
    %c0_38 = arith.constant 0 : index
    %102 = vector.load %arg5[%c0_36, %c0_37, %c0_38] : memref<1x8x32xbf16, #tpu.memory_space<vmem>>, vector<1x8x32xbf16>
    %103 = vector.shape_cast %102 : vector<1x8x32xbf16> to vector<8x32xbf16>
    %104 = arith.extf %103 : vector<8x32xbf16> to vector<8x32xf32>
    %105 = arith.addf %101, %104 : vector<8x32xf32>
    %cst_39 = arith.constant dense<0.000000e+00> : vector<8xf32>
    %106 = vector.multi_reduction <add>, %105, %cst_39 [1] : vector<8x32xf32> to vector<8xf32>
    %107 = vector.shape_cast %106 : vector<8xf32> to vector<8x1xf32>
    %cst_40 = arith.constant 3.200000e+01 : f32
    %108 = vector.broadcast %cst_40 : f32 to vector<8x1xf32>
    %109 = arith.divf %107, %108 : vector<8x1xf32>
    %110 = vector.broadcast %109 : vector<8x1xf32> to vector<8x32xf32>
    %111 = arith.subf %105, %110 : vector<8x32xf32>
    %112 = arith.mulf %111, %111 : vector<8x32xf32>
    %cst_41 = arith.constant dense<0.000000e+00> : vector<8xf32>
    %113 = vector.multi_reduction <add>, %112, %cst_41 [1] : vector<8x32xf32> to vector<8xf32>
    %114 = vector.shape_cast %113 : vector<8xf32> to vector<8x1xf32>
    %cst_42 = arith.constant 3.200000e+01 : f32
    %115 = vector.broadcast %cst_42 : f32 to vector<8x1xf32>
    %116 = arith.divf %114, %115 : vector<8x1xf32>
    %117 = vector.broadcast %109 : vector<8x1xf32> to vector<8x32xf32>
    %118 = arith.subf %105, %117 : vector<8x32xf32>
    %cst_43 = arith.constant 9.99999974E-6 : f32
    %119 = vector.broadcast %cst_43 : f32 to vector<8x1xf32>
    %120 = arith.addf %116, %119 : vector<8x1xf32>
    %121 = math.rsqrt %120 : vector<8x1xf32>
    %122 = vector.broadcast %121 : vector<8x1xf32> to vector<8x32xf32>
    %123 = arith.mulf %118, %122 : vector<8x32xf32>
    %c0_44 = arith.constant 0 : index
    %c0_45 = arith.constant 0 : index
    %124 = vector.load %arg6[%c0_44, %c0_45] : memref<1x32xf32, #tpu.memory_space<vmem>>, vector<1x32xf32>
    %125 = vector.broadcast %124 : vector<1x32xf32> to vector<8x32xf32>
    %126 = arith.mulf %123, %125 : vector<8x32xf32>
    %c0_46 = arith.constant 0 : index
    %c0_47 = arith.constant 0 : index
    %127 = vector.load %arg7[%c0_46, %c0_47] : memref<1x32xf32, #tpu.memory_space<vmem>>, vector<1x32xf32>
    %128 = vector.broadcast %127 : vector<1x32xf32> to vector<8x32xf32>
    %129 = arith.addf %126, %128 : vector<8x32xf32>
    %130 = arith.truncf %129 : vector<8x32xf32> to vector<8x32xbf16>
    %c0_48 = arith.constant 0 : index
    %c0_49 = arith.constant 0 : index
    %c0_50 = arith.constant 0 : index
    %131 = vector.load %arg8[%c0_48, %c0_49, %c0_50] : memref<1x8x32xbf16, #tpu.memory_space<vmem>>, vector<1x8x32xbf16>
    %132 = vector.shape_cast %131 : vector<1x8x32xbf16> to vector<8x32xbf16>
    %133 = vector.shape_cast %130 : vector<8x32xbf16> to vector<1x8x32xbf16>
    tpu.vector_store %arg8[%c0_48, %c0_49, %c0_50], %133 {strides = array<i32>} : memref<1x8x32xbf16, #tpu.memory_space<vmem>>, vector<1x8x32xbf16>,
    return
  }
  func.func @transform_0(%arg0: i32) -> (i32, i32, i32) {
    %c0_i32 = arith.constant 0 : i32
    %c0_i32_0 = arith.constant 0 : i32
    %c0_i32_1 = arith.constant 0 : i32
    return %arg0, %c0_i32, %c0_i32_0 : i32, i32, i32
  }
  func.func @transform_1(%arg0: i32) -> (i32, i32, i32) {
    %c0_i32 = arith.constant 0 : i32
    %c0_i32_0 = arith.constant 0 : i32
    %c0_i32_1 = arith.constant 0 : i32
    return %arg0, %c0_i32, %c0_i32_0 : i32, i32, i32
  }
  func.func @transform_2(%arg0: i32) -> (i32, i32) {
    %c0_i32 = arith.constant 0 : i32
    %c0_i32_0 = arith.constant 0 : i32
    %c0_i32_1 = arith.constant 0 : i32
    return %c0_i32, %c0_i32_0 : i32, i32
  }
  func.func @transform_3(%arg0: i32) -> (i32, i32) {
    %c0_i32 = arith.constant 0 : i32
    %c0_i32_0 = arith.constant 0 : i32
    %c0_i32_1 = arith.constant 0 : i32
    return %c0_i32, %c0_i32_0 : i32, i32
  }
  func.func @transform_4(%arg0: i32) -> (i32, i32, i32) {
    %c0_i32 = arith.constant 0 : i32
    %c0_i32_0 = arith.constant 0 : i32
    %c0_i32_1 = arith.constant 0 : i32
    return %arg0, %c0_i32, %c0_i32_0 : i32, i32, i32
  }
  func.func @transform_5(%arg0: i32) -> (i32, i32) {
    %c0_i32 = arith.constant 0 : i32
    %c0_i32_0 = arith.constant 0 : i32
    %c0_i32_1 = arith.constant 0 : i32
    return %c0_i32, %c0_i32_0 : i32, i32
  }
  func.func @transform_6(%arg0: i32) -> (i32, i32) {
    %c0_i32 = arith.constant 0 : i32
    %c0_i32_0 = arith.constant 0 : i32
    %c0_i32_1 = arith.constant 0 : i32
    return %c0_i32, %c0_i32_0 : i32, i32
  }
  func.func @transform_7(%arg0: i32) -> (i32, i32, i32) {
    %c0_i32 = arith.constant 0 : i32
    %c0_i32_0 = arith.constant 0 : i32
    %c0_i32_1 = arith.constant 0 : i32
    return %arg0, %c0_i32, %c0_i32_0 : i32, i32, i32
  }
}

module attributes {stable_mosaic.version = 11 : i64} {
  func.func @_linear_kernel(%arg0: i32, %arg1: i32, %arg2: i32, %arg3: memref<16x32xbf16, #tpu.memory_space<vmem>>, %arg4: memref<32x128xbf16, #tpu.memory_space<vmem>>, %arg5: memref<1x128xf32, #tpu.memory_space<vmem>>, %arg6: memref<16x128xf32, #tpu.memory_space<vmem>>, %arg7: memref<16x128xf32, #tpu.memory_space<vmem>>) attributes {dimension_semantics = [#tpu.dimension_semantics<parallel>, #tpu.dimension_semantics<parallel>, #tpu.dimension_semantics<arbitrary>], iteration_bounds = array<i64: 1, 1, 1>, scalar_prefetch = 0 : i64, scratch_operands = 1 : i64, tpu.core_type = #tpu.core_type<tc>, window_params = [{transform_indices = @transform_0, window_bounds = array<i64: 16, 32>}, {transform_indices = @transform_1, window_bounds = array<i64: 32, 128>}, {transform_indices = @transform_2, window_bounds = array<i64: 1, 128>}, {transform_indices = @transform_3, window_bounds = array<i64: 16, 128>}]} {
    %c0_i32 = arith.constant 0 : i32
    %0 = arith.cmpi eq, %arg2, %c0_i32 : i32
    %1 = arith.extui %0 : i1 to i32
    %c0_i32_0 = arith.constant 0 : i32
    %2 = arith.cmpi ne, %1, %c0_i32_0 : i32
    scf.if %2 {
      %cst_10 = arith.constant 0.000000e+00 : f32
      %12 = vector.broadcast %cst_10 : f32 to vector<16x128xf32>
      %c0_11 = arith.constant 0 : index
      %c0_12 = arith.constant 0 : index
      %13 = vector.load %arg7[%c0_11, %c0_12] : memref<16x128xf32, #tpu.memory_space<vmem>>, vector<16x128xf32>
      tpu.vector_store %arg7[%c0_11, %c0_12], %12 {strides = array<i32>} : memref<16x128xf32, #tpu.memory_space<vmem>>, vector<16x128xf32>,
    } else {
    }
    %c0 = arith.constant 0 : index
    %c0_1 = arith.constant 0 : index
    %3 = vector.load %arg7[%c0, %c0_1] : memref<16x128xf32, #tpu.memory_space<vmem>>, vector<16x128xf32>
    %c0_2 = arith.constant 0 : index
    %c0_3 = arith.constant 0 : index
    %4 = vector.load %arg3[%c0_2, %c0_3] : memref<16x32xbf16, #tpu.memory_space<vmem>>, vector<16x32xbf16>
    %c0_4 = arith.constant 0 : index
    %c0_5 = arith.constant 0 : index
    %5 = vector.load %arg4[%c0_4, %c0_5] : memref<32x128xbf16, #tpu.memory_space<vmem>>, vector<32x128xbf16>
    %cst = arith.constant dense<0.000000e+00> : vector<16x128xf32>
    %6 = tpu.matmul %4, %5, %cst {dimension_numbers = #tpu.dot_dimension_numbers<[1], [0], [0], [1], [0, 0, 1, 1], [], []>} : vector<16x32xbf16>, vector<32x128xbf16>, vector<16x128xf32> -> vector<16x128xf32>
    %7 = arith.addf %3, %6 : vector<16x128xf32>
    %c0_6 = arith.constant 0 : index
    %c0_7 = arith.constant 0 : index
    %8 = vector.load %arg7[%c0_6, %c0_7] : memref<16x128xf32, #tpu.memory_space<vmem>>, vector<16x128xf32>
    tpu.vector_store %arg7[%c0_6, %c0_7], %7 {strides = array<i32>} : memref<16x128xf32, #tpu.memory_space<vmem>>, vector<16x128xf32>,
    %c0_i32_8 = arith.constant 0 : i32
    %9 = arith.cmpi eq, %arg2, %c0_i32_8 : i32
    %10 = arith.extui %9 : i1 to i32
    %c0_i32_9 = arith.constant 0 : i32
    %11 = arith.cmpi ne, %10, %c0_i32_9 : i32
    scf.if %11 {
      %c0_10 = arith.constant 0 : index
      %c0_11 = arith.constant 0 : index
      %12 = vector.load %arg7[%c0_10, %c0_11] : memref<16x128xf32, #tpu.memory_space<vmem>>, vector<16x128xf32>
      %c0_12 = arith.constant 0 : index
      %c0_13 = arith.constant 0 : index
      %13 = vector.load %arg5[%c0_12, %c0_13] : memref<1x128xf32, #tpu.memory_space<vmem>>, vector<1x128xf32>
      %14 = vector.broadcast %13 : vector<1x128xf32> to vector<16x128xf32>
      %15 = arith.addf %12, %14 : vector<16x128xf32>
      %c0_14 = arith.constant 0 : index
      %c0_15 = arith.constant 0 : index
      %16 = vector.load %arg6[%c0_14, %c0_15] : memref<16x128xf32, #tpu.memory_space<vmem>>, vector<16x128xf32>
      tpu.vector_store %arg6[%c0_14, %c0_15], %15 {strides = array<i32>} : memref<16x128xf32, #tpu.memory_space<vmem>>, vector<16x128xf32>,
    } else {
    }
    return
  }
  func.func @transform_0(%arg0: i32, %arg1: i32, %arg2: i32) -> (i32, i32) {
    %c0_i32 = arith.constant 0 : i32
    return %arg0, %arg2 : i32, i32
  }
  func.func @transform_1(%arg0: i32, %arg1: i32, %arg2: i32) -> (i32, i32) {
    %c0_i32 = arith.constant 0 : i32
    return %arg2, %arg1 : i32, i32
  }
  func.func @transform_2(%arg0: i32, %arg1: i32, %arg2: i32) -> (i32, i32) {
    %c0_i32 = arith.constant 0 : i32
    %c0_i32_0 = arith.constant 0 : i32
    return %c0_i32, %arg1 : i32, i32
  }
  func.func @transform_3(%arg0: i32, %arg1: i32, %arg2: i32) -> (i32, i32) {
    %c0_i32 = arith.constant 0 : i32
    return %arg0, %arg1 : i32, i32
  }
}

module attributes {stable_mosaic.version = 11 : i64} {
  func.func @_linear_kernel(%arg0: i32, %arg1: i32, %arg2: i32, %arg3: memref<16x32xbf16, #tpu.memory_space<vmem>>, %arg4: memref<32x32xbf16, #tpu.memory_space<vmem>>, %arg5: memref<1x32xf32, #tpu.memory_space<vmem>>, %arg6: memref<16x32xbf16, #tpu.memory_space<vmem>>, %arg7: memref<16x32xf32, #tpu.memory_space<vmem>>) attributes {dimension_semantics = [#tpu.dimension_semantics<parallel>, #tpu.dimension_semantics<parallel>, #tpu.dimension_semantics<arbitrary>], iteration_bounds = array<i64: 1, 1, 1>, scalar_prefetch = 0 : i64, scratch_operands = 1 : i64, tpu.core_type = #tpu.core_type<tc>, window_params = [{transform_indices = @transform_0, window_bounds = array<i64: 16, 32>}, {transform_indices = @transform_1, window_bounds = array<i64: 32, 32>}, {transform_indices = @transform_2, window_bounds = array<i64: 1, 32>}, {transform_indices = @transform_3, window_bounds = array<i64: 16, 32>}]} {
    %c0_i32 = arith.constant 0 : i32
    %0 = arith.cmpi eq, %arg2, %c0_i32 : i32
    %1 = arith.extui %0 : i1 to i32
    %c0_i32_0 = arith.constant 0 : i32
    %2 = arith.cmpi ne, %1, %c0_i32_0 : i32
    scf.if %2 {
      %cst_10 = arith.constant 0.000000e+00 : f32
      %12 = vector.broadcast %cst_10 : f32 to vector<16x32xf32>
      %c0_11 = arith.constant 0 : index
      %c0_12 = arith.constant 0 : index
      %13 = vector.load %arg7[%c0_11, %c0_12] : memref<16x32xf32, #tpu.memory_space<vmem>>, vector<16x32xf32>
      tpu.vector_store %arg7[%c0_11, %c0_12], %12 {strides = array<i32>} : memref<16x32xf32, #tpu.memory_space<vmem>>, vector<16x32xf32>,
    } else {
    }
    %c0 = arith.constant 0 : index
    %c0_1 = arith.constant 0 : index
    %3 = vector.load %arg7[%c0, %c0_1] : memref<16x32xf32, #tpu.memory_space<vmem>>, vector<16x32xf32>
    %c0_2 = arith.constant 0 : index
    %c0_3 = arith.constant 0 : index
    %4 = vector.load %arg3[%c0_2, %c0_3] : memref<16x32xbf16, #tpu.memory_space<vmem>>, vector<16x32xbf16>
    %c0_4 = arith.constant 0 : index
    %c0_5 = arith.constant 0 : index
    %5 = vector.load %arg4[%c0_4, %c0_5] : memref<32x32xbf16, #tpu.memory_space<vmem>>, vector<32x32xbf16>
    %cst = arith.constant dense<0.000000e+00> : vector<16x32xf32>
    %6 = tpu.matmul %4, %5, %cst {dimension_numbers = #tpu.dot_dimension_numbers<[1], [0], [0], [1], [0, 0, 1, 1], [], []>} : vector<16x32xbf16>, vector<32x32xbf16>, vector<16x32xf32> -> vector<16x32xf32>
    %7 = arith.addf %3, %6 : vector<16x32xf32>
    %c0_6 = arith.constant 0 : index
    %c0_7 = arith.constant 0 : index
    %8 = vector.load %arg7[%c0_6, %c0_7] : memref<16x32xf32, #tpu.memory_space<vmem>>, vector<16x32xf32>
    tpu.vector_store %arg7[%c0_6, %c0_7], %7 {strides = array<i32>} : memref<16x32xf32, #tpu.memory_space<vmem>>, vector<16x32xf32>,
    %c0_i32_8 = arith.constant 0 : i32
    %9 = arith.cmpi eq, %arg2, %c0_i32_8 : i32
    %10 = arith.extui %9 : i1 to i32
    %c0_i32_9 = arith.constant 0 : i32
    %11 = arith.cmpi ne, %10, %c0_i32_9 : i32
    scf.if %11 {
      %c0_10 = arith.constant 0 : index
      %c0_11 = arith.constant 0 : index
      %12 = vector.load %arg7[%c0_10, %c0_11] : memref<16x32xf32, #tpu.memory_space<vmem>>, vector<16x32xf32>
      %c0_12 = arith.constant 0 : index
      %c0_13 = arith.constant 0 : index
      %13 = vector.load %arg5[%c0_12, %c0_13] : memref<1x32xf32, #tpu.memory_space<vmem>>, vector<1x32xf32>
      %14 = vector.broadcast %13 : vector<1x32xf32> to vector<16x32xf32>
      %15 = arith.addf %12, %14 : vector<16x32xf32>
      %16 = arith.truncf %15 : vector<16x32xf32> to vector<16x32xbf16>
      %c0_14 = arith.constant 0 : index
      %c0_15 = arith.constant 0 : index
      %17 = vector.load %arg6[%c0_14, %c0_15] : memref<16x32xbf16, #tpu.memory_space<vmem>>, vector<16x32xbf16>
      tpu.vector_store %arg6[%c0_14, %c0_15], %16 {strides = array<i32>} : memref<16x32xbf16, #tpu.memory_space<vmem>>, vector<16x32xbf16>,
    } else {
    }
    return
  }
  func.func @transform_0(%arg0: i32, %arg1: i32, %arg2: i32) -> (i32, i32) {
    %c0_i32 = arith.constant 0 : i32
    return %arg0, %arg2 : i32, i32
  }
  func.func @transform_1(%arg0: i32, %arg1: i32, %arg2: i32) -> (i32, i32) {
    %c0_i32 = arith.constant 0 : i32
    return %arg2, %arg1 : i32, i32
  }
  func.func @transform_2(%arg0: i32, %arg1: i32, %arg2: i32) -> (i32, i32) {
    %c0_i32 = arith.constant 0 : i32
    %c0_i32_0 = arith.constant 0 : i32
    return %c0_i32, %arg1 : i32, i32
  }
  func.func @transform_3(%arg0: i32, %arg1: i32, %arg2: i32) -> (i32, i32) {
    %c0_i32 = arith.constant 0 : i32
    return %arg0, %arg1 : i32, i32
  }
}

module attributes {stable_mosaic.version = 11 : i64} {
  func.func @_mha_split_kernel(%arg0: i32, %arg1: memref<1x8x32xbf16, #tpu.memory_space<vmem>>, %arg2: memref<1x8x64xbf16, #tpu.memory_space<vmem>>, %arg3: memref<1x1x8xf32, #tpu.memory_space<vmem>>, %arg4: memref<32x32xbf16, #tpu.memory_space<vmem>>, %arg5: memref<1x32xf32, #tpu.memory_space<vmem>>, %arg6: memref<1x8x32xbf16, #tpu.memory_space<vmem>>, %arg7: memref<1x32xf32, #tpu.memory_space<vmem>>, %arg8: memref<1x32xf32, #tpu.memory_space<vmem>>, %arg9: memref<1x8x32xbf16, #tpu.memory_space<vmem>>) attributes {dimension_semantics = [#tpu.dimension_semantics<parallel>], iteration_bounds = array<i64: 2>, scalar_prefetch = 0 : i64, scratch_operands = 0 : i64, tpu.core_type = #tpu.core_type<tc>, window_params = [{transform_indices = @transform_0, window_bounds = array<i64: 1, 8, 32>}, {transform_indices = @transform_1, window_bounds = array<i64: 1, 8, 64>}, {transform_indices = @transform_2, window_bounds = array<i64: 1, 1, 8>}, {pipeline_mode = #tpu.pipeline_mode<synchronous>, transform_indices = @transform_3, window_bounds = array<i64: 32, 32>}, {pipeline_mode = #tpu.pipeline_mode<synchronous>, transform_indices = @transform_4, window_bounds = array<i64: 1, 32>}, {transform_indices = @transform_5, window_bounds = array<i64: 1, 8, 32>}, {pipeline_mode = #tpu.pipeline_mode<synchronous>, transform_indices = @transform_6, window_bounds = array<i64: 1, 32>}, {pipeline_mode = #tpu.pipeline_mode<synchronous>, transform_indices = @transform_7, window_bounds = array<i64: 1, 32>}, {transform_indices = @transform_8, window_bounds = array<i64: 1, 8, 32>}]} {
    %c0 = arith.constant 0 : index
    %c0_0 = arith.constant 0 : index
    %c0_1 = arith.constant 0 : index
    %0 = vector.load %arg1[%c0, %c0_0, %c0_1] : memref<1x8x32xbf16, #tpu.memory_space<vmem>>, vector<1x8x32xbf16>
    %1 = vector.shape_cast %0 : vector<1x8x32xbf16> to vector<8x32xbf16>
    %c0_2 = arith.constant 0 : index
    %c0_3 = arith.constant 0 : index
    %c0_4 = arith.constant 0 : index
    %2 = vector.load %arg2[%c0_2, %c0_3, %c0_4] : memref<1x8x64xbf16, #tpu.memory_space<vmem>>, vector<1x8x64xbf16>
    %3 = vector.shape_cast %2 : vector<1x8x64xbf16> to vector<8x64xbf16>
    %c0_5 = arith.constant 0 : index
    %c0_6 = arith.constant 0 : index
    %c0_7 = arith.constant 0 : index
    %4 = vector.load %arg3[%c0_5, %c0_6, %c0_7] : memref<1x1x8xf32, #tpu.memory_space<vmem>>, vector<1x1x8xf32>
    %5 = vector.shape_cast %4 : vector<1x1x8xf32> to vector<1x8xf32>
    %cst = arith.constant 0.000000e+00 : f32
    %6 = vector.broadcast %cst : f32 to vector<8x32xf32>
    %7 = vector.extract_strided_slice %1 {offsets = [0, 0], sizes = [8, 8], strides = [1, 1]} : vector<8x32xbf16> to vector<8x8xbf16>
    %8 = vector.extract_strided_slice %3 {offsets = [0, 0], sizes = [8, 8], strides = [1, 1]} : vector<8x64xbf16> to vector<8x8xbf16>
    %9 = vector.extract_strided_slice %3 {offsets = [0, 32], sizes = [8, 8], strides = [1, 1]} : vector<8x64xbf16> to vector<8x8xbf16>
    %cst_8 = arith.constant dense<0.000000e+00> : vector<8x8xf32>
    %10 = tpu.matmul %7, %8, %cst_8 {dimension_numbers = #tpu.dot_dimension_numbers<[1], [1], [0], [0], [0, 0, 1, 0], [], []>} : vector<8x8xbf16>, vector<8x8xbf16>, vector<8x8xf32> -> vector<8x8xf32>
    %cst_9 = arith.constant 0.353553385 : f32
    %11 = vector.broadcast %cst_9 : f32 to vector<8x8xf32>
    %12 = arith.mulf %10, %11 : vector<8x8xf32>
    %13 = vector.broadcast %5 : vector<1x8xf32> to vector<8x8xf32>
    %14 = arith.addf %12, %13 : vector<8x8xf32>
    %cst_10 = arith.constant dense<0xFF800000> : vector<8xf32>
    %15 = vector.multi_reduction <maximumf>, %14, %cst_10 [1] : vector<8x8xf32> to vector<8xf32>
    %16 = vector.shape_cast %15 : vector<8xf32> to vector<8x1xf32>
    %17 = vector.broadcast %16 : vector<8x1xf32> to vector<8x8xf32>
    %18 = arith.subf %14, %17 : vector<8x8xf32>
    %19 = math.exp %18 : vector<8x8xf32>
    %cst_11 = arith.constant dense<0.000000e+00> : vector<8xf32>
    %20 = vector.multi_reduction <add>, %19, %cst_11 [1] : vector<8x8xf32> to vector<8xf32>
    %21 = vector.shape_cast %20 : vector<8xf32> to vector<8x1xf32>
    %22 = tpu.reciprocal %21 {approx = true} : vector<8x1xf32> -> vector<8x1xf32>
    %23 = vector.broadcast %22 : vector<8x1xf32> to vector<8x8xf32>
    %24 = arith.mulf %19, %23 : vector<8x8xf32>
    %25 = arith.truncf %24 : vector<8x8xf32> to vector<8x8xbf16>
    %cst_12 = arith.constant dense<0.000000e+00> : vector<8x8xf32>
    %26 = tpu.matmul %25, %9, %cst_12 {dimension_numbers = #tpu.dot_dimension_numbers<[1], [0], [0], [1], [0, 0, 1, 1], [], []>} : vector<8x8xbf16>, vector<8x8xbf16>, vector<8x8xf32> -> vector<8x8xf32>
    %c0_13 = arith.constant 0 : index
    %c0_14 = arith.constant 0 : index
    %27 = vector.load %arg4[%c0_13, %c0_14] : memref<32x32xbf16, #tpu.memory_space<vmem>>, vector<8x32xbf16>
    %28 = arith.truncf %26 : vector<8x8xf32> to vector<8x8xbf16>
    %cst_15 = arith.constant dense<0.000000e+00> : vector<8x32xf32>
    %29 = tpu.matmul %28, %27, %cst_15 {dimension_numbers = #tpu.dot_dimension_numbers<[1], [0], [0], [1], [0, 0, 1, 1], [], []>} : vector<8x8xbf16>, vector<8x32xbf16>, vector<8x32xf32> -> vector<8x32xf32>
    %30 = arith.addf %6, %29 : vector<8x32xf32>
    %31 = vector.extract_strided_slice %1 {offsets = [0, 8], sizes = [8, 8], strides = [1, 1]} : vector<8x32xbf16> to vector<8x8xbf16>
    %32 = vector.extract_strided_slice %3 {offsets = [0, 8], sizes = [8, 8], strides = [1, 1]} : vector<8x64xbf16> to vector<8x8xbf16>
    %33 = vector.extract_strided_slice %3 {offsets = [0, 40], sizes = [8, 8], strides = [1, 1]} : vector<8x64xbf16> to vector<8x8xbf16>
    %cst_16 = arith.constant dense<0.000000e+00> : vector<8x8xf32>
    %34 = tpu.matmul %31, %32, %cst_16 {dimension_numbers = #tpu.dot_dimension_numbers<[1], [1], [0], [0], [0, 0, 1, 0], [], []>} : vector<8x8xbf16>, vector<8x8xbf16>, vector<8x8xf32> -> vector<8x8xf32>
    %cst_17 = arith.constant 0.353553385 : f32
    %35 = vector.broadcast %cst_17 : f32 to vector<8x8xf32>
    %36 = arith.mulf %34, %35 : vector<8x8xf32>
    %37 = vector.broadcast %5 : vector<1x8xf32> to vector<8x8xf32>
    %38 = arith.addf %36, %37 : vector<8x8xf32>
    %cst_18 = arith.constant dense<0xFF800000> : vector<8xf32>
    %39 = vector.multi_reduction <maximumf>, %38, %cst_18 [1] : vector<8x8xf32> to vector<8xf32>
    %40 = vector.shape_cast %39 : vector<8xf32> to vector<8x1xf32>
    %41 = vector.broadcast %40 : vector<8x1xf32> to vector<8x8xf32>
    %42 = arith.subf %38, %41 : vector<8x8xf32>
    %43 = math.exp %42 : vector<8x8xf32>
    %cst_19 = arith.constant dense<0.000000e+00> : vector<8xf32>
    %44 = vector.multi_reduction <add>, %43, %cst_19 [1] : vector<8x8xf32> to vector<8xf32>
    %45 = vector.shape_cast %44 : vector<8xf32> to vector<8x1xf32>
    %46 = tpu.reciprocal %45 {approx = true} : vector<8x1xf32> -> vector<8x1xf32>
    %47 = vector.broadcast %46 : vector<8x1xf32> to vector<8x8xf32>
    %48 = arith.mulf %43, %47 : vector<8x8xf32>
    %49 = arith.truncf %48 : vector<8x8xf32> to vector<8x8xbf16>
    %cst_20 = arith.constant dense<0.000000e+00> : vector<8x8xf32>
    %50 = tpu.matmul %49, %33, %cst_20 {dimension_numbers = #tpu.dot_dimension_numbers<[1], [0], [0], [1], [0, 0, 1, 1], [], []>} : vector<8x8xbf16>, vector<8x8xbf16>, vector<8x8xf32> -> vector<8x8xf32>
    %c8 = arith.constant 8 : index
    %c0_21 = arith.constant 0 : index
    %51 = vector.load %arg4[%c8, %c0_21] : memref<32x32xbf16, #tpu.memory_space<vmem>>, vector<8x32xbf16>
    %52 = arith.truncf %50 : vector<8x8xf32> to vector<8x8xbf16>
    %cst_22 = arith.constant dense<0.000000e+00> : vector<8x32xf32>
    %53 = tpu.matmul %52, %51, %cst_22 {dimension_numbers = #tpu.dot_dimension_numbers<[1], [0], [0], [1], [0, 0, 1, 1], [], []>} : vector<8x8xbf16>, vector<8x32xbf16>, vector<8x32xf32> -> vector<8x32xf32>
    %54 = arith.addf %30, %53 : vector<8x32xf32>
    %55 = vector.extract_strided_slice %1 {offsets = [0, 16], sizes = [8, 8], strides = [1, 1]} : vector<8x32xbf16> to vector<8x8xbf16>
    %56 = vector.extract_strided_slice %3 {offsets = [0, 16], sizes = [8, 8], strides = [1, 1]} : vector<8x64xbf16> to vector<8x8xbf16>
    %57 = vector.extract_strided_slice %3 {offsets = [0, 48], sizes = [8, 8], strides = [1, 1]} : vector<8x64xbf16> to vector<8x8xbf16>
    %cst_23 = arith.constant dense<0.000000e+00> : vector<8x8xf32>
    %58 = tpu.matmul %55, %56, %cst_23 {dimension_numbers = #tpu.dot_dimension_numbers<[1], [1], [0], [0], [0, 0, 1, 0], [], []>} : vector<8x8xbf16>, vector<8x8xbf16>, vector<8x8xf32> -> vector<8x8xf32>
    %cst_24 = arith.constant 0.353553385 : f32
    %59 = vector.broadcast %cst_24 : f32 to vector<8x8xf32>
    %60 = arith.mulf %58, %59 : vector<8x8xf32>
    %61 = vector.broadcast %5 : vector<1x8xf32> to vector<8x8xf32>
    %62 = arith.addf %60, %61 : vector<8x8xf32>
    %cst_25 = arith.constant dense<0xFF800000> : vector<8xf32>
    %63 = vector.multi_reduction <maximumf>, %62, %cst_25 [1] : vector<8x8xf32> to vector<8xf32>
    %64 = vector.shape_cast %63 : vector<8xf32> to vector<8x1xf32>
    %65 = vector.broadcast %64 : vector<8x1xf32> to vector<8x8xf32>
    %66 = arith.subf %62, %65 : vector<8x8xf32>
    %67 = math.exp %66 : vector<8x8xf32>
    %cst_26 = arith.constant dense<0.000000e+00> : vector<8xf32>
    %68 = vector.multi_reduction <add>, %67, %cst_26 [1] : vector<8x8xf32> to vector<8xf32>
    %69 = vector.shape_cast %68 : vector<8xf32> to vector<8x1xf32>
    %70 = tpu.reciprocal %69 {approx = true} : vector<8x1xf32> -> vector<8x1xf32>
    %71 = vector.broadcast %70 : vector<8x1xf32> to vector<8x8xf32>
    %72 = arith.mulf %67, %71 : vector<8x8xf32>
    %73 = arith.truncf %72 : vector<8x8xf32> to vector<8x8xbf16>
    %cst_27 = arith.constant dense<0.000000e+00> : vector<8x8xf32>
    %74 = tpu.matmul %73, %57, %cst_27 {dimension_numbers = #tpu.dot_dimension_numbers<[1], [0], [0], [1], [0, 0, 1, 1], [], []>} : vector<8x8xbf16>, vector<8x8xbf16>, vector<8x8xf32> -> vector<8x8xf32>
    %c16 = arith.constant 16 : index
    %c0_28 = arith.constant 0 : index
    %75 = vector.load %arg4[%c16, %c0_28] : memref<32x32xbf16, #tpu.memory_space<vmem>>, vector<8x32xbf16>
    %76 = arith.truncf %74 : vector<8x8xf32> to vector<8x8xbf16>
    %cst_29 = arith.constant dense<0.000000e+00> : vector<8x32xf32>
    %77 = tpu.matmul %76, %75, %cst_29 {dimension_numbers = #tpu.dot_dimension_numbers<[1], [0], [0], [1], [0, 0, 1, 1], [], []>} : vector<8x8xbf16>, vector<8x32xbf16>, vector<8x32xf32> -> vector<8x32xf32>
    %78 = arith.addf %54, %77 : vector<8x32xf32>
    %79 = vector.extract_strided_slice %1 {offsets = [0, 24], sizes = [8, 8], strides = [1, 1]} : vector<8x32xbf16> to vector<8x8xbf16>
    %80 = vector.extract_strided_slice %3 {offsets = [0, 24], sizes = [8, 8], strides = [1, 1]} : vector<8x64xbf16> to vector<8x8xbf16>
    %81 = vector.extract_strided_slice %3 {offsets = [0, 56], sizes = [8, 8], strides = [1, 1]} : vector<8x64xbf16> to vector<8x8xbf16>
    %cst_30 = arith.constant dense<0.000000e+00> : vector<8x8xf32>
    %82 = tpu.matmul %79, %80, %cst_30 {dimension_numbers = #tpu.dot_dimension_numbers<[1], [1], [0], [0], [0, 0, 1, 0], [], []>} : vector<8x8xbf16>, vector<8x8xbf16>, vector<8x8xf32> -> vector<8x8xf32>
    %cst_31 = arith.constant 0.353553385 : f32
    %83 = vector.broadcast %cst_31 : f32 to vector<8x8xf32>
    %84 = arith.mulf %82, %83 : vector<8x8xf32>
    %85 = vector.broadcast %5 : vector<1x8xf32> to vector<8x8xf32>
    %86 = arith.addf %84, %85 : vector<8x8xf32>
    %cst_32 = arith.constant dense<0xFF800000> : vector<8xf32>
    %87 = vector.multi_reduction <maximumf>, %86, %cst_32 [1] : vector<8x8xf32> to vector<8xf32>
    %88 = vector.shape_cast %87 : vector<8xf32> to vector<8x1xf32>
    %89 = vector.broadcast %88 : vector<8x1xf32> to vector<8x8xf32>
    %90 = arith.subf %86, %89 : vector<8x8xf32>
    %91 = math.exp %90 : vector<8x8xf32>
    %cst_33 = arith.constant dense<0.000000e+00> : vector<8xf32>
    %92 = vector.multi_reduction <add>, %91, %cst_33 [1] : vector<8x8xf32> to vector<8xf32>
    %93 = vector.shape_cast %92 : vector<8xf32> to vector<8x1xf32>
    %94 = tpu.reciprocal %93 {approx = true} : vector<8x1xf32> -> vector<8x1xf32>
    %95 = vector.broadcast %94 : vector<8x1xf32> to vector<8x8xf32>
    %96 = arith.mulf %91, %95 : vector<8x8xf32>
    %97 = arith.truncf %96 : vector<8x8xf32> to vector<8x8xbf16>
    %cst_34 = arith.constant dense<0.000000e+00> : vector<8x8xf32>
    %98 = tpu.matmul %97, %81, %cst_34 {dimension_numbers = #tpu.dot_dimension_numbers<[1], [0], [0], [1], [0, 0, 1, 1], [], []>} : vector<8x8xbf16>, vector<8x8xbf16>, vector<8x8xf32> -> vector<8x8xf32>
    %c24 = arith.constant 24 : index
    %c0_35 = arith.constant 0 : index
    %99 = vector.load %arg4[%c24, %c0_35] : memref<32x32xbf16, #tpu.memory_space<vmem>>, vector<8x32xbf16>
    %100 = arith.truncf %98 : vector<8x8xf32> to vector<8x8xbf16>
    %cst_36 = arith.constant dense<0.000000e+00> : vector<8x32xf32>
    %101 = tpu.matmul %100, %99, %cst_36 {dimension_numbers = #tpu.dot_dimension_numbers<[1], [0], [0], [1], [0, 0, 1, 1], [], []>} : vector<8x8xbf16>, vector<8x32xbf16>, vector<8x32xf32> -> vector<8x32xf32>
    %102 = arith.addf %78, %101 : vector<8x32xf32>
    %c0_37 = arith.constant 0 : index
    %c0_38 = arith.constant 0 : index
    %103 = vector.load %arg5[%c0_37, %c0_38] : memref<1x32xf32, #tpu.memory_space<vmem>>, vector<1x32xf32>
    %104 = vector.broadcast %103 : vector<1x32xf32> to vector<8x32xf32>
    %105 = arith.addf %102, %104 : vector<8x32xf32>
    %c0_39 = arith.constant 0 : index
    %c0_40 = arith.constant 0 : index
    %c0_41 = arith.constant 0 : index
    %106 = vector.load %arg6[%c0_39, %c0_40, %c0_41] : memref<1x8x32xbf16, #tpu.memory_space<vmem>>, vector<1x8x32xbf16>
    %107 = vector.shape_cast %106 : vector<1x8x32xbf16> to vector<8x32xbf16>
    %108 = arith.extf %107 : vector<8x32xbf16> to vector<8x32xf32>
    %109 = arith.addf %105, %108 : vector<8x32xf32>
    %cst_42 = arith.constant dense<0.000000e+00> : vector<8xf32>
    %110 = vector.multi_reduction <add>, %109, %cst_42 [1] : vector<8x32xf32> to vector<8xf32>
    %111 = vector.shape_cast %110 : vector<8xf32> to vector<8x1xf32>
    %cst_43 = arith.constant 3.200000e+01 : f32
    %112 = vector.broadcast %cst_43 : f32 to vector<8x1xf32>
    %113 = arith.divf %111, %112 : vector<8x1xf32>
    %114 = vector.broadcast %113 : vector<8x1xf32> to vector<8x32xf32>
    %115 = arith.subf %109, %114 : vector<8x32xf32>
    %116 = arith.mulf %115, %115 : vector<8x32xf32>
    %cst_44 = arith.constant dense<0.000000e+00> : vector<8xf32>
    %117 = vector.multi_reduction <add>, %116, %cst_44 [1] : vector<8x32xf32> to vector<8xf32>
    %118 = vector.shape_cast %117 : vector<8xf32> to vector<8x1xf32>
    %cst_45 = arith.constant 3.200000e+01 : f32
    %119 = vector.broadcast %cst_45 : f32 to vector<8x1xf32>
    %120 = arith.divf %118, %119 : vector<8x1xf32>
    %121 = vector.broadcast %113 : vector<8x1xf32> to vector<8x32xf32>
    %122 = arith.subf %109, %121 : vector<8x32xf32>
    %cst_46 = arith.constant 9.99999974E-6 : f32
    %123 = vector.broadcast %cst_46 : f32 to vector<8x1xf32>
    %124 = arith.addf %120, %123 : vector<8x1xf32>
    %125 = math.rsqrt %124 : vector<8x1xf32>
    %126 = vector.broadcast %125 : vector<8x1xf32> to vector<8x32xf32>
    %127 = arith.mulf %122, %126 : vector<8x32xf32>
    %c0_47 = arith.constant 0 : index
    %c0_48 = arith.constant 0 : index
    %128 = vector.load %arg7[%c0_47, %c0_48] : memref<1x32xf32, #tpu.memory_space<vmem>>, vector<1x32xf32>
    %129 = vector.broadcast %128 : vector<1x32xf32> to vector<8x32xf32>
    %130 = arith.mulf %127, %129 : vector<8x32xf32>
    %c0_49 = arith.constant 0 : index
    %c0_50 = arith.constant 0 : index
    %131 = vector.load %arg8[%c0_49, %c0_50] : memref<1x32xf32, #tpu.memory_space<vmem>>, vector<1x32xf32>
    %132 = vector.broadcast %131 : vector<1x32xf32> to vector<8x32xf32>
    %133 = arith.addf %130, %132 : vector<8x32xf32>
    %134 = arith.truncf %133 : vector<8x32xf32> to vector<8x32xbf16>
    %c0_51 = arith.constant 0 : index
    %c0_52 = arith.constant 0 : index
    %c0_53 = arith.constant 0 : index
    %135 = vector.load %arg9[%c0_51, %c0_52, %c0_53] : memref<1x8x32xbf16, #tpu.memory_space<vmem>>, vector<1x8x32xbf16>
    %136 = vector.shape_cast %135 : vector<1x8x32xbf16> to vector<8x32xbf16>
    %137 = vector.shape_cast %134 : vector<8x32xbf16> to vector<1x8x32xbf16>
    tpu.vector_store %arg9[%c0_51, %c0_52, %c0_53], %137 {strides = array<i32>} : memref<1x8x32xbf16, #tpu.memory_space<vmem>>, vector<1x8x32xbf16>,
    return
  }
  func.func @transform_0(%arg0: i32) -> (i32, i32, i32) {
    %c0_i32 = arith.constant 0 : i32
    %c0_i32_0 = arith.constant 0 : i32
    %c0_i32_1 = arith.constant 0 : i32
    return %arg0, %c0_i32, %c0_i32_0 : i32, i32, i32
  }
  func.func @transform_1(%arg0: i32) -> (i32, i32, i32) {
    %c0_i32 = arith.constant 0 : i32
    %c0_i32_0 = arith.constant 0 : i32
    %c0_i32_1 = arith.constant 0 : i32
    return %arg0, %c0_i32, %c0_i32_0 : i32, i32, i32
  }
  func.func @transform_2(%arg0: i32) -> (i32, i32, i32) {
    %c0_i32 = arith.constant 0 : i32
    %c0_i32_0 = arith.constant 0 : i32
    %c0_i32_1 = arith.constant 0 : i32
    return %arg0, %c0_i32, %c0_i32_0 : i32, i32, i32
  }
  func.func @transform_3(%arg0: i32) -> (i32, i32) {
    %c0_i32 = arith.constant 0 : i32
    %c0_i32_0 = arith.constant 0 : i32
    %c0_i32_1 = arith.constant 0 : i32
    return %c0_i32, %c0_i32_0 : i32, i32
  }
  func.func @transform_4(%arg0: i32) -> (i32, i32) {
    %c0_i32 = arith.constant 0 : i32
    %c0_i32_0 = arith.constant 0 : i32
    %c0_i32_1 = arith.constant 0 : i32
    return %c0_i32, %c0_i32_0 : i32, i32
  }
  func.func @transform_5(%arg0: i32) -> (i32, i32, i32) {
    %c0_i32 = arith.constant 0 : i32
    %c0_i32_0 = arith.constant 0 : i32
    %c0_i32_1 = arith.constant 0 : i32
    return %arg0, %c0_i32, %c0_i32_0 : i32, i32, i32
  }
  func.func @transform_6(%arg0: i32) -> (i32, i32) {
    %c0_i32 = arith.constant 0 : i32
    %c0_i32_0 = arith.constant 0 : i32
    %c0_i32_1 = arith.constant 0 : i32
    return %c0_i32, %c0_i32_0 : i32, i32
  }
  func.func @transform_7(%arg0: i32) -> (i32, i32) {
    %c0_i32 = arith.constant 0 : i32
    %c0_i32_0 = arith.constant 0 : i32
    %c0_i32_1 = arith.constant 0 : i32
    return %c0_i32, %c0_i32_0 : i32, i32
  }
  func.func @transform_8(%arg0: i32) -> (i32, i32, i32) {
    %c0_i32 = arith.constant 0 : i32
    %c0_i32_0 = arith.constant 0 : i32
    %c0_i32_1 = arith.constant 0 : i32
    return %arg0, %c0_i32, %c0_i32_0 : i32, i32, i32
  }
}

</mosaic_0001>

<bundles_post_ra>
// kernel: transformer_forward.25
= control target key start
LH: loop header
LB: loop body
LE: loop exit
PB: predicated region body
PF: predicated region fallthrough
CT: control target
= control target key end

     0   :  { %v155_v0 = vmov 0.0   ;;  %vm156_vm0 = vmmov 0   ;;  %vm46_vm1 = vcmask 261120   ;;  %s192_s1 = inlined_call_operand.vmem [shape: bf16[32,128], index: 1, kind: input, shape index: {}]   ;;  %s193_s0 = inlined_call_operand.vmem [shape: bf16[16,32], index: 0, kind: input, shape index: {}]   ;;  %s194_s2 = inlined_call_operand.vmem [shape: f32[1,128], index: 2, kind: input, shape index: {}]   ;;  %s195_s3 = inlined_call_operand.vmem [shape: bf16[16,128], index: 3, kind: output, shape index: {}]  }
   0x1   :  { %142 = vmatprep.subr.bf16.mxu0 %v155_v0  ;;  %v152_v1 = vld [vmem:[%s192_s1 + $0x8] sm:$0xff]   ;;  %146 = vmatprep.mubr.msk.bf16.mxu0 %vm156_vm0, %v155_v0  ;;  %v153_v2 = vld [vmem:[%s192_s1] sm:$0xff]  }
   0x2   :  { %143 = vmatpush3.bf16.msra.mxu0 %v152_v1  ;;  %v154_v3 = vld [vmem:[%s193_s0] sm:$0xff]  }
   0x3   :  { %144 = vmatprep.subr.bf16.mxu0 %v155_v0  ;;  %v129_v5 = vld [vmem:[%s194_s2] ss:$0 sm:$0xff] }
   0x6   :  { %145 = vmatpush3.bf16.msra.mxu0 %v153_v2 }
   0x9   :  { %147 = vmatmul.mubr.msk.bf16.vlgmr.msra.gmra.mxu0 %vm46_vm1, %v154_v3 }
  0xc9   :  { %v84_v4 = vpop.f32.mrf.mxu0 }
  0xca   :  { %v107_v7 = vadd.f32 %v129_v5, %v84_v4 }
  0xcb   :  { %v148_v6 = vpop.f32.mrf.mxu0 }
  0xcc   :  { %v109_v11 = vmax.f32 %v107_v7, 0.0 }
  0xcd   :  { %v87_v8 = vpop.f32.mrf.mxu0 }
  0xce   :  { %v108_v9 = vadd.f32 %v129_v5, %v87_v8 }
  0xcf   :  { %v149_v10 = vpop.f32.mrf.mxu0 }
  0xd0   :  { %v110_v12 = vmax.f32 %v108_v9, 0.0 }
  0xd2   :  { %v137_v13 = vpack.c.bf16 %v110_v12, %v109_v11 }
  0xd4   :  { %138 = vst [vmem:[%s195_s3] sm:$0xff] %v137_v13  }

// kernel: transformer_forward.23
= control target key start
LH: loop header
LB: loop body
LE: loop exit
PB: predicated region body
PF: predicated region fallthrough
CT: control target
= control target key end

     0   :  { %vm19_vm0 = vcmask 785408   ;;  %v151_v0 = vmov 0.0   ;;  %vm152_vm1 = vmmov 0   ;;  %vm47_vm2 = vcmask 261120   ;;  %s195_s1 = inlined_call_operand.vmem [shape: bf16[32,96], index: 1, kind: input, shape index: {}]   ;;  %s196_s0 = inlined_call_operand.vmem [shape: bf16[16,32], index: 0, kind: input, shape index: {}]   ;;  %s197_s2 = inlined_call_operand.vmem [shape: f32[1,96], index: 2, kind: input, shape index: {}]   ;;  %s198_s3 = inlined_call_operand.vmem [shape: bf16[16,96], index: 3, kind: output, shape index: {}]  }
   0x1   :  { %138 = vmatprep.subr.bf16.mxu0 %v151_v0  ;;  %v148_v1 = vld [vmem:[%s195_s1 + $0x8] sm:$0xff]   ;;  %142 = vmatprep.mubr.msk.bf16.mxu0 %vm152_vm1, %v151_v0  ;;  %20 = vst.msk [vmem:[#allocation2] sm:$0xff] %vm19_vm0, %v151_v0  ;;  %21 = vst.msk [vmem:[#allocation2 + $0x8] sm:$0xff] %vm19_vm0, %v151_v0  ;;  %v149_v2 = vld [vmem:[%s195_s1] sm:$0xff]   ;;  %vm119_vm3 = vcmask 781312  }
   0x2   :  { %139 = vmatpush3.bf16.msra.mxu0 %v148_v1  ;;  %v150_v3 = vld [vmem:[%s196_s0] sm:$0xff]  }
   0x3   :  { %140 = vmatprep.subr.bf16.mxu0 %v151_v0  ;;  %v130_v12 = vld [vmem:[%s197_s2] ss:$0 sm:$0xff] }
   0x6   :  { %141 = vmatpush3.bf16.msra.mxu0 %v149_v2 }
   0x8   :  { %v22_v4 = vld [vmem:[#allocation2] sm:$0xff]  ;;  %v23_v8 = vld [vmem:[#allocation2 + $0x8] sm:$0xff] }
   0x9   :  { %143 = vmatmul.mubr.msk.bf16.vlgmr.msra.gmra.mxu0 %vm47_vm2, %v150_v3 }
  0xc9   :  { %v85_v5 = vpop.f32.mrf.mxu0 }
  0xca   :  { %v92_v6 = vadd.f32 %v85_v5, %v22_v4 }
  0xcb   :  { %v144_v7 = vpop.f32.mrf.mxu0 }
  0xcc   :  { %95 = vst.msk [vmem:[#allocation2] sm:$0xff] %vm19_vm0, %v92_v6 }
  0xcd   :  { %v88_v9 = vpop.f32.mrf.mxu0 }
  0xce   :  { %v93_v10 = vadd.f32 %v88_v9, %v23_v8 }
  0xcf   :  { %v145_v11 = vpop.f32.mrf.mxu0 }
  0xd0   :  { %96 = vst.msk [vmem:[#allocation2 + $0x8] sm:$0xff] %vm19_vm0, %v93_v10 }
  0xd3   :  { %v100_v13 = vld [vmem:[#allocation2] sm:$0xff] }
  0xd4   :  { %v109_v14 = vadd.f32 %v130_v12, %v100_v13 }
  0xd6   :  { %v133_v15 = vpack.c.bf16 %v109_v14, %v109_v14 }
  0xd7   :  { %v101_v16 = vld [vmem:[#allocation2 + $0x8] sm:$0xff] }
  0xd8   :  { %120 = vst.msk [vmem:[%s198_s3] sm:$0xf] %vm119_vm3, %v133_v15  ;;  %v110_v17 = vadd.f32 %v130_v12, %v101_v16 }
  0xda   :  { %v134_v18 = vpack.c.bf16 %v110_v17, %v110_v17 }
  0xdc   :  { %121 = vst.msk [vmem:[%s198_s3 + $0x4] sm:$0xf] %vm119_vm3, %v134_v18 }

// kernel: transformer_forward.26
= control target key start
LH: loop header
LB: loop body
LE: loop exit
PB: predicated region body
PF: predicated region fallthrough
CT: control target
= control target key end

     0   :  { %vm28_vm0 = vcmask 261120   ;;  %v295_v0 = vmov 0.0   ;;  %vm296_vm1 = vmmov 0   ;;  %vm224_vm2 = vcmask 257024   ;;  %s385_s1 = inlined_call_operand.vmem [shape: bf16[128,32], index: 1, kind: input, shape index: {}]   ;;  %s386_s0 = inlined_call_operand.vmem [shape: bf16[16,128], index: 0, kind: input, shape index: {}]   ;;  %s387_s3 = inlined_call_operand.vmem [shape: bf16[16,32], index: 3, kind: input, shape index: {}]   ;;  %s388_s2 = inlined_call_operand.vmem [shape: f32[1,32], index: 2, kind: input, shape index: {}]   ;;  %s389_s4 = inlined_call_operand.vmem [shape: f32[1,32], index: 4, kind: input, shape index: {}]   ;;  %s390_s5 = inlined_call_operand.vmem [shape: f32[1,32], index: 5, kind: input, shape index: {}]   ;;  %s391_s6 = inlined_call_operand.vmem [shape: bf16[16,32], index: 6, kind: output, shape index: {}]  }
   0x1   :  { %260 = vmatprep.subr.bf16.mxu0 %v295_v0  ;;  %v282_v1 = vld [vmem:[%s385_s1 + $0x38] sm:$0xff]   ;;  %276 = vmatprep.mubr.msk.bf16.mxu0 %vm296_vm1, %v295_v0  ;;  %29 = vst.msk [vmem:[#allocation2] sm:$0xff] %vm28_vm0, %v295_v0  ;;  %30 = vst.msk [vmem:[#allocation2 + $0x8] sm:$0xff] %vm28_vm0, %v295_v0  ;;  %v283_v2 = vld [vmem:[%s385_s1 + $0x30] sm:$0xff]  }
   0x2   :  { %261 = vmatpush3.bf16.msra.mxu0 %v282_v1  ;;  %v284_v3 = vld [vmem:[%s385_s1 + $0x28] sm:$0xff]   ;;  %v285_v4 = vld [vmem:[%s385_s1 + $0x20] sm:$0xff]   ;;  %v286_v5 = vld [vmem:[%s385_s1 + $0x18] sm:$0xff]  }
   0x3   :  { %262 = vmatprep.subr.bf16.mxu0 %v295_v0  ;;  %v287_v6 = vld [vmem:[%s385_s1 + $0x10] sm:$0xff]   ;;  %v288_v7 = vld [vmem:[%s385_s1 + $0x8] sm:$0xff]   ;;  %v289_v8 = vld [vmem:[%s385_s1] sm:$0xff]  }
   0x4   :  { %v290_v9 = vld [vmem:[%s386_s0] sm:$0xff]  }
   0x5   :  { %v248_v18 = vld [vmem:[%s387_s3] sm:$0xff]  }
   0x6   :  { %263 = vmatpush3.bf16.msra.mxu0 %v283_v2  ;;  %v240_v19 = vld [vmem:[%s388_s2] ss:$0 sm:$0xff]  ;;  %v249_v20 = vunpack.c.l.bf16 %v248_v18  ;;  %v250_v24 = vunpack.c.h.bf16 %v248_v18 }
   0x7   :  { %264 = vmatprep.subr.bf16.mxu0 %v295_v0  ;;  %v241_v47 = vld [vmem:[%s389_s4] ss:$0 sm:$0xff] }
   0x8   :  { %v31_v10 = vld [vmem:[#allocation2] sm:$0xff]  ;;  %v32_v14 = vld [vmem:[#allocation2 + $0x8] sm:$0xff] }
   0x9   :  { %v242_v49 = vld [vmem:[%s390_s5] ss:$0 sm:$0xff] }
   0xa   :  { %265 = vmatpush3.bf16.msra.mxu0 %v284_v3 }
   0xb   :  { %266 = vmatprep.subr.bf16.mxu0 %v295_v0 }
   0xe   :  { %267 = vmatpush3.bf16.msra.mxu0 %v285_v4 }
   0xf   :  { %268 = vmatprep.subr.bf16.mxu0 %v295_v0 }
  0x12   :  { %269 = vmatpush3.bf16.msra.mxu0 %v286_v5 }
  0x13   :  { %270 = vmatprep.subr.bf16.mxu0 %v295_v0 }
  0x16   :  { %271 = vmatpush3.bf16.msra.mxu0 %v287_v6 }
  0x17   :  { %272 = vmatprep.subr.bf16.mxu0 %v295_v0 }
  0x1a   :  { %273 = vmatpush3.bf16.msra.mxu0 %v288_v7 }
  0x1b   :  { %274 = vmatprep.subr.bf16.mxu0 %v295_v0 }
  0x1e   :  { %275 = vmatpush3.bf16.msra.mxu0 %v289_v8 }
  0x21   :  { %277 = vmatmul.mubr.bf16.vlgmr.msra.gmra.mxu0 %v290_v9 }
  0xe1   :  { %v139_v11 = vpop.f32.mrf.mxu0 }
  0xe2   :  { %v146_v12 = vadd.f32 %v139_v11, %v31_v10 }
  0xe3   :  { %v278_v13 = vpop.f32.mrf.mxu0 }
  0xe4   :  { %149 = vst.msk [vmem:[#allocation2] sm:$0xff] %vm28_vm0, %v146_v12 }
  0xe5   :  { %v142_v15 = vpop.f32.mrf.mxu0 }
  0xe6   :  { %v147_v16 = vadd.f32 %v142_v15, %v32_v14 }
  0xe7   :  { %v279_v17 = vpop.f32.mrf.mxu0 }
  0xe8   :  { %150 = vst.msk [vmem:[#allocation2 + $0x8] sm:$0xff] %vm28_vm0, %v147_v16 }
  0xeb   :  { %v154_v21 = vld [vmem:[#allocation2] sm:$0xff] }
  0xec   :  { %v163_v22 = vadd.f32 %v240_v19, %v154_v21 }
  0xee   :  { %v169_v23 = vadd.f32 %v249_v20, %v163_v22 }
  0xef   :  { %v155_v25 = vld [vmem:[#allocation2 + $0x8] sm:$0xff] }
  0xf0   :  { %v171_v26 = vsel %vm28_vm0, %v169_v23, 0.0  ;;  %v164_v27 = vadd.f32 %v240_v19, %v155_v25 }
  0xf1   :  { %172 = vadd.xlane.f32.xlu0 %v171_v26 }
  0xf2   :  { %v170_v28 = vadd.f32 %v250_v24, %v164_v27 }
  0xf4   :  { %v174_v29 = vsel %vm28_vm0, %v170_v28, 0.0 }
  0xf5   :  { %175 = vadd.xlane.f32.xlu0 %v174_v29 }
 0x17a   :  { %v173_v30 = vpop.xlane.xlu0 %172 }
 0x17b   :  { %v178_v31 = vmul.f32 0.03125, %v173_v30 }
 0x17d   :  { %v180_v32 = vsub.f32 %v169_v23, %v178_v31 }
 0x17e   :  { %v176_v33 = vpop.xlane.xlu0 %175 }
 0x17f   :  { %v179_v34 = vmul.f32 0.03125, %v176_v33  ;;  %v182_v35 = vmul.f32 %v180_v32, %v180_v32 }
 0x181   :  { %v181_v36 = vsub.f32 %v170_v28, %v179_v34  ;;  %v184_v37 = vsel %vm28_vm0, %v182_v35, 0.0 }
 0x182   :  { %185 = vadd.xlane.f32.xlu1 %v184_v37 }
 0x183   :  { %v183_v38 = vmul.f32 %v181_v36, %v181_v36 }
 0x185   :  { %v187_v39 = vsel %vm28_vm0, %v183_v38, 0.0 }
 0x186   :  { %188 = vadd.xlane.f32.xlu1 %v187_v39 }
 0x20b   :  { %v186_v40 = vpop.xlane.xlu1 %185 }
 0x20c   :  { %v190_v41 = vmul.f32 0.03125, %v186_v40 }
 0x20e   :  { %v192_v42 = vadd.f32 1e-05, %v190_v41 }
 0x20f   :  { %v189_v43 = vpop.xlane.xlu1 %188 }
 0x210   :  { %291 = vrsqrt.f32 %v192_v42  ;;  %v191_v44 = vmul.f32 0.03125, %v189_v43 }
 0x212   :  { %v193_v45 = vadd.f32 1e-05, %v191_v44 }
 0x214   :  { %293 = vrsqrt.f32 %v193_v45 }
 0x21d   :  { %v292_v46 = vpop.eup %291 }
 0x21e   :  { %v196_v48 = vmul.f32 %v292_v46, %v180_v32 }
 0x220   :  { %v205_v50 = vmul.f32 %v241_v47, %v196_v48 }
 0x221   :  { %v294_v51 = vpop.eup %293 }
 0x222   :  { %v214_v52 = vadd.f32 %v242_v49, %v205_v50  ;;  %v197_v53 = vmul.f32 %v294_v51, %v181_v36 }
 0x224   :  { %v245_v54 = vpack.c.bf16 %v214_v52, %v214_v52  ;;  %v206_v55 = vmul.f32 %v241_v47, %v197_v53 }
 0x226   :  { %225 = vst.msk [vmem:[%s391_s6] sm:$0xf] %vm224_vm2, %v245_v54  ;;  %v215_v56 = vadd.f32 %v242_v49, %v206_v55 }
 0x228   :  { %v246_v57 = vpack.c.bf16 %v215_v56, %v215_v56 }
 0x22a   :  { %226 = vst.msk [vmem:[%s391_s6 + $0x4] sm:$0xf] %vm224_vm2, %v246_v57 }

// kernel: transformer_forward.24
= control target key start
LH: loop header
LB: loop body
LE: loop exit
PB: predicated region body
PF: predicated region fallthrough
CT: control target
= control target key end

     0   :  { %s1302_s24 = smov 0   ;;  %s1444_s0 = inlined_call_operand.vmem [shape: bf16[2,8,96], index: 0, kind: input, shape index: {}]   ;;  %s1445_s1 = inlined_call_operand.vmem [shape: f32[2,1,8], index: 1, kind: input, shape index: {}]   ;;  %s1446_s2 = inlined_call_operand.vmem [shape: bf16[32,32], index: 2, kind: input, shape index: {}]   ;;  %s1447_s3 = inlined_call_operand.vmem [shape: f32[1,32], index: 3, kind: input, shape index: {}]   ;;  %s1448_s4 = inlined_call_operand.vmem [shape: bf16[2,8,32], index: 4, kind: input, shape index: {}]   ;;  %s1449_s5 = inlined_call_operand.vmem [shape: f32[1,32], index: 5, kind: input, shape index: {}]   ;;  %s1450_s6 = inlined_call_operand.vmem [shape: f32[1,32], index: 6, kind: input, shape index: {}]   ;;  %s1451_s7 = inlined_call_operand.vmem [shape: bf16[2,8,32], index: 7, kind: output, shape index: {}]  }
   0x1 LB: > { %s1078_s25 = sadd.s32 4294967295, %s1247_s24   ;;  %p1082_p0 = scmp.ge.s32.totalorder %s1247_s24, 1  ;;  %s1247_s24 = sphi %s1302_s24, %s17_s24  }
   0x2   : > { %p253_p1 = scmp.lt.s32.totalorder %s1247_s24, 3 }
   0x4   : > { %p254_p2 = pnand %p1082_p0, %p253_p1 }
   0x5   : > { %p290_p3 = scmp.lt.s32.totalorder (!%p254_p2), %s1078_s25, 1  ;;  %s1251_s30 = smov (!%p254_p2), 96  }
   0x6   : > { %257 = sbr.rel (%p254_p2) target bundleno = 3108 (0xc24), region = 48  ;;  %s1252_s8 = smov (!%p254_p2), 64  }
   0x7   : > { %s1253_s12 = smov (!%p254_p2), 88   ;;  %s1254_s13 = smov (!%p254_p2), 120  }
   0x8   : > { %s1255_s14 = smov (!%p254_p2), 56   ;;  %s1256_s17 = smov (!%p254_p2), 80  }
   0x9   : > { %s1257_s18 = smov (!%p254_p2), 112   ;;  %s1258_s21 = smov (!%p254_p2), 48  }
   0xa   : > { %s1259_s22 = smov (!%p254_p2), 72   ;;  %s1260_s23 = smov (!%p254_p2), 104  }
   0xb   : > { %v1249_v0 = vmov 0.0   ;;  %vm1250_vm0 = vmmov 0   ;;  %s1453_s25 = smov (!%p290_p3, %s1078_s25), 1  ;;  %vm313_vm1 = vcmask 64512   ;;  %vm385_vm2 = vcmask 1043456   ;;  %s1261_s28 = smov 40  }
   0xc   : > { %1129 = vmatprep.subr.bf16.mxu0 %v1249_v0  ;;  %1131 = vmatprep.mubr.msk.bf16.mxu0 %vm1250_vm0, %v1249_v0  ;;  %s1316_s26 = sshll.u32 %s1453_s25, 2  ;;  %s296_s11 = scalar_lea.vmem %s1445_s1, %s1453_s25  ;;  %v543_v43 = vld [vmem:[%s1446_s2 + $0x4] sm:$0xf]  ;;  %v429_v49 = vld [vmem:[%s1446_s2] sm:$0xf]  ;;  %vm970_vm3 = vcmask 261120  }
   0xd   : > { %1135 = vmatprep.subr.bf16.mxu1 %v1249_v0  ;;  %1137 = vmatprep.mubr.msk.bf16.mxu1 %vm1250_vm0, %v1249_v0  ;;  %s293_s29 = scalar_lea.vmem %s1444_s0, %s1316_s26  ;;  %v1334_v6 = vld [vmem:[%s296_s11] ss:$0 sm:$0xff]  ;;  %v549_v44 = vsel %vm385_vm2, %v543_v43, 0  ;;  %v595_v52 = vsel %vm385_vm2, %v429_v49, 0  ;;  %s300_s10 = scalar_lea.vmem %s1448_s4, %s1316_s26  ;;  %vm1002_vm4 = vcmask 257024  }
   0xe   : > { %v306_v1 = vld [vmem:[%s293_s29] sm:$0xf]  ;;  %s304_s19 = scalar_lea.vmem %s1451_s7, %s1316_s26 }
   0xf   : > { %v1322_v2 = vcombine.low %v306_v1, %v306_v1 }
  0x11   : > { %311 = vrot.lane.b32.xlu0 %v1322_v2, %s1251_s30  ;;  %380 = vrot.lane.b32.xlu1 %v1322_v2, %s1252_s8 }
  0x83   : > { %v312_v3 = vpop.permute.xlu0 %311  ;;  %v381_v13 = vpop.permute.xlu1 %380 }
  0x84   : > { %v318_v4 = vsel %vm313_vm1, %v312_v3, 0  ;;  %v387_v14 = vsel %vm385_vm2, %v381_v13, 0 }
  0x85   : > { %1130 = vmatpush3.bf16.xpose.msra.mxu0 %v318_v4  ;;  %1136 = vmatpush3.bf16.msra.mxu1 %v387_v14 }
  0x86   : > { %1147 = vmatprep.subr.bf16.mxu0 %v1249_v0  ;;  %1141 = vmatprep.subr.bf16.mxu1 %v1249_v0 }
  0x8c   : > { %1132 = vmatmul.mubr.msk.bf16.vlgmr.msra.gmra.mxu0 %vm313_vm1, %v306_v1 }
  0x8d   : > { %1149 = vmatprep.mubr.msk.bf16.mxu0 %vm1250_vm0, %v1249_v0 }
 0x14c   : > { %v354_v5 = vpop.f32.mrf.mxu0 }
 0x14d   : > { %v360_v7 = vmul.f32 0.35355338, %v354_v5 }
 0x14e   : > { %v1133_v8 = vpop.f32.mrf.mxu0 }
 0x14f   : > { %v367_v9 = vadd.f32 %v1334_v6, %v360_v7 }
 0x150   : > { %v357_v10 = vpop.f32.mrf.mxu0 }
 0x151   : > { %v368_v11 = vsel %vm313_vm1, %v367_v9, -inf }
 0x152   : > { %369 = vmax.xlane.f32.xlu0 %v368_v11  ;;  %v1134_v12 = vpop.f32.mrf.mxu0 }
 0x1db   : > { %v370_v15 = vpop.xlane.xlu0 %369 }
 0x1dc   : > { %v371_v16 = vsub.f32 %v367_v9, %v370_v15 }
 0x1de   : > { %v372_v17 = vmul.f32 1.442695, %v371_v16 }
 0x1e0   : > { %1223 = vpow2.f32 %v372_v17 }
 0x1ed   : > { %v1224_v18 = vpop.eup %1223 }
 0x1ee   : > { %v374_v19 = vsel %vm313_vm1, %v1224_v18, 0.0 }
 0x1ef   : > { %375 = vadd.xlane.f32.xlu1 %v374_v19 }
 0x200   : > { %433 = vrot.lane.b32.xlu1 %v1322_v2, %s1253_s12 }
 0x204   : > { %431 = vrot.lane.b32.xlu1 %v1322_v2, %s1254_s13 }
 0x278   : > { %v376_v20 = vpop.xlane.xlu1 %375 }
 0x279   : > { %1225 = vrcp.f32 %v376_v20 }
 0x27c   : > { %v434_v22 = vpop.permute.xlu1 %433 }
 0x27d   : > { %v439_v24 = vsel %vm313_vm1, %v434_v22, 0 }
 0x280   : > { %v432_v26 = vpop.permute.xlu1 %431 }
 0x286   : > { %v1226_v21 = vpop.eup %1225 }
 0x287   : > { %v378_v23 = vmul.f32 %v1226_v21, %v1224_v18 }
 0x289   : > { %v379_v25 = vpack.c.bf16 %v378_v23, %v378_v23 }
 0x28b   : > { %1138 = vmatmul.mubr.msk.bf16.vlgmr.msra.gmra.mxu1 %vm313_vm1, %v379_v25 }
 0x28c   : > { %1142 = vmatpush3.bf16.xpose.msra.mxu1 %v439_v24  ;;  %1143 = vmatprep.mubr.msk.bf16.mxu1 %vm1250_vm0, %v1249_v0 }
 0x28d   : > { %1153 = vmatprep.subr.bf16.mxu1 %v1249_v0 }
 0x293   : > { %1144 = vmatmul.mubr.msk.bf16.vlgmr.msra.gmra.mxu1 %vm313_vm1, %v432_v26 }
 0x294   : > { %1155 = vmatprep.mubr.msk.bf16.mxu1 %vm1250_vm0, %v1249_v0  ;;  %1154 = vmatpush3.bf16.msra.mxu1 %v549_v44 }
 0x295   : > { %1165 = vmatprep.subr.bf16.mxu1 %v1249_v0 }
 0x34b   : > { %v423_v27 = vpop.f32.mrf.mxu1 }
 0x34c   : > { %v430_v53 = vpack.c.bf16 %v423_v27, %v423_v27 }
 0x34d   : > { %v1139_v28 = vpop.f32.mrf.mxu1 }
 0x34f   : > { %v426_v29 = vpop.f32.mrf.mxu1 }
 0x351   : > { %v1140_v30 = vpop.f32.mrf.mxu1 }
 0x352   : > { %v749_v30 = vld [vmem:[%s1446_s2 + $0x8] sm:$0xf] }
 0x353   : > { %v475_v31 = vpop.f32.mrf.mxu1 }
 0x354   : > { %v481_v32 = vmul.f32 0.35355338, %v475_v31  ;;  %v755_v31 = vsel %vm385_vm2, %v749_v30, 0 }
 0x355   : > { %v1145_v33 = vpop.f32.mrf.mxu1 }
 0x356   : > { %v482_v34 = vadd.f32 %v1334_v6, %v481_v32 }
 0x357   : > { %v478_v35 = vpop.f32.mrf.mxu1 }
 0x358   : > { %v483_v36 = vsel %vm313_vm1, %v482_v34, -inf }
 0x359   : > { %484 = vmax.xlane.f32.xlu1 %v483_v36  ;;  %v1146_v37 = vpop.f32.mrf.mxu1 }
 0x3e2   : > { %v485_v38 = vpop.xlane.xlu1 %484 }
 0x3e3   : > { %v486_v39 = vsub.f32 %v482_v34, %v485_v38 }
 0x3e5   : > { %v487_v40 = vmul.f32 1.442695, %v486_v39 }
 0x3e7   : > { %1227 = vpow2.f32 %v487_v40 }
 0x3f4   : > { %v1228_v41 = vpop.eup %1227 }
 0x3f5   : > { %v489_v42 = vsel %vm313_vm1, %v1228_v41, 0.0 }
 0x3f6   : > { %490 = vadd.xlane.f32.xlu0 %v489_v42 }
 0x40c   : > { %495 = vrot.lane.b32.xlu0 %v1322_v2, %s1255_s14 }
 0x410   : > { %639 = vrot.lane.b32.xlu0 %v1322_v2, %s1256_s17 }
 0x414   : > { %637 = vrot.lane.b32.xlu0 %v1322_v2, %s1257_s18 }
 0x47f   : > { %v491_v45 = vpop.xlane.xlu0 %490 }
 0x480   : > { %1229 = vrcp.f32 %v491_v45 }
 0x483   : > { %v496_v46 = vpop.permute.xlu0 %495 }
 0x484   : > { %v501_v47 = vsel %vm385_vm2, %v496_v46, 0 }
 0x485   : > { %1148 = vmatpush3.bf16.msra.mxu0 %v501_v47 }
 0x486   : > { %1159 = vmatprep.subr.bf16.mxu0 %v1249_v0 }
 0x487   : > { %v640_v54 = vpop.permute.xlu0 %639 }
 0x488   : > { %v645_v57 = vsel %vm313_vm1, %v640_v54, 0 }
 0x48b   : > { %v638_v62 = vpop.permute.xlu0 %637 }
 0x48d   : > { %v1230_v48 = vpop.eup %1229 }
 0x48e   : > { %v493_v50 = vmul.f32 %v1230_v48, %v1228_v41 }
 0x490   : > { %v494_v51 = vpack.c.bf16 %v493_v50, %v493_v50 }
 0x492   : > { %1150 = vmatmul.mubr.msk.bf16.vlgmr.msra.gmra.mxu0 %vm313_vm1, %v494_v51 }
 0x493   : > { %1160 = vmatpush3.bf16.msra.mxu0 %v595_v52  ;;  %1161 = vmatprep.mubr.msk.bf16.mxu0 %vm1250_vm0, %v1249_v0  ;;  %v910_v52 = vld [vmem:[%s1446_s2 + $0xc] sm:$0xf] }
 0x494   : > { %1171 = vmatprep.subr.bf16.mxu0 %v1249_v0 }
 0x49a   : > { %1162 = vmatmul.mubr.msk.bf16.vlgmr.msra.gmra.mxu0 %vm313_vm1, %v430_v53  ;;  %v916_v53 = vsel %vm385_vm2, %v910_v52, 0 }
 0x49b   : > { %1173 = vmatprep.mubr.msk.bf16.mxu0 %vm1250_vm0, %v1249_v0 }
 0x552   : > { %v537_v55 = vpop.f32.mrf.mxu0 }
 0x553   : > { %v544_v56 = vpack.c.bf16 %v537_v55, %v537_v55 }
 0x554   : > { %v1151_v58 = vpop.f32.mrf.mxu0 }
 0x555   : > { %1156 = vmatmul.mubr.msk.bf16.vlgmr.msra.gmra.mxu1 %vm313_vm1, %v544_v56 }
 0x556   : > { %1166 = vmatpush3.bf16.xpose.msra.mxu1 %v645_v57  ;;  %v540_v59 = vpop.f32.mrf.mxu0  ;;  %1167 = vmatprep.mubr.msk.bf16.mxu1 %vm1250_vm0, %v1249_v0 }
 0x557   : > { %1177 = vmatprep.subr.bf16.mxu1 %v1249_v0 }
 0x558   : > { %v1152_v60 = vpop.f32.mrf.mxu0 }
 0x55a   : > { %v1380_v61 = vpop.f32.mrf.mxu0 }
 0x55c   : > { %v1163_v63 = vpop.f32.mrf.mxu0 }
 0x55d   : > { %1168 = vmatmul.mubr.msk.bf16.vlgmr.msra.gmra.mxu1 %vm313_vm1, %v638_v62 }
 0x55e   : > { %v634_v1 = vpop.f32.mrf.mxu0  ;;  %1179 = vmatprep.mubr.msk.bf16.mxu1 %vm1250_vm0, %v1249_v0  ;;  %1178 = vmatpush3.bf16.msra.mxu1 %v755_v31 }
 0x55f   : > { %1189 = vmatprep.subr.bf16.mxu1 %v1249_v0 }
 0x560   : > { %v1164_v3 = vpop.f32.mrf.mxu0 }
 0x561   : > { %v967_v3 = vld [vmem:[%s300_s10] sm:$0xf] }
 0x615   : > { %v1385_v4 = vpop.f32.mrf.mxu1 }
 0x617   : > { %v1157_v5 = vpop.f32.mrf.mxu1 }
 0x618   : > { %v1100_v5 = vld [vmem:[%s1447_s3] ss:$0 sm:$0xff] }
 0x619   : > { %v588_v7 = vpop.f32.mrf.mxu1 }
 0x61b   : > { %v1158_v8 = vpop.f32.mrf.mxu1 }
 0x61c   : > { %v968_v8 = vunpack.c.l.bf16 %v967_v3 }
 0x61d   : > { %v681_v9 = vpop.f32.mrf.mxu1 }
 0x61e   : > { %v687_v10 = vmul.f32 0.35355338, %v681_v9 }
 0x61f   : > { %v1169_v11 = vpop.f32.mrf.mxu1 }
 0x620   : > { %v688_v12 = vadd.f32 %v1334_v6, %v687_v10 }
 0x621   : > { %v684_v13 = vpop.f32.mrf.mxu1 }
 0x622   : > { %v689_v14 = vsel %vm313_vm1, %v688_v12, -inf }
 0x623   : > { %690 = vmax.xlane.f32.xlu1 %v689_v14  ;;  %v1170_v15 = vpop.f32.mrf.mxu1 }
 0x634   : > { %701 = vrot.lane.b32.xlu1 %v1322_v2, %s1258_s21 }
 0x638   : > { %800 = vrot.lane.b32.xlu1 %v1322_v2, %s1259_s22 }
 0x63c   : > { %798 = vrot.lane.b32.xlu1 %v1322_v2, %s1260_s23 }
 0x6ac   : > { %v691_v16 = vpop.xlane.xlu1 %690 }
 0x6ad   : > { %v692_v17 = vsub.f32 %v688_v12, %v691_v16 }
 0x6af   : > { %v693_v18 = vmul.f32 1.442695, %v692_v17 }
 0x6b0   : > { %v702_v21 = vpop.permute.xlu1 %701 }
 0x6b1   : > { %1231 = vpow2.f32 %v693_v18  ;;  %v707_v22 = vsel %vm385_vm2, %v702_v21, 0 }
 0x6b2   : > { %1172 = vmatpush3.bf16.msra.mxu0 %v707_v22 }
 0x6b3   : > { %1183 = vmatprep.subr.bf16.mxu0 %v1249_v0 }
 0x6b4   : > { %v801_v25 = vpop.permute.xlu1 %800 }
 0x6b5   : > { %v806_v27 = vsel %vm313_vm1, %v801_v25, 0 }
 0x6b8   : > { %v799_v29 = vpop.permute.xlu1 %798 }
 0x6be   : > { %v1232_v19 = vpop.eup %1231 }
 0x6bf   : > { %v695_v20 = vsel %vm313_vm1, %v1232_v19, 0.0 }
 0x6c0   : > { %696 = vadd.xlane.f32.xlu0 %v695_v20 }
 0x749   : > { %v697_v23 = vpop.xlane.xlu0 %696 }
 0x74a   : > { %1233 = vrcp.f32 %v697_v23 }
 0x757   : > { %v1234_v24 = vpop.eup %1233 }
 0x758   : > { %v699_v26 = vmul.f32 %v1234_v24, %v1232_v19  ;;  %v1101_v24 = vld [vmem:[%s1449_s5] ss:$0 sm:$0xff] }
 0x75a   : > { %v700_v28 = vpack.c.bf16 %v699_v26, %v699_v26  ;;  %v1102_v26 = vld [vmem:[%s1450_s6] ss:$0 sm:$0xff] }
 0x75c   : > { %1174 = vmatmul.mubr.msk.bf16.vlgmr.msra.gmra.mxu0 %vm313_vm1, %v700_v28 }
 0x75d   : > { %1184 = vmatpush3.bf16.xpose.msra.mxu0 %v806_v27  ;;  %1185 = vmatprep.mubr.msk.bf16.mxu0 %vm1250_vm0, %v1249_v0 }
 0x75e   : > { %1195 = vmatprep.subr.bf16.mxu0 %v1249_v0 }
 0x764   : > { %1186 = vmatmul.mubr.msk.bf16.vlgmr.msra.gmra.mxu0 %vm313_vm1, %v799_v29 }
 0x765   : > { %1197 = vmatprep.mubr.msk.bf16.mxu0 %vm1250_vm0, %v1249_v0  ;;  %1196 = vmatpush3.bf16.msra.mxu0 %v916_v53 }
 0x81c   : > { %v743_v32 = vpop.f32.mrf.mxu0 }
 0x81d   : > { %v750_v33 = vpack.c.bf16 %v743_v32, %v743_v32 }
 0x81e   : > { %v1175_v34 = vpop.f32.mrf.mxu0 }
 0x81f   : > { %1180 = vmatmul.mubr.msk.bf16.vlgmr.msra.gmra.mxu1 %vm313_vm1, %v750_v33 }
 0x820   : > { %v746_v35 = vpop.f32.mrf.mxu0  ;;  %1191 = vmatprep.mubr.msk.bf16.mxu1 %vm1250_vm0, %v1249_v0  ;;  %v632_v0 = vadd.f32 %v1380_v61, %v1385_v4 }
 0x822   : > { %v1176_v36 = vpop.f32.mrf.mxu0 }
 0x824   : > { %v842_v37 = vpop.f32.mrf.mxu0 }
 0x825   : > { %v848_v38 = vmul.f32 0.35355338, %v842_v37 }
 0x826   : > { %v1187_v39 = vpop.f32.mrf.mxu0 }
 0x827   : > { %v849_v40 = vadd.f32 %v1334_v6, %v848_v38 }
 0x828   : > { %v845_v41 = vpop.f32.mrf.mxu0 }
 0x829   : > { %v850_v42 = vsel %vm313_vm1, %v849_v40, -inf }
 0x82a   : > { %851 = vmax.xlane.f32.xlu1 %v850_v42  ;;  %v1188_v43 = vpop.f32.mrf.mxu0 }
 0x8b3   : > { %v852_v44 = vpop.xlane.xlu1 %851 }
 0x8b4   : > { %v853_v45 = vsub.f32 %v849_v40, %v852_v44 }
 0x8b6   : > { %v854_v46 = vmul.f32 1.442695, %v853_v45 }
 0x8b8   : > { %1235 = vpow2.f32 %v854_v46 }
 0x8c5   : > { %v1236_v47 = vpop.eup %1235 }
 0x8c6   : > { %v856_v48 = vsel %vm313_vm1, %v1236_v47, 0.0 }
 0x8c7   : > { %857 = vadd.xlane.f32.xlu0 %v856_v48 }
 0x8dd   : > { %862 = vrot.lane.b32.xlu0 %v1322_v2, %s1261_s28 }
 0x8df   : > { %v791_v6 = vpop.f32.mrf.mxu1 }
 0x8e0   : > { %v797_v49 = vadd.f32 %v791_v6, %v632_v0 }
 0x8e1   : > { %v1181_v50 = vpop.f32.mrf.mxu1 }
 0x8e3   : > { %v794_v51 = vpop.f32.mrf.mxu1 }
 0x8e5   : > { %v1182_v54 = vpop.f32.mrf.mxu1 }
 0x950   : > { %v858_v55 = vpop.xlane.xlu0 %857 }
 0x951   : > { %1237 = vrcp.f32 %v858_v55 }
 0x954   : > { %v863_v56 = vpop.permute.xlu0 %862 }
 0x955   : > { %v868_v2 = vsel %vm385_vm2, %v863_v56, 0 }
 0x956   : > { %1190 = vmatpush3.bf16.msra.mxu1 %v868_v2 }
 0x95e   : > { %v1238_v57 = vpop.eup %1237 }
 0x95f   : > { %v860_v58 = vmul.f32 %v1238_v57, %v1236_v47 }
 0x961   : > { %v861_v59 = vpack.c.bf16 %v860_v58, %v860_v58 }
 0x963   : > { %1192 = vmatmul.mubr.msk.bf16.vlgmr.msra.gmra.mxu1 %vm313_vm1, %v861_v59 }
 0xa23   : > { %v904_v60 = vpop.f32.mrf.mxu1 }
 0xa24   : > { %v911_v61 = vpack.c.bf16 %v904_v60, %v904_v60 }
 0xa25   : > { %v1193_v62 = vpop.f32.mrf.mxu1 }
 0xa26   : > { %1198 = vmatmul.mubr.msk.bf16.vlgmr.msra.gmra.mxu0 %vm313_vm1, %v911_v61 }
 0xa27   : > { %v907_v63 = vpop.f32.mrf.mxu1 }
 0xa29   : > { %v1194_v1 = vpop.f32.mrf.mxu1 }
 0xae6   : > { %v952_v4 = vpop.f32.mrf.mxu0 }
 0xae7   : > { %v958_v7 = vadd.f32 %v952_v4, %v797_v49 }
 0xae8   : > { %v1199_v9 = vpop.f32.mrf.mxu0 }
 0xae9   : > { %v966_v10 = vadd.f32 %v1100_v5, %v958_v7 }
 0xaea   : > { %v955_v11 = vpop.f32.mrf.mxu0 }
 0xaeb   : > { %v969_v12 = vadd.f32 %v968_v8, %v966_v10 }
 0xaec   : > { %v1200_v13 = vpop.f32.mrf.mxu0 }
 0xaed   : > { %v971_v14 = vsel %vm970_vm3, %v969_v12, 0.0 }
 0xaee   : > { %972 = vadd.xlane.f32.xlu0 %v971_v14 }
 0xb77   : > { %v973_v15 = vpop.xlane.xlu0 %972 }
 0xb78   : > { %v975_v16 = vmul.f32 0.03125, %v973_v15 }
 0xb7a   : > { %v976_v17 = vsub.f32 %v969_v12, %v975_v16 }
 0xb7c   : > { %v977_v18 = vmul.f32 %v976_v17, %v976_v17 }
 0xb7e   : > { %v978_v19 = vsel %vm970_vm3, %v977_v18, 0.0 }
 0xb7f   : > { %979 = vadd.xlane.f32.xlu1 %v978_v19 }
 0xc08   : > { %v980_v20 = vpop.xlane.xlu1 %979 }
 0xc09   : > { %v981_v21 = vmul.f32 0.03125, %v980_v20 }
 0xc0b   : > { %v982_v22 = vadd.f32 1e-05, %v981_v21 }
 0xc0d   : > { %1239 = vrsqrt.f32 %v982_v22 }
 0xc1a   : > { %v1240_v23 = vpop.eup %1239 }
 0xc1b   : > { %v984_v25 = vmul.f32 %v1240_v23, %v976_v17 }
 0xc1d   : > { %v992_v27 = vmul.f32 %v1101_v24, %v984_v25 }
 0xc1f   : > { %v1000_v28 = vadd.f32 %v1102_v26, %v992_v27 }
 0xc21   : > { %v1001_v29 = vpack.c.bf16 %v1000_v28, %v1000_v28 }
 0xc23   : > { %1003 = vst.msk [vmem:[%s304_s19] sm:$0xf] %vm1002_vm4, %v1001_v29 }
 0xc24 PF: > { %s17_s24 = sadd.s32 1, %s1247_s24  }
 0xc25   : > { %p14_p4 = scmp.ge.s32.totalorder %s17_s24, 4  }
 0xc27   :  { %16 = sbr.rel (!%p14_p4) target bundleno = 1 (0x1), region = 84 }

// kernel: transformer_forward.34
= control target key start
LH: loop header
LB: loop body
LE: loop exit
PB: predicated region body
PF: predicated region fallthrough
CT: control target
= control target key end

     0   :  { %vm19_vm0 = vcmask 523264   ;;  %v151_v0 = vmov 0.0   ;;  %vm152_vm1 = vmmov 0   ;;  %vm47_vm2 = vcmask 261120   ;;  %s195_s1 = inlined_call_operand.vmem [shape: bf16[32,64], index: 1, kind: input, shape index: {}]   ;;  %s196_s0 = inlined_call_operand.vmem [shape: bf16[16,32], index: 0, kind: input, shape index: {}]   ;;  %s197_s2 = inlined_call_operand.vmem [shape: f32[1,64], index: 2, kind: input, shape index: {}]   ;;  %s198_s3 = inlined_call_operand.vmem [shape: bf16[16,64], index: 3, kind: output, shape index: {}]  }
   0x1   :  { %138 = vmatprep.subr.bf16.mxu0 %v151_v0  ;;  %v148_v1 = vld [vmem:[%s195_s1 + $0x8] sm:$0xff]   ;;  %142 = vmatprep.mubr.msk.bf16.mxu0 %vm152_vm1, %v151_v0  ;;  %20 = vst.msk [vmem:[#allocation2] sm:$0xff] %vm19_vm0, %v151_v0  ;;  %21 = vst.msk [vmem:[#allocation2 + $0x8] sm:$0xff] %vm19_vm0, %v151_v0  ;;  %v149_v2 = vld [vmem:[%s195_s1] sm:$0xff]   ;;  %vm119_vm3 = vcmask 519168  }
   0x2   :  { %139 = vmatpush3.bf16.msra.mxu0 %v148_v1  ;;  %v150_v3 = vld [vmem:[%s196_s0] sm:$0xff]  }
   0x3   :  { %140 = vmatprep.subr.bf16.mxu0 %v151_v0  ;;  %v130_v12 = vld [vmem:[%s197_s2] ss:$0 sm:$0xff] }
   0x6   :  { %141 = vmatpush3.bf16.msra.mxu0 %v149_v2 }
   0x8   :  { %v22_v4 = vld [vmem:[#allocation2] sm:$0xff]  ;;  %v23_v8 = vld [vmem:[#allocation2 + $0x8] sm:$0xff] }
   0x9   :  { %143 = vmatmul.mubr.msk.bf16.vlgmr.msra.gmra.mxu0 %vm47_vm2, %v150_v3 }
  0xc9   :  { %v85_v5 = vpop.f32.mrf.mxu0 }
  0xca   :  { %v92_v6 = vadd.f32 %v85_v5, %v22_v4 }
  0xcb   :  { %v144_v7 = vpop.f32.mrf.mxu0 }
  0xcc   :  { %95 = vst.msk [vmem:[#allocation2] sm:$0xff] %vm19_vm0, %v92_v6 }
  0xcd   :  { %v88_v9 = vpop.f32.mrf.mxu0 }
  0xce   :  { %v93_v10 = vadd.f32 %v88_v9, %v23_v8 }
  0xcf   :  { %v145_v11 = vpop.f32.mrf.mxu0 }
  0xd0   :  { %96 = vst.msk [vmem:[#allocation2 + $0x8] sm:$0xff] %vm19_vm0, %v93_v10 }
  0xd3   :  { %v100_v13 = vld [vmem:[#allocation2] sm:$0xff] }
  0xd4   :  { %v109_v14 = vadd.f32 %v130_v12, %v100_v13 }
  0xd6   :  { %v133_v15 = vpack.c.bf16 %v109_v14, %v109_v14 }
  0xd7   :  { %v101_v16 = vld [vmem:[#allocation2 + $0x8] sm:$0xff] }
  0xd8   :  { %120 = vst.msk [vmem:[%s198_s3] sm:$0xf] %vm119_vm3, %v133_v15  ;;  %v110_v17 = vadd.f32 %v130_v12, %v101_v16 }
  0xda   :  { %v134_v18 = vpack.c.bf16 %v110_v17, %v110_v17 }
  0xdc   :  { %121 = vst.msk [vmem:[%s198_s3 + $0x4] sm:$0xf] %vm119_vm3, %v134_v18 }

// kernel: transformer_forward.45
= control target key start
LH: loop header
LB: loop body
LE: loop exit
PB: predicated region body
PF: predicated region fallthrough
CT: control target
= control target key end

     0   :  { %v174_v1 = vmov 0.0   ;;  %vm175_vm0 = vmmov 0   ;;  %s214_s0 = inlined_call_operand.vmem [shape: bf16[16,32], index: 0, kind: input, shape index: {}]   ;;  %s215_s1 = inlined_call_operand.vmem [shape: bf16[32,128], index: 1, kind: input, shape index: {}]   ;;  %s216_s2 = inlined_call_operand.vmem [shape: f32[1,128], index: 2, kind: input, shape index: {}]   ;;  %s217_s3 = inlined_call_operand.hbm [shape: f32[16,128], index: 3, kind: output, shape index: {}]  }
   0x1   :  { %v149_v0 = vld [vmem:[%s215_s1 + $0x8] sm:$0xff]   ;;  %136 = vmatprep.subr.bf16.mxu0 %v174_v1  ;;  %v150_v2 = vld [vmem:[%s215_s1] sm:$0xff]   ;;  %140 = vmatprep.mubr.msk.bf16.mxu0 %vm175_vm0, %v174_v1 }
   0x2   :  { %137 = vmatpush3.bf16.msra.mxu0 %v149_v0 }
   0x3   :  { %138 = vmatprep.subr.bf16.mxu0 %v174_v1 }
   0x4   :  { %8 = vsyncpa [#allocation4], 0  ;;  %v151_v3 = vld [vmem:[%s214_s0] sm:$0xff]   ;;  %vm47_vm1 = vcmask 261120   ;;  %s176_s20 = smov [#allocation3]  }
   0x5   :  { %v132_v4 = vld [vmem:[%s216_s2] ss:$0 sm:$0xff]  ;;  %s117_s21 = sshll.u32 %s176_s20, 4  ;;  %s118_s21 = int_to_ptr.vmem [resolvable:$true] %s117_s21 }
   0x6   :  { %139 = vmatpush3.bf16.msra.mxu0 %v150_v2  ;;  %s152_s1 = scalar_lea.vmem %s118_s21, 256  ;;  %p157_p1 = scmp.lt.s32.totalorder %s118_s21, %s118_s21 }
   0x7   :  { %p153_p0 = scmp.ne.s32.totalorder %s118_s21, %s152_s1  ;;  %p158_p2 = scmp.lt.s32.totalorder %s152_s1, %s152_s1 }
   0x9   :  { %141 = vmatmul.mubr.msk.bf16.vlgmr.msra.gmra.mxu0 %vm47_vm1, %v151_v3  ;;  %p159_p3 = por %p158_p2, %p157_p1 }
   0xb   :  { %p160_p4 = pnand %p159_p3, %p153_p0 }
  0xc9   :  { %v85_v5 = vpop.f32.mrf.mxu0 }
  0xca   :  { %v108_v6 = vadd.f32 %v132_v4, %v85_v5 }
  0xcb   :  { %v142_v7 = vpop.f32.mrf.mxu0 }
  0xcc   :  { %110 = vst [vmem:[#allocation3] sm:$0xff] %v108_v6 }
  0xcd   :  { %v88_v8 = vpop.f32.mrf.mxu0 }
  0xce   :  { %v109_v9 = vadd.f32 %v132_v4, %v88_v8 }
  0xcf   :  { %v143_v10 = vpop.f32.mrf.mxu0 }
  0xd0   :  { %111 = vst [vmem:[#allocation3 + $0x8] sm:$0xff] %v109_v9 }
  0xd1   :  { %163 = shalt.err (!%p160_p4)
}
  0xd2   :  { %s177_s0 = smov 128   ;;  %s178_s2 = smov 8  }
  0xd3   :  { %123 = dma.vmem_to_hbm [thread:$0]  %s118_s21, 256, %s217_s3, [#allocation4], %s177_s0, %s177_s0, %s178_s2  }
  0xd4   :  { %172 = dma.done.wait [#allocation4], 256  }
  0xd5   :  { %173 = vsyncadd [#allocation4], 4294967040 }
  0xd6   :  { %127 = vsyncpa [#allocation4], 1 }

// kernel: transformer_forward.33
= control target key start
LH: loop header
LB: loop body
LE: loop exit
PB: predicated region body
PF: predicated region fallthrough
CT: control target
= control target key end

     0   :  { %vm19_vm0 = vcmask 261120   ;;  %v150_v0 = vmov 0.0   ;;  %vm151_vm1 = vmmov 0   ;;  %vm118_vm2 = vcmask 257024   ;;  %s195_s1 = inlined_call_operand.vmem [shape: bf16[32,32], index: 1, kind: input, shape index: {}]   ;;  %s196_s0 = inlined_call_operand.vmem [shape: bf16[16,32], index: 0, kind: input, shape index: {}]   ;;  %s197_s2 = inlined_call_operand.vmem [shape: f32[1,32], index: 2, kind: input, shape index: {}]   ;;  %s198_s3 = inlined_call_operand.vmem [shape: bf16[16,32], index: 3, kind: output, shape index: {}]  }
   0x1   :  { %137 = vmatprep.subr.bf16.mxu0 %v150_v0  ;;  %v147_v1 = vld [vmem:[%s195_s1 + $0x8] sm:$0xff]   ;;  %141 = vmatprep.mubr.msk.bf16.mxu0 %vm151_vm1, %v150_v0  ;;  %20 = vst.msk [vmem:[#allocation2] sm:$0xff] %vm19_vm0, %v150_v0  ;;  %21 = vst.msk [vmem:[#allocation2 + $0x8] sm:$0xff] %vm19_vm0, %v150_v0  ;;  %v148_v2 = vld [vmem:[%s195_s1] sm:$0xff]  }
   0x2   :  { %138 = vmatpush3.bf16.msra.mxu0 %v147_v1  ;;  %v149_v3 = vld [vmem:[%s196_s0] sm:$0xff]  }
   0x3   :  { %139 = vmatprep.subr.bf16.mxu0 %v150_v0  ;;  %v129_v12 = vld [vmem:[%s197_s2] ss:$0 sm:$0xff] }
   0x6   :  { %140 = vmatpush3.bf16.msra.mxu0 %v148_v2 }
   0x8   :  { %v22_v4 = vld [vmem:[#allocation2] sm:$0xff]  ;;  %v23_v8 = vld [vmem:[#allocation2 + $0x8] sm:$0xff] }
   0x9   :  { %142 = vmatmul.mubr.msk.bf16.vlgmr.msra.gmra.mxu0 %vm19_vm0, %v149_v3 }
  0xc9   :  { %v85_v5 = vpop.f32.mrf.mxu0 }
  0xca   :  { %v92_v6 = vadd.f32 %v85_v5, %v22_v4 }
  0xcb   :  { %v143_v7 = vpop.f32.mrf.mxu0 }
  0xcc   :  { %94 = vst.msk [vmem:[#allocation2] sm:$0xff] %vm19_vm0, %v92_v6 }
  0xcd   :  { %v88_v9 = vpop.f32.mrf.mxu0 }
  0xce   :  { %v93_v10 = vadd.f32 %v88_v9, %v23_v8 }
  0xcf   :  { %v144_v11 = vpop.f32.mrf.mxu0 }
  0xd0   :  { %95 = vst.msk [vmem:[#allocation2 + $0x8] sm:$0xff] %vm19_vm0, %v93_v10 }
  0xd3   :  { %v99_v13 = vld [vmem:[#allocation2] sm:$0xff] }
  0xd4   :  { %v108_v14 = vadd.f32 %v129_v12, %v99_v13 }
  0xd6   :  { %v132_v15 = vpack.c.bf16 %v108_v14, %v108_v14 }
  0xd7   :  { %v100_v16 = vld [vmem:[#allocation2 + $0x8] sm:$0xff] }
  0xd8   :  { %119 = vst.msk [vmem:[%s198_s3] sm:$0xf] %vm118_vm2, %v132_v15  ;;  %v109_v17 = vadd.f32 %v129_v12, %v100_v16 }
  0xda   :  { %v133_v18 = vpack.c.bf16 %v109_v17, %v109_v17 }
  0xdc   :  { %120 = vst.msk [vmem:[%s198_s3 + $0x4] sm:$0xf] %vm118_vm2, %v133_v18 }

// kernel: transformer_forward.32
= control target key start
LH: loop header
LB: loop body
LE: loop exit
PB: predicated region body
PF: predicated region fallthrough
CT: control target
= control target key end

     0   :  { %s1302_s24 = smov 0   ;;  %s1444_s0 = inlined_call_operand.vmem [shape: bf16[2,8,96], index: 0, kind: input, shape index: {}]   ;;  %s1445_s1 = inlined_call_operand.vmem [shape: f32[2,8,8], index: 1, kind: input, shape index: {}]   ;;  %s1446_s2 = inlined_call_operand.vmem [shape: bf16[32,32], index: 2, kind: input, shape index: {}]   ;;  %s1447_s3 = inlined_call_operand.vmem [shape: f32[1,32], index: 3, kind: input, shape index: {}]   ;;  %s1448_s4 = inlined_call_operand.vmem [shape: bf16[2,8,32], index: 4, kind: input, shape index: {}]   ;;  %s1449_s5 = inlined_call_operand.vmem [shape: f32[1,32], index: 5, kind: input, shape index: {}]   ;;  %s1450_s6 = inlined_call_operand.vmem [shape: f32[1,32], index: 6, kind: input, shape index: {}]   ;;  %s1451_s7 = inlined_call_operand.vmem [shape: bf16[2,8,32], index: 7, kind: output, shape index: {}]  }
   0x1 LB: > { %s1078_s25 = sadd.s32 4294967295, %s1247_s24   ;;  %p1082_p0 = scmp.ge.s32.totalorder %s1247_s24, 1  ;;  %s1247_s24 = sphi %s1302_s24, %s17_s24  }
   0x2   : > { %p254_p1 = scmp.lt.s32.totalorder %s1247_s24, 3 }
   0x4   : > { %p255_p2 = pnand %p1082_p0, %p254_p1 }
   0x5   : > { %p292_p3 = scmp.lt.s32.totalorder (!%p255_p2), %s1078_s25, 1  ;;  %s1251_s30 = smov (!%p255_p2), 96  }
   0x6   : > { %258 = sbr.rel (%p255_p2) target bundleno = 3108 (0xc24), region = 48  ;;  %s1252_s8 = smov (!%p255_p2), 64  }
   0x7   : > { %s1253_s13 = smov (!%p255_p2), 88   ;;  %s1254_s14 = smov (!%p255_p2), 120  }
   0x8   : > { %s1255_s15 = smov (!%p255_p2), 56   ;;  %s1256_s18 = smov (!%p255_p2), 80  }
   0x9   : > { %s1257_s19 = smov (!%p255_p2), 112   ;;  %s1258_s22 = smov (!%p255_p2), 48  }
   0xa   : > { %s1259_s23 = smov (!%p255_p2), 72  }
   0xb   : > { %v1249_v0 = vmov 0.0   ;;  %vm1250_vm0 = vmmov 0   ;;  %s1453_s25 = smov (!%p292_p3, %s1078_s25), 1  ;;  %vm316_vm1 = vcmask 64512   ;;  %vm382_vm2 = vcmask 1043456  }
   0xc   : > { %1129 = vmatprep.subr.bf16.mxu0 %v1249_v0  ;;  %1131 = vmatprep.mubr.msk.bf16.mxu0 %vm1250_vm0, %v1249_v0  ;;  %s1316_s26 = sshll.u32 %s1453_s25, 2  ;;  %s1084_s9 = sshll.u32 %s1453_s25, 3  ;;  %v540_v43 = vld [vmem:[%s1446_s2 + $0x4] sm:$0xf]  ;;  %v426_v49 = vld [vmem:[%s1446_s2] sm:$0xf] }
   0xd   : > { %1135 = vmatprep.subr.bf16.mxu1 %v1249_v0  ;;  %1137 = vmatprep.mubr.msk.bf16.mxu1 %vm1250_vm0, %v1249_v0  ;;  %s295_s29 = scalar_lea.vmem %s1444_s0, %s1316_s26  ;;  %s299_s12 = scalar_lea.vmem %s1445_s1, %s1084_s9  ;;  %v546_v44 = vsel %vm382_vm2, %v540_v43, 0  ;;  %v592_v52 = vsel %vm382_vm2, %v426_v49, 0  ;;  %vm967_vm3 = vcmask 261120   ;;  %vm999_vm4 = vcmask 257024  }
   0xe   : > { %v309_v1 = vld [vmem:[%s295_s29] sm:$0xf]  ;;  %s1260_s25 = smov 104   ;;  %s1261_s29 = smov 40  }
   0xf   : > { %v1322_v2 = vcombine.low %v309_v1, %v309_v1  ;;  %v1334_v6 = vld [vmem:[%s299_s12] sm:$0xff]  ;;  %s303_s11 = scalar_lea.vmem %s1448_s4, %s1316_s26  ;;  %s307_s20 = scalar_lea.vmem %s1451_s7, %s1316_s26 }
  0x11   : > { %314 = vrot.lane.b32.xlu0 %v1322_v2, %s1251_s30  ;;  %377 = vrot.lane.b32.xlu1 %v1322_v2, %s1252_s8 }
  0x83   : > { %v315_v3 = vpop.permute.xlu0 %314  ;;  %v378_v13 = vpop.permute.xlu1 %377 }
  0x84   : > { %v321_v4 = vsel %vm316_vm1, %v315_v3, 0  ;;  %v384_v14 = vsel %vm382_vm2, %v378_v13, 0 }
  0x85   : > { %1130 = vmatpush3.bf16.xpose.msra.mxu0 %v321_v4  ;;  %1136 = vmatpush3.bf16.msra.mxu1 %v384_v14 }
  0x86   : > { %1147 = vmatprep.subr.bf16.mxu0 %v1249_v0  ;;  %1141 = vmatprep.subr.bf16.mxu1 %v1249_v0 }
  0x8c   : > { %1132 = vmatmul.mubr.msk.bf16.vlgmr.msra.gmra.mxu0 %vm316_vm1, %v309_v1 }
  0x8d   : > { %1149 = vmatprep.mubr.msk.bf16.mxu0 %vm1250_vm0, %v1249_v0 }
 0x14c   : > { %v357_v5 = vpop.f32.mrf.mxu0 }
 0x14d   : > { %v363_v7 = vmul.f32 0.35355338, %v357_v5 }
 0x14e   : > { %v1133_v8 = vpop.f32.mrf.mxu0 }
 0x14f   : > { %v364_v9 = vadd.f32 %v363_v7, %v1334_v6 }
 0x150   : > { %v360_v10 = vpop.f32.mrf.mxu0 }
 0x151   : > { %v365_v11 = vsel %vm316_vm1, %v364_v9, -inf }
 0x152   : > { %366 = vmax.xlane.f32.xlu0 %v365_v11  ;;  %v1134_v12 = vpop.f32.mrf.mxu0 }
 0x1db   : > { %v367_v15 = vpop.xlane.xlu0 %366 }
 0x1dc   : > { %v368_v16 = vsub.f32 %v364_v9, %v367_v15 }
 0x1de   : > { %v369_v17 = vmul.f32 1.442695, %v368_v16 }
 0x1e0   : > { %1223 = vpow2.f32 %v369_v17 }
 0x1ed   : > { %v1224_v18 = vpop.eup %1223 }
 0x1ee   : > { %v371_v19 = vsel %vm316_vm1, %v1224_v18, 0.0 }
 0x1ef   : > { %372 = vadd.xlane.f32.xlu1 %v371_v19 }
 0x200   : > { %430 = vrot.lane.b32.xlu1 %v1322_v2, %s1253_s13 }
 0x204   : > { %428 = vrot.lane.b32.xlu1 %v1322_v2, %s1254_s14 }
 0x278   : > { %v373_v20 = vpop.xlane.xlu1 %372 }
 0x279   : > { %1225 = vrcp.f32 %v373_v20 }
 0x27c   : > { %v431_v22 = vpop.permute.xlu1 %430 }
 0x27d   : > { %v436_v24 = vsel %vm316_vm1, %v431_v22, 0 }
 0x280   : > { %v429_v26 = vpop.permute.xlu1 %428 }
 0x286   : > { %v1226_v21 = vpop.eup %1225 }
 0x287   : > { %v375_v23 = vmul.f32 %v1226_v21, %v1224_v18 }
 0x289   : > { %v376_v25 = vpack.c.bf16 %v375_v23, %v375_v23 }
 0x28b   : > { %1138 = vmatmul.mubr.msk.bf16.vlgmr.msra.gmra.mxu1 %vm316_vm1, %v376_v25 }
 0x28c   : > { %1142 = vmatpush3.bf16.xpose.msra.mxu1 %v436_v24  ;;  %1143 = vmatprep.mubr.msk.bf16.mxu1 %vm1250_vm0, %v1249_v0 }
 0x28d   : > { %1153 = vmatprep.subr.bf16.mxu1 %v1249_v0 }
 0x293   : > { %1144 = vmatmul.mubr.msk.bf16.vlgmr.msra.gmra.mxu1 %vm316_vm1, %v429_v26 }
 0x294   : > { %1155 = vmatprep.mubr.msk.bf16.mxu1 %vm1250_vm0, %v1249_v0  ;;  %1154 = vmatpush3.bf16.msra.mxu1 %v546_v44 }
 0x295   : > { %1165 = vmatprep.subr.bf16.mxu1 %v1249_v0 }
 0x34b   : > { %v420_v27 = vpop.f32.mrf.mxu1 }
 0x34c   : > { %v427_v53 = vpack.c.bf16 %v420_v27, %v420_v27 }
 0x34d   : > { %v1139_v28 = vpop.f32.mrf.mxu1 }
 0x34f   : > { %v423_v29 = vpop.f32.mrf.mxu1 }
 0x351   : > { %v1140_v30 = vpop.f32.mrf.mxu1 }
 0x352   : > { %v746_v30 = vld [vmem:[%s1446_s2 + $0x8] sm:$0xf] }
 0x353   : > { %v472_v31 = vpop.f32.mrf.mxu1 }
 0x354   : > { %v478_v32 = vmul.f32 0.35355338, %v472_v31  ;;  %v752_v31 = vsel %vm382_vm2, %v746_v30, 0 }
 0x355   : > { %v1145_v33 = vpop.f32.mrf.mxu1 }
 0x356   : > { %v479_v34 = vadd.f32 %v478_v32, %v1334_v6 }
 0x357   : > { %v475_v35 = vpop.f32.mrf.mxu1 }
 0x358   : > { %v480_v36 = vsel %vm316_vm1, %v479_v34, -inf }
 0x359   : > { %481 = vmax.xlane.f32.xlu1 %v480_v36  ;;  %v1146_v37 = vpop.f32.mrf.mxu1 }
 0x3e2   : > { %v482_v38 = vpop.xlane.xlu1 %481 }
 0x3e3   : > { %v483_v39 = vsub.f32 %v479_v34, %v482_v38 }
 0x3e5   : > { %v484_v40 = vmul.f32 1.442695, %v483_v39 }
 0x3e7   : > { %1227 = vpow2.f32 %v484_v40 }
 0x3f4   : > { %v1228_v41 = vpop.eup %1227 }
 0x3f5   : > { %v486_v42 = vsel %vm316_vm1, %v1228_v41, 0.0 }
 0x3f6   : > { %487 = vadd.xlane.f32.xlu0 %v486_v42 }
 0x40c   : > { %492 = vrot.lane.b32.xlu0 %v1322_v2, %s1255_s15 }
 0x410   : > { %636 = vrot.lane.b32.xlu0 %v1322_v2, %s1256_s18 }
 0x414   : > { %634 = vrot.lane.b32.xlu0 %v1322_v2, %s1257_s19 }
 0x47f   : > { %v488_v45 = vpop.xlane.xlu0 %487 }
 0x480   : > { %1229 = vrcp.f32 %v488_v45 }
 0x483   : > { %v493_v46 = vpop.permute.xlu0 %492 }
 0x484   : > { %v498_v47 = vsel %vm382_vm2, %v493_v46, 0 }
 0x485   : > { %1148 = vmatpush3.bf16.msra.mxu0 %v498_v47 }
 0x486   : > { %1159 = vmatprep.subr.bf16.mxu0 %v1249_v0 }
 0x487   : > { %v637_v54 = vpop.permute.xlu0 %636 }
 0x488   : > { %v642_v57 = vsel %vm316_vm1, %v637_v54, 0 }
 0x48b   : > { %v635_v62 = vpop.permute.xlu0 %634 }
 0x48d   : > { %v1230_v48 = vpop.eup %1229 }
 0x48e   : > { %v490_v50 = vmul.f32 %v1230_v48, %v1228_v41 }
 0x490   : > { %v491_v51 = vpack.c.bf16 %v490_v50, %v490_v50 }
 0x492   : > { %1150 = vmatmul.mubr.msk.bf16.vlgmr.msra.gmra.mxu0 %vm316_vm1, %v491_v51 }
 0x493   : > { %1160 = vmatpush3.bf16.msra.mxu0 %v592_v52  ;;  %1161 = vmatprep.mubr.msk.bf16.mxu0 %vm1250_vm0, %v1249_v0  ;;  %v907_v52 = vld [vmem:[%s1446_s2 + $0xc] sm:$0xf] }
 0x494   : > { %1171 = vmatprep.subr.bf16.mxu0 %v1249_v0 }
 0x49a   : > { %1162 = vmatmul.mubr.msk.bf16.vlgmr.msra.gmra.mxu0 %vm316_vm1, %v427_v53  ;;  %v913_v53 = vsel %vm382_vm2, %v907_v52, 0 }
 0x49b   : > { %1173 = vmatprep.mubr.msk.bf16.mxu0 %vm1250_vm0, %v1249_v0 }
 0x552   : > { %v534_v55 = vpop.f32.mrf.mxu0 }
 0x553   : > { %v541_v56 = vpack.c.bf16 %v534_v55, %v534_v55 }
 0x554   : > { %v1151_v58 = vpop.f32.mrf.mxu0 }
 0x555   : > { %1156 = vmatmul.mubr.msk.bf16.vlgmr.msra.gmra.mxu1 %vm316_vm1, %v541_v56 }
 0x556   : > { %1166 = vmatpush3.bf16.xpose.msra.mxu1 %v642_v57  ;;  %v537_v59 = vpop.f32.mrf.mxu0  ;;  %1167 = vmatprep.mubr.msk.bf16.mxu1 %vm1250_vm0, %v1249_v0 }
 0x557   : > { %1177 = vmatprep.subr.bf16.mxu1 %v1249_v0 }
 0x558   : > { %v1152_v60 = vpop.f32.mrf.mxu0 }
 0x55a   : > { %v1380_v61 = vpop.f32.mrf.mxu0 }
 0x55c   : > { %v1163_v63 = vpop.f32.mrf.mxu0 }
 0x55d   : > { %1168 = vmatmul.mubr.msk.bf16.vlgmr.msra.gmra.mxu1 %vm316_vm1, %v635_v62 }
 0x55e   : > { %v631_v1 = vpop.f32.mrf.mxu0  ;;  %1179 = vmatprep.mubr.msk.bf16.mxu1 %vm1250_vm0, %v1249_v0  ;;  %1178 = vmatpush3.bf16.msra.mxu1 %v752_v31 }
 0x55f   : > { %1189 = vmatprep.subr.bf16.mxu1 %v1249_v0 }
 0x560   : > { %v1164_v3 = vpop.f32.mrf.mxu0 }
 0x561   : > { %v964_v3 = vld [vmem:[%s303_s11] sm:$0xf] }
 0x615   : > { %v1385_v4 = vpop.f32.mrf.mxu1 }
 0x617   : > { %v1157_v5 = vpop.f32.mrf.mxu1 }
 0x618   : > { %v1100_v5 = vld [vmem:[%s1447_s3] ss:$0 sm:$0xff] }
 0x619   : > { %v585_v7 = vpop.f32.mrf.mxu1 }
 0x61b   : > { %v1158_v8 = vpop.f32.mrf.mxu1 }
 0x61c   : > { %v965_v8 = vunpack.c.l.bf16 %v964_v3 }
 0x61d   : > { %v678_v9 = vpop.f32.mrf.mxu1 }
 0x61e   : > { %v684_v10 = vmul.f32 0.35355338, %v678_v9 }
 0x61f   : > { %v1169_v11 = vpop.f32.mrf.mxu1 }
 0x620   : > { %v685_v12 = vadd.f32 %v684_v10, %v1334_v6 }
 0x621   : > { %v681_v13 = vpop.f32.mrf.mxu1 }
 0x622   : > { %v686_v14 = vsel %vm316_vm1, %v685_v12, -inf }
 0x623   : > { %687 = vmax.xlane.f32.xlu1 %v686_v14  ;;  %v1170_v15 = vpop.f32.mrf.mxu1 }
 0x634   : > { %698 = vrot.lane.b32.xlu1 %v1322_v2, %s1258_s22 }
 0x638   : > { %797 = vrot.lane.b32.xlu1 %v1322_v2, %s1259_s23 }
 0x63c   : > { %795 = vrot.lane.b32.xlu1 %v1322_v2, %s1260_s25 }
 0x6ac   : > { %v688_v16 = vpop.xlane.xlu1 %687 }
 0x6ad   : > { %v689_v17 = vsub.f32 %v685_v12, %v688_v16 }
 0x6af   : > { %v690_v18 = vmul.f32 1.442695, %v689_v17 }
 0x6b0   : > { %v699_v21 = vpop.permute.xlu1 %698 }
 0x6b1   : > { %1231 = vpow2.f32 %v690_v18  ;;  %v704_v22 = vsel %vm382_vm2, %v699_v21, 0 }
 0x6b2   : > { %1172 = vmatpush3.bf16.msra.mxu0 %v704_v22 }
 0x6b3   : > { %1183 = vmatprep.subr.bf16.mxu0 %v1249_v0 }
 0x6b4   : > { %v798_v25 = vpop.permute.xlu1 %797 }
 0x6b5   : > { %v803_v27 = vsel %vm316_vm1, %v798_v25, 0 }
 0x6b8   : > { %v796_v29 = vpop.permute.xlu1 %795 }
 0x6be   : > { %v1232_v19 = vpop.eup %1231 }
 0x6bf   : > { %v692_v20 = vsel %vm316_vm1, %v1232_v19, 0.0 }
 0x6c0   : > { %693 = vadd.xlane.f32.xlu0 %v692_v20 }
 0x749   : > { %v694_v23 = vpop.xlane.xlu0 %693 }
 0x74a   : > { %1233 = vrcp.f32 %v694_v23 }
 0x757   : > { %v1234_v24 = vpop.eup %1233 }
 0x758   : > { %v696_v26 = vmul.f32 %v1234_v24, %v1232_v19  ;;  %v1101_v24 = vld [vmem:[%s1449_s5] ss:$0 sm:$0xff] }
 0x75a   : > { %v697_v28 = vpack.c.bf16 %v696_v26, %v696_v26  ;;  %v1102_v26 = vld [vmem:[%s1450_s6] ss:$0 sm:$0xff] }
 0x75c   : > { %1174 = vmatmul.mubr.msk.bf16.vlgmr.msra.gmra.mxu0 %vm316_vm1, %v697_v28 }
 0x75d   : > { %1184 = vmatpush3.bf16.xpose.msra.mxu0 %v803_v27  ;;  %1185 = vmatprep.mubr.msk.bf16.mxu0 %vm1250_vm0, %v1249_v0 }
 0x75e   : > { %1195 = vmatprep.subr.bf16.mxu0 %v1249_v0 }
 0x764   : > { %1186 = vmatmul.mubr.msk.bf16.vlgmr.msra.gmra.mxu0 %vm316_vm1, %v796_v29 }
 0x765   : > { %1197 = vmatprep.mubr.msk.bf16.mxu0 %vm1250_vm0, %v1249_v0  ;;  %1196 = vmatpush3.bf16.msra.mxu0 %v913_v53 }
 0x81c   : > { %v740_v32 = vpop.f32.mrf.mxu0 }
 0x81d   : > { %v747_v33 = vpack.c.bf16 %v740_v32, %v740_v32 }
 0x81e   : > { %v1175_v34 = vpop.f32.mrf.mxu0 }
 0x81f   : > { %1180 = vmatmul.mubr.msk.bf16.vlgmr.msra.gmra.mxu1 %vm316_vm1, %v747_v33 }
 0x820   : > { %v743_v35 = vpop.f32.mrf.mxu0  ;;  %1191 = vmatprep.mubr.msk.bf16.mxu1 %vm1250_vm0, %v1249_v0  ;;  %v629_v0 = vadd.f32 %v1380_v61, %v1385_v4 }
 0x822   : > { %v1176_v36 = vpop.f32.mrf.mxu0 }
 0x824   : > { %v839_v37 = vpop.f32.mrf.mxu0 }
 0x825   : > { %v845_v38 = vmul.f32 0.35355338, %v839_v37 }
 0x826   : > { %v1187_v39 = vpop.f32.mrf.mxu0 }
 0x827   : > { %v846_v40 = vadd.f32 %v845_v38, %v1334_v6 }
 0x828   : > { %v842_v41 = vpop.f32.mrf.mxu0 }
 0x829   : > { %v847_v42 = vsel %vm316_vm1, %v846_v40, -inf }
 0x82a   : > { %848 = vmax.xlane.f32.xlu1 %v847_v42  ;;  %v1188_v43 = vpop.f32.mrf.mxu0 }
 0x8b3   : > { %v849_v44 = vpop.xlane.xlu1 %848 }
 0x8b4   : > { %v850_v45 = vsub.f32 %v846_v40, %v849_v44 }
 0x8b6   : > { %v851_v46 = vmul.f32 1.442695, %v850_v45 }
 0x8b8   : > { %1235 = vpow2.f32 %v851_v46 }
 0x8c5   : > { %v1236_v47 = vpop.eup %1235 }
 0x8c6   : > { %v853_v48 = vsel %vm316_vm1, %v1236_v47, 0.0 }
 0x8c7   : > { %854 = vadd.xlane.f32.xlu0 %v853_v48 }
 0x8dd   : > { %859 = vrot.lane.b32.xlu0 %v1322_v2, %s1261_s29 }
 0x8df   : > { %v788_v6 = vpop.f32.mrf.mxu1 }
 0x8e0   : > { %v794_v49 = vadd.f32 %v788_v6, %v629_v0 }
 0x8e1   : > { %v1181_v50 = vpop.f32.mrf.mxu1 }
 0x8e3   : > { %v791_v51 = vpop.f32.mrf.mxu1 }
 0x8e5   : > { %v1182_v54 = vpop.f32.mrf.mxu1 }
 0x950   : > { %v855_v55 = vpop.xlane.xlu0 %854 }
 0x951   : > { %1237 = vrcp.f32 %v855_v55 }
 0x954   : > { %v860_v56 = vpop.permute.xlu0 %859 }
 0x955   : > { %v865_v2 = vsel %vm382_vm2, %v860_v56, 0 }
 0x956   : > { %1190 = vmatpush3.bf16.msra.mxu1 %v865_v2 }
 0x95e   : > { %v1238_v57 = vpop.eup %1237 }
 0x95f   : > { %v857_v58 = vmul.f32 %v1238_v57, %v1236_v47 }
 0x961   : > { %v858_v59 = vpack.c.bf16 %v857_v58, %v857_v58 }
 0x963   : > { %1192 = vmatmul.mubr.msk.bf16.vlgmr.msra.gmra.mxu1 %vm316_vm1, %v858_v59 }
 0xa23   : > { %v901_v60 = vpop.f32.mrf.mxu1 }
 0xa24   : > { %v908_v61 = vpack.c.bf16 %v901_v60, %v901_v60 }
 0xa25   : > { %v1193_v62 = vpop.f32.mrf.mxu1 }
 0xa26   : > { %1198 = vmatmul.mubr.msk.bf16.vlgmr.msra.gmra.mxu0 %vm316_vm1, %v908_v61 }
 0xa27   : > { %v904_v63 = vpop.f32.mrf.mxu1 }
 0xa29   : > { %v1194_v1 = vpop.f32.mrf.mxu1 }
 0xae6   : > { %v949_v4 = vpop.f32.mrf.mxu0 }
 0xae7   : > { %v955_v7 = vadd.f32 %v949_v4, %v794_v49 }
 0xae8   : > { %v1199_v9 = vpop.f32.mrf.mxu0 }
 0xae9   : > { %v963_v10 = vadd.f32 %v1100_v5, %v955_v7 }
 0xaea   : > { %v952_v11 = vpop.f32.mrf.mxu0 }
 0xaeb   : > { %v966_v12 = vadd.f32 %v965_v8, %v963_v10 }
 0xaec   : > { %v1200_v13 = vpop.f32.mrf.mxu0 }
 0xaed   : > { %v968_v14 = vsel %vm967_vm3, %v966_v12, 0.0 }
 0xaee   : > { %969 = vadd.xlane.f32.xlu0 %v968_v14 }
 0xb77   : > { %v970_v15 = vpop.xlane.xlu0 %969 }
 0xb78   : > { %v972_v16 = vmul.f32 0.03125, %v970_v15 }
 0xb7a   : > { %v973_v17 = vsub.f32 %v966_v12, %v972_v16 }
 0xb7c   : > { %v974_v18 = vmul.f32 %v973_v17, %v973_v17 }
 0xb7e   : > { %v975_v19 = vsel %vm967_vm3, %v974_v18, 0.0 }
 0xb7f   : > { %976 = vadd.xlane.f32.xlu1 %v975_v19 }
 0xc08   : > { %v977_v20 = vpop.xlane.xlu1 %976 }
 0xc09   : > { %v978_v21 = vmul.f32 0.03125, %v977_v20 }
 0xc0b   : > { %v979_v22 = vadd.f32 1e-05, %v978_v21 }
 0xc0d   : > { %1239 = vrsqrt.f32 %v979_v22 }
 0xc1a   : > { %v1240_v23 = vpop.eup %1239 }
 0xc1b   : > { %v981_v25 = vmul.f32 %v1240_v23, %v973_v17 }
 0xc1d   : > { %v989_v27 = vmul.f32 %v1101_v24, %v981_v25 }
 0xc1f   : > { %v997_v28 = vadd.f32 %v1102_v26, %v989_v27 }
 0xc21   : > { %v998_v29 = vpack.c.bf16 %v997_v28, %v997_v28 }
 0xc23   : > { %1000 = vst.msk [vmem:[%s307_s20] sm:$0xf] %vm999_vm4, %v998_v29 }
 0xc24 PF: > { %s17_s24 = sadd.s32 1, %s1247_s24  }
 0xc25   : > { %p14_p4 = scmp.ge.s32.totalorder %s17_s24, 4  }
 0xc27   :  { %16 = sbr.rel (!%p14_p4) target bundleno = 1 (0x1), region = 84 }

// kernel: transformer_forward.35
= control target key start
LH: loop header
LB: loop body
LE: loop exit
PB: predicated region body
PF: predicated region fallthrough
CT: control target
= control target key end

     0   :  { %s1360_s27 = smov 0   ;;  %s1507_s0 = inlined_call_operand.vmem [shape: bf16[2,8,32], index: 0, kind: input, shape index: {}]   ;;  %s1508_s1 = inlined_call_operand.vmem [shape: bf16[2,8,64], index: 1, kind: input, shape index: {}]   ;;  %s1509_s2 = inlined_call_operand.vmem [shape: f32[2,1,8], index: 2, kind: input, shape index: {}]   ;;  %s1510_s3 = inlined_call_operand.vmem [shape: bf16[32,32], index: 3, kind: input, shape index: {}]   ;;  %s1511_s4 = inlined_call_operand.vmem [shape: f32[1,32], index: 4, kind: input, shape index: {}]   ;;  %s1512_s5 = inlined_call_operand.vmem [shape: bf16[2,8,32], index: 5, kind: input, shape index: {}]   ;;  %s1513_s6 = inlined_call_operand.vmem [shape: f32[1,32], index: 6, kind: input, shape index: {}]   ;;  %s1514_s7 = inlined_call_operand.vmem [shape: f32[1,32], index: 7, kind: input, shape index: {}]   ;;  %s1515_s8 = inlined_call_operand.vmem [shape: bf16[2,8,32], index: 8, kind: output, shape index: {}]  }
   0x1 LB: > { %s1136_s28 = sadd.s32 4294967295, %s1304_s27   ;;  %p1140_p0 = scmp.ge.s32.totalorder %s1304_s27, 1  ;;  %s1304_s27 = sphi %s1360_s27, %s18_s27  }
   0x2   : > { %p287_p1 = scmp.lt.s32.totalorder %s1304_s27, 3 }
   0x4   : > { %p288_p2 = pnand %p1140_p0, %p287_p1 }
   0x5   : > { %p330_p3 = scmp.lt.s32.totalorder (!%p288_p2), %s1136_s28, 1  ;;  %s1308_s17 = smov (!%p288_p2), 96  }
   0x6   : > { %291 = sbr.rel (%p288_p2) target bundleno = 2991 (0xbaf), region = 52  ;;  %s1309_s18 = smov (!%p288_p2), 120  }
   0x7   : > { %s1310_s19 = smov (!%p288_p2), 88   ;;  %s1311_s22 = smov (!%p288_p2), 112  }
   0x8   : > { %s1312_s25 = smov (!%p288_p2), 80   ;;  %s1313_s26 = smov (!%p288_p2), 104  }
   0x9   : > { %s1314_s9 = smov (!%p288_p2), 72  }
   0xb   : > { %v1306_v0 = vmov 0.0   ;;  %vm1307_vm0 = vmmov 0   ;;  %s1517_s28 = smov (!%p330_p3, %s1136_s28), 1  ;;  %vm353_vm1 = vcmask 64512   ;;  %vm428_vm2 = vcmask 1043456  }
   0xc   : > { %1189 = vmatprep.subr.bf16.mxu0 %v1306_v0  ;;  %1191 = vmatprep.mubr.msk.bf16.mxu0 %vm1307_vm0, %v1306_v0  ;;  %s1374_s29 = sshll.u32 %s1517_s28, 2  ;;  %s340_s16 = scalar_lea.vmem %s1509_s2, %s1517_s28  ;;  %v589_v46 = vld [vmem:[%s1510_s3 + $0x4] sm:$0xf]  ;;  %v472_v50 = vld [vmem:[%s1510_s3] sm:$0xf]  ;;  %vm1016_vm3 = vcmask 261120  }
   0xd   : > { %1195 = vmatprep.subr.bf16.mxu1 %v1306_v0  ;;  %1197 = vmatprep.mubr.msk.bf16.mxu1 %vm1307_vm0, %v1306_v0  ;;  %s337_s10 = scalar_lea.vmem %s1508_s1, %s1374_s29  ;;  %s333_s13 = scalar_lea.vmem %s1507_s0, %s1374_s29  ;;  %v1392_v5 = vld [vmem:[%s340_s16] ss:$0 sm:$0xff]  ;;  %v595_v47 = vsel %vm428_vm2, %v589_v46, 0  ;;  %v641_v53 = vsel %vm428_vm2, %v472_v50, 0  ;;  %vm1048_vm4 = vcmask 257024  }
   0xe   : > { %v351_v1 = vld [vmem:[%s337_s10] sm:$0xf]  ;;  %s344_s14 = scalar_lea.vmem %s1512_s5, %s1374_s29  ;;  %s348_s23 = scalar_lea.vmem %s1515_s8, %s1374_s29 }
   0xf   : > { %v358_v2 = vsel %vm353_vm1, %v351_v1, 0  ;;  %v350_v3 = vld [vmem:[%s333_s13] sm:$0xf]  ;;  %v1396_v12 = vcombine.low %v351_v1, %v351_v1 }
  0x10   : > { %1190 = vmatpush3.bf16.xpose.msra.mxu0 %v358_v2  ;;  %v1403_v20 = vcombine.low %v350_v3, %v350_v3 }
  0x11   : > { %1207 = vmatprep.subr.bf16.mxu0 %v1306_v0  ;;  %423 = vrot.lane.b32.xlu1 %v1396_v12, %s1308_s17 }
  0x15   : > { %479 = vrot.lane.b32.xlu1 %v1396_v12, %s1309_s18 }
  0x17   : > { %1192 = vmatmul.mubr.msk.bf16.vlgmr.msra.gmra.mxu0 %vm353_vm1, %v350_v3 }
  0x18   : > { %1209 = vmatprep.mubr.msk.bf16.mxu0 %vm1307_vm0, %v1306_v0 }
  0x83   : > { %v424_v18 = vpop.permute.xlu1 %423 }
  0x84   : > { %v430_v19 = vsel %vm428_vm2, %v424_v18, 0 }
  0x85   : > { %1196 = vmatpush3.bf16.msra.mxu1 %v430_v19 }
  0x86   : > { %1201 = vmatprep.subr.bf16.mxu1 %v1306_v0 }
  0x87   : > { %v480_v23 = vpop.permute.xlu1 %479 }
  0x88   : > { %v485_v25 = vsel %vm353_vm1, %v480_v23, 0 }
  0xd7   : > { %v394_v4 = vpop.f32.mrf.mxu0 }
  0xd8   : > { %v400_v6 = vmul.f32 0.35355338, %v394_v4 }
  0xd9   : > { %v1193_v7 = vpop.f32.mrf.mxu0 }
  0xda   : > { %v407_v8 = vadd.f32 %v1392_v5, %v400_v6 }
  0xdb   : > { %v397_v9 = vpop.f32.mrf.mxu0 }
  0xdc   : > { %v408_v10 = vsel %vm353_vm1, %v407_v8, -inf }
  0xdd   : > { %409 = vmax.xlane.f32.xlu0 %v408_v10  ;;  %v1194_v11 = vpop.f32.mrf.mxu0 }
 0x166   : > { %v410_v13 = vpop.xlane.xlu0 %409 }
 0x167   : > { %v411_v14 = vsub.f32 %v407_v8, %v410_v13 }
 0x169   : > { %v412_v15 = vmul.f32 1.442695, %v411_v14 }
 0x16b   : > { %1280 = vpow2.f32 %v412_v15 }
 0x178   : > { %v1281_v16 = vpop.eup %1280 }
 0x179   : > { %v414_v17 = vsel %vm353_vm1, %v1281_v16, 0.0 }
 0x17a   : > { %415 = vadd.xlane.f32.xlu0 %v414_v17 }
 0x190   : > { %477 = vrot.lane.b32.xlu0 %v1403_v20, %s1309_s18 }
 0x203   : > { %v416_v21 = vpop.xlane.xlu0 %415 }
 0x204   : > { %1282 = vrcp.f32 %v416_v21 }
 0x207   : > { %v478_v27 = vpop.permute.xlu0 %477 }
 0x211   : > { %v1283_v22 = vpop.eup %1282 }
 0x212   : > { %v418_v24 = vmul.f32 %v1283_v22, %v1281_v16 }
 0x214   : > { %v419_v26 = vpack.c.bf16 %v418_v24, %v418_v24 }
 0x216   : > { %1198 = vmatmul.mubr.msk.bf16.vlgmr.msra.gmra.mxu1 %vm353_vm1, %v419_v26 }
 0x217   : > { %1202 = vmatpush3.bf16.xpose.msra.mxu1 %v485_v25  ;;  %1203 = vmatprep.mubr.msk.bf16.mxu1 %vm1307_vm0, %v1306_v0 }
 0x218   : > { %1213 = vmatprep.subr.bf16.mxu1 %v1306_v0 }
 0x21e   : > { %1204 = vmatmul.mubr.msk.bf16.vlgmr.msra.gmra.mxu1 %vm353_vm1, %v478_v27 }
 0x21f   : > { %1215 = vmatprep.mubr.msk.bf16.mxu1 %vm1307_vm0, %v1306_v0  ;;  %1214 = vmatpush3.bf16.msra.mxu1 %v595_v47 }
 0x220   : > { %1225 = vmatprep.subr.bf16.mxu1 %v1306_v0 }
 0x2d6   : > { %v466_v28 = vpop.f32.mrf.mxu1 }
 0x2d7   : > { %v473_v54 = vpack.c.bf16 %v466_v28, %v466_v28 }
 0x2d8   : > { %v1199_v29 = vpop.f32.mrf.mxu1 }
 0x2da   : > { %v469_v30 = vpop.f32.mrf.mxu1 }
 0x2dc   : > { %v1200_v31 = vpop.f32.mrf.mxu1 }
 0x2dd   : > { %v795_v31 = vld [vmem:[%s1510_s3 + $0x8] sm:$0xf] }
 0x2de   : > { %v521_v32 = vpop.f32.mrf.mxu1 }
 0x2df   : > { %v527_v33 = vmul.f32 0.35355338, %v521_v32  ;;  %v801_v32 = vsel %vm428_vm2, %v795_v31, 0 }
 0x2e0   : > { %v1205_v34 = vpop.f32.mrf.mxu1 }
 0x2e1   : > { %v528_v35 = vadd.f32 %v1392_v5, %v527_v33 }
 0x2e2   : > { %v524_v36 = vpop.f32.mrf.mxu1 }
 0x2e3   : > { %v529_v37 = vsel %vm353_vm1, %v528_v35, -inf }
 0x2e4   : > { %530 = vmax.xlane.f32.xlu1 %v529_v37  ;;  %v1206_v38 = vpop.f32.mrf.mxu1 }
 0x2f5   : > { %541 = vrot.lane.b32.xlu1 %v1396_v12, %s1310_s19 }
 0x2f9   : > { %683 = vrot.lane.b32.xlu1 %v1403_v20, %s1311_s22 }
 0x36d   : > { %v531_v39 = vpop.xlane.xlu1 %530 }
 0x36e   : > { %v532_v40 = vsub.f32 %v528_v35, %v531_v39 }
 0x370   : > { %v533_v41 = vmul.f32 1.442695, %v532_v40 }
 0x371   : > { %v542_v44 = vpop.permute.xlu1 %541 }
 0x372   : > { %1284 = vpow2.f32 %v533_v41  ;;  %v547_v45 = vsel %vm428_vm2, %v542_v44, 0 }
 0x373   : > { %1208 = vmatpush3.bf16.msra.mxu0 %v547_v45 }
 0x374   : > { %1219 = vmatprep.subr.bf16.mxu0 %v1306_v0 }
 0x375   : > { %v684_v63 = vpop.permute.xlu1 %683 }
 0x37f   : > { %v1285_v42 = vpop.eup %1284 }
 0x380   : > { %v535_v43 = vsel %vm353_vm1, %v1285_v42, 0.0 }
 0x381   : > { %536 = vadd.xlane.f32.xlu0 %v535_v43 }
 0x397   : > { %685 = vrot.lane.b32.xlu0 %v1396_v12, %s1311_s22 }
 0x40a   : > { %v537_v48 = vpop.xlane.xlu0 %536 }
 0x40b   : > { %1286 = vrcp.f32 %v537_v48 }
 0x40e   : > { %v686_v55 = vpop.permute.xlu0 %685 }
 0x40f   : > { %v691_v58 = vsel %vm353_vm1, %v686_v55, 0 }
 0x418   : > { %v1287_v49 = vpop.eup %1286 }
 0x419   : > { %v539_v51 = vmul.f32 %v1287_v49, %v1285_v42 }
 0x41b   : > { %v540_v52 = vpack.c.bf16 %v539_v51, %v539_v51 }
 0x41d   : > { %1210 = vmatmul.mubr.msk.bf16.vlgmr.msra.gmra.mxu0 %vm353_vm1, %v540_v52 }
 0x41e   : > { %1220 = vmatpush3.bf16.msra.mxu0 %v641_v53  ;;  %1221 = vmatprep.mubr.msk.bf16.mxu0 %vm1307_vm0, %v1306_v0 }
 0x41f   : > { %1231 = vmatprep.subr.bf16.mxu0 %v1306_v0 }
 0x425   : > { %1222 = vmatmul.mubr.msk.bf16.vlgmr.msra.gmra.mxu0 %vm353_vm1, %v473_v54 }
 0x426   : > { %1233 = vmatprep.mubr.msk.bf16.mxu0 %vm1307_vm0, %v1306_v0 }
 0x4dd   : > { %v583_v56 = vpop.f32.mrf.mxu0 }
 0x4de   : > { %v590_v57 = vpack.c.bf16 %v583_v56, %v583_v56 }
 0x4df   : > { %v1211_v59 = vpop.f32.mrf.mxu0 }
 0x4e0   : > { %1216 = vmatmul.mubr.msk.bf16.vlgmr.msra.gmra.mxu1 %vm353_vm1, %v590_v57 }
 0x4e1   : > { %1226 = vmatpush3.bf16.xpose.msra.mxu1 %v691_v58  ;;  %v586_v60 = vpop.f32.mrf.mxu0  ;;  %1227 = vmatprep.mubr.msk.bf16.mxu1 %vm1307_vm0, %v1306_v0 }
 0x4e2   : > { %1237 = vmatprep.subr.bf16.mxu1 %v1306_v0 }
 0x4e3   : > { %v1212_v61 = vpop.f32.mrf.mxu0 }
 0x4e5   : > { %v1443_v62 = vpop.f32.mrf.mxu0 }
 0x4e7   : > { %v1223_v1 = vpop.f32.mrf.mxu0 }
 0x4e8   : > { %1228 = vmatmul.mubr.msk.bf16.vlgmr.msra.gmra.mxu1 %vm353_vm1, %v684_v63 }
 0x4e9   : > { %v680_v2 = vpop.f32.mrf.mxu0  ;;  %1239 = vmatprep.mubr.msk.bf16.mxu1 %vm1307_vm0, %v1306_v0  ;;  %1238 = vmatpush3.bf16.msra.mxu1 %v801_v32 }
 0x4ea   : > { %1249 = vmatprep.subr.bf16.mxu1 %v1306_v0 }
 0x4eb   : > { %v1224_v3 = vpop.f32.mrf.mxu0 }
 0x4ec   : > { %v1013_v3 = vld [vmem:[%s344_s14] sm:$0xf] }
 0x5a0   : > { %v1448_v4 = vpop.f32.mrf.mxu1 }
 0x5a2   : > { %v1217_v6 = vpop.f32.mrf.mxu1 }
 0x5a3   : > { %v1160_v6 = vld [vmem:[%s1511_s4] ss:$0 sm:$0xff] }
 0x5a4   : > { %v634_v7 = vpop.f32.mrf.mxu1 }
 0x5a6   : > { %v1218_v8 = vpop.f32.mrf.mxu1 }
 0x5a7   : > { %v1014_v8 = vunpack.c.l.bf16 %v1013_v3 }
 0x5a8   : > { %v727_v9 = vpop.f32.mrf.mxu1 }
 0x5a9   : > { %v733_v10 = vmul.f32 0.35355338, %v727_v9 }
 0x5aa   : > { %v1229_v11 = vpop.f32.mrf.mxu1 }
 0x5ab   : > { %v734_v13 = vadd.f32 %v1392_v5, %v733_v10 }
 0x5ac   : > { %v730_v14 = vpop.f32.mrf.mxu1 }
 0x5ad   : > { %v735_v15 = vsel %vm353_vm1, %v734_v13, -inf }
 0x5ae   : > { %736 = vmax.xlane.f32.xlu1 %v735_v15  ;;  %v1230_v16 = vpop.f32.mrf.mxu1 }
 0x5bf   : > { %747 = vrot.lane.b32.xlu1 %v1396_v12, %s1312_s25 }
 0x5c3   : > { %844 = vrot.lane.b32.xlu1 %v1403_v20, %s1313_s26 }
 0x637   : > { %v737_v17 = vpop.xlane.xlu1 %736 }
 0x638   : > { %v738_v18 = vsub.f32 %v734_v13, %v737_v17 }
 0x63a   : > { %v739_v19 = vmul.f32 1.442695, %v738_v18 }
 0x63b   : > { %v748_v23 = vpop.permute.xlu1 %747 }
 0x63c   : > { %1288 = vpow2.f32 %v739_v19  ;;  %v753_v24 = vsel %vm428_vm2, %v748_v23, 0 }
 0x63d   : > { %1232 = vmatpush3.bf16.msra.mxu0 %v753_v24 }
 0x63e   : > { %1243 = vmatprep.subr.bf16.mxu0 %v1306_v0 }
 0x63f   : > { %v845_v30 = vpop.permute.xlu1 %844 }
 0x649   : > { %v1289_v21 = vpop.eup %1288 }
 0x64a   : > { %v741_v22 = vsel %vm353_vm1, %v1289_v21, 0.0 }
 0x64b   : > { %742 = vadd.xlane.f32.xlu0 %v741_v22 }
 0x661   : > { %846 = vrot.lane.b32.xlu0 %v1396_v12, %s1313_s26 }
 0x6d4   : > { %v743_v25 = vpop.xlane.xlu0 %742 }
 0x6d5   : > { %1290 = vrcp.f32 %v743_v25 }
 0x6d8   : > { %v847_v20 = vpop.permute.xlu0 %846 }
 0x6d9   : > { %v852_v28 = vsel %vm353_vm1, %v847_v20, 0 }
 0x6e2   : > { %v1291_v26 = vpop.eup %1290 }
 0x6e3   : > { %v745_v27 = vmul.f32 %v1291_v26, %v1289_v21  ;;  %v1161_v26 = vld [vmem:[%s1513_s6] ss:$0 sm:$0xff] }
 0x6e5   : > { %v746_v29 = vpack.c.bf16 %v745_v27, %v745_v27  ;;  %v1162_v27 = vld [vmem:[%s1514_s7] ss:$0 sm:$0xff] }
 0x6e7   : > { %1234 = vmatmul.mubr.msk.bf16.vlgmr.msra.gmra.mxu0 %vm353_vm1, %v746_v29 }
 0x6e8   : > { %1244 = vmatpush3.bf16.xpose.msra.mxu0 %v852_v28  ;;  %1245 = vmatprep.mubr.msk.bf16.mxu0 %vm1307_vm0, %v1306_v0 }
 0x6e9   : > { %1255 = vmatprep.subr.bf16.mxu0 %v1306_v0 }
 0x6ef   : > { %1246 = vmatmul.mubr.msk.bf16.vlgmr.msra.gmra.mxu0 %vm353_vm1, %v845_v30 }
 0x6f0   : > { %1257 = vmatprep.mubr.msk.bf16.mxu0 %vm1307_vm0, %v1306_v0 }
 0x7a7   : > { %v789_v33 = vpop.f32.mrf.mxu0 }
 0x7a8   : > { %v796_v34 = vpack.c.bf16 %v789_v33, %v789_v33 }
 0x7a9   : > { %v1235_v35 = vpop.f32.mrf.mxu0 }
 0x7aa   : > { %1240 = vmatmul.mubr.msk.bf16.vlgmr.msra.gmra.mxu1 %vm353_vm1, %v796_v34 }
 0x7ab   : > { %v792_v36 = vpop.f32.mrf.mxu0  ;;  %1251 = vmatprep.mubr.msk.bf16.mxu1 %vm1307_vm0, %v1306_v0 }
 0x7ad   : > { %v1236_v37 = vpop.f32.mrf.mxu0 }
 0x7af   : > { %v888_v38 = vpop.f32.mrf.mxu0 }
 0x7b0   : > { %v894_v39 = vmul.f32 0.35355338, %v888_v38 }
 0x7b1   : > { %v1247_v40 = vpop.f32.mrf.mxu0 }
 0x7b2   : > { %v895_v41 = vadd.f32 %v1392_v5, %v894_v39  ;;  %v678_v5 = vadd.f32 %v1443_v62, %v1448_v4 }
 0x7b3   : > { %v891_v42 = vpop.f32.mrf.mxu0 }
 0x7b4   : > { %v896_v43 = vsel %vm353_vm1, %v895_v41, -inf }
 0x7b5   : > { %897 = vmax.xlane.f32.xlu1 %v896_v43  ;;  %v1248_v44 = vpop.f32.mrf.mxu0 }
 0x7c6   : > { %908 = vrot.lane.b32.xlu1 %v1396_v12, %s1314_s9  ;;  %v956_v12 = vld [vmem:[%s1510_s3 + $0xc] sm:$0xf] }
 0x7c7   : > { %v962_v55 = vsel %vm428_vm2, %v956_v12, 0 }
 0x7c8   : > { %1256 = vmatpush3.bf16.msra.mxu0 %v962_v55 }
 0x83e   : > { %v898_v45 = vpop.xlane.xlu1 %897 }
 0x83f   : > { %v899_v46 = vsub.f32 %v895_v41, %v898_v45 }
 0x841   : > { %v900_v47 = vmul.f32 1.442695, %v899_v46 }
 0x842   : > { %v909_v49 = vpop.permute.xlu1 %908 }
 0x843   : > { %1292 = vpow2.f32 %v900_v47  ;;  %v914_v50 = vsel %vm428_vm2, %v909_v49, 0 }
 0x844   : > { %1250 = vmatpush3.bf16.msra.mxu1 %v914_v50 }
 0x850   : > { %v1293_v48 = vpop.eup %1292 }
 0x851   : > { %v902_v0 = vsel %vm353_vm1, %v1293_v48, 0.0 }
 0x852   : > { %903 = vadd.xlane.f32.xlu0 %v902_v0 }
 0x86a   : > { %v837_v51 = vpop.f32.mrf.mxu1 }
 0x86b   : > { %v843_v52 = vadd.f32 %v837_v51, %v678_v5 }
 0x86c   : > { %v1241_v53 = vpop.f32.mrf.mxu1 }
 0x86e   : > { %v840_v54 = vpop.f32.mrf.mxu1 }
 0x870   : > { %v1242_v56 = vpop.f32.mrf.mxu1 }
 0x8db   : > { %v904_v57 = vpop.xlane.xlu0 %903 }
 0x8dc   : > { %1294 = vrcp.f32 %v904_v57 }
 0x8e9   : > { %v1295_v58 = vpop.eup %1294 }
 0x8ea   : > { %v906_v59 = vmul.f32 %v1295_v58, %v1293_v48 }
 0x8ec   : > { %v907_v60 = vpack.c.bf16 %v906_v59, %v906_v59 }
 0x8ee   : > { %1252 = vmatmul.mubr.msk.bf16.vlgmr.msra.gmra.mxu1 %vm353_vm1, %v907_v60 }
 0x9ae   : > { %v950_v61 = vpop.f32.mrf.mxu1 }
 0x9af   : > { %v957_v62 = vpack.c.bf16 %v950_v61, %v950_v61 }
 0x9b0   : > { %v1253_v63 = vpop.f32.mrf.mxu1 }
 0x9b1   : > { %1258 = vmatmul.mubr.msk.bf16.vlgmr.msra.gmra.mxu0 %vm353_vm1, %v957_v62 }
 0x9b2   : > { %v953_v1 = vpop.f32.mrf.mxu1 }
 0x9b4   : > { %v1254_v2 = vpop.f32.mrf.mxu1 }
 0xa71   : > { %v998_v4 = vpop.f32.mrf.mxu0 }
 0xa72   : > { %v1004_v7 = vadd.f32 %v998_v4, %v843_v52 }
 0xa73   : > { %v1259_v9 = vpop.f32.mrf.mxu0 }
 0xa74   : > { %v1012_v10 = vadd.f32 %v1160_v6, %v1004_v7 }
 0xa75   : > { %v1001_v11 = vpop.f32.mrf.mxu0 }
 0xa76   : > { %v1015_v13 = vadd.f32 %v1014_v8, %v1012_v10 }
 0xa77   : > { %v1260_v14 = vpop.f32.mrf.mxu0 }
 0xa78   : > { %v1017_v15 = vsel %vm1016_vm3, %v1015_v13, 0.0 }
 0xa79   : > { %1018 = vadd.xlane.f32.xlu0 %v1017_v15 }
 0xb02   : > { %v1019_v16 = vpop.xlane.xlu0 %1018 }
 0xb03   : > { %v1021_v17 = vmul.f32 0.03125, %v1019_v16 }
 0xb05   : > { %v1022_v18 = vsub.f32 %v1015_v13, %v1021_v17 }
 0xb07   : > { %v1023_v19 = vmul.f32 %v1022_v18, %v1022_v18 }
 0xb09   : > { %v1024_v21 = vsel %vm1016_vm3, %v1023_v19, 0.0 }
 0xb0a   : > { %1025 = vadd.xlane.f32.xlu0 %v1024_v21 }
 0xb93   : > { %v1026_v22 = vpop.xlane.xlu0 %1025 }
 0xb94   : > { %v1027_v23 = vmul.f32 0.03125, %v1026_v22 }
 0xb96   : > { %v1028_v24 = vadd.f32 1e-05, %v1027_v23 }
 0xb98   : > { %1296 = vrsqrt.f32 %v1028_v24 }
 0xba5   : > { %v1297_v25 = vpop.eup %1296 }
 0xba6   : > { %v1030_v20 = vmul.f32 %v1297_v25, %v1022_v18 }
 0xba8   : > { %v1038_v28 = vmul.f32 %v1161_v26, %v1030_v20 }
 0xbaa   : > { %v1046_v29 = vadd.f32 %v1162_v27, %v1038_v28 }
 0xbac   : > { %v1047_v30 = vpack.c.bf16 %v1046_v29, %v1046_v29 }
 0xbae   : > { %1049 = vst.msk [vmem:[%s348_s23] sm:$0xf] %vm1048_vm4, %v1047_v30 }
 0xbaf PF: > { %s18_s27 = sadd.s32 1, %s1304_s27  }
 0xbb0   : > { %p15_p4 = scmp.ge.s32.totalorder %s18_s27, 4  }
 0xbb2   :  { %17 = sbr.rel (!%p15_p4) target bundleno = 1 (0x1), region = 91 }

</bundles_post_ra>
